<compile_context>
chip_gen: v7x
topology: tpu7x:2x2x1
jax: 0.10.0
libtpu: 0.0.40
codegen_flags: <defaults>
</compile_context>

<pallas_src>
import math
import jax
import jax.numpy as jnp
from jax import lax
from jax.experimental import pallas as pl
from jax.experimental.pallas import tpu as pltpu

# ----------------------- model configuration -----------------------
B = 2             # batch
C = 4             # input channels
IMG = 16          # spatial size
PATCH = 4         # patch size
N_PATCH = (IMG // PATCH) ** 2          # 16 patches
SEQ = N_PATCH + 1                      # 17 valid tokens (patches + cls)
SEQ_PAD = 24                           # padded to a multiple of 8 sublanes
DIM = 32          # hidden dim
HEADS = 4
HEAD_DIM = DIM // HEADS                # 8
MLP_DIM = 64
DEPTH = 2
EPS = 1e-6
PATCH_DIM = C * PATCH * PATCH          # 64
ROWS = B * SEQ_PAD                     # 48 token rows (batch folded into seq)
HR = HEADS * ROWS                      # 192 head-stacked rows
CLS_ROW = N_PATCH                      # internal cls position inside each batch block
NEG = -1e30


# ----------------------- in-kernel helpers -----------------------
def _layernorm(x, w, b):
    mu = jnp.mean(x, axis=-1, keepdims=True)
    xc = x - mu
    var = jnp.mean(xc * xc, axis=-1, keepdims=True)
    return xc * lax.rsqrt(var + EPS) * w + b


def _gelu_tanh(x):
    # TODO(synk): PyTorch nn.GELU defaults to exact erf; tanh approximation used
    # (erf has no clean Mosaic lowering) -> ~1e-3 level difference.
    c = math.sqrt(2.0 / math.pi)
    return 0.5 * x * (1.0 + jnp.tanh(c * (x + 0.044715 * x * x * x)))


# ----------------------- fully fused ViT kernel (no grid) -----------------------
def _fused_vit_kernel(patches_ref, w_patch_ref, base_ref, bias_ref,
                      ln1w_ref, ln1b_ref, wqkv_ref, bqkv_ref, wo_ref, bo_ref,
                      ln2w_ref, ln2b_ref, w1_ref, b1_ref, w2_ref, b2_ref,
                      lnf_w_ref, lnf_b_ref, out_ref):
    # ---- prologue: patch embed + cls/pos placement ----
    # patches are already padded to (ROWS, PATCH_DIM) with zero rows for cls/pad,
    # and b_patch is folded into `base`, so this is a single matmul + add.
    x = base_ref[...] + jnp.dot(patches_ref[...], w_patch_ref[...],
                                preferred_element_type=jnp.float32)   # (ROWS, DIM) f32

    bias = bias_ref[...]                                              # (HR, HR) f32

    # ---- DEPTH pre-norm transformer blocks (static in-kernel loop) ----
    for d in range(DEPTH):
        # LayerNorm 1 + multi-head self-attention (heads stacked on sublanes)
        h1 = _layernorm(x, ln1w_ref[d], ln1b_ref[d])
        qkv = jnp.dot(h1.astype(jnp.bfloat16), wqkv_ref[d],
                      preferred_element_type=jnp.float32) + bqkv_ref[d]   # (ROWS, 3*DIM)
        # Q already carries the 1/sqrt(HEAD_DIM) scale (folded into Wqkv/bqkv).
        # Head-stacked layout: row index = h*ROWS + token_row  -> (HR, HEAD_DIM).
        q = jnp.concatenate(
            [qkv[:, h * HEAD_DIM:(h + 1) * HEAD_DIM] for h in range(HEADS)],
            axis=0).astype(jnp.bfloat16)
        k = jnp.concatenate(
            [qkv[:, DIM + h * HEAD_DIM:DIM + (h + 1) * HEAD_DIM] for h in range(HEADS)],
            axis=0).astype(jnp.bfloat16)
        v = jnp.concatenate(
            [qkv[:, 2 * DIM + h * HEAD_DIM:2 * DIM + (h + 1) * HEAD_DIM] for h in range(HEADS)],
            axis=0).astype(jnp.bfloat16)

        # One score matmul for all heads; cross-head / cross-batch / pad-key
        # blocks are killed by the precomputed block-diagonal bias.
        s = lax.dot_general(q, k, (((1,), (1,)), ((), ())),
                            preferred_element_type=jnp.float32) + bias    # (HR, HR)
        s = s - jnp.max(s, axis=-1, keepdims=True)                        # stable softmax
        p = jnp.exp(s)
        p = p * pl.reciprocal(jnp.sum(p, axis=-1, keepdims=True), approx=False)

        o = jnp.dot(p.astype(jnp.bfloat16), v,
                    preferred_element_type=jnp.float32)                   # (HR, HEAD_DIM)
        # Un-stack heads back to (ROWS, DIM) and do ONE output projection.
        o = jnp.concatenate(
            [o[h * ROWS:(h + 1) * ROWS, :] for h in range(HEADS)], axis=1)  # (ROWS, DIM)
        attn = jnp.dot(o.astype(jnp.bfloat16), wo_ref[d],
                       preferred_element_type=jnp.float32) + bo_ref[d]
        x = x + attn                                                       # residual

        # LayerNorm 2 + MLP
        h2 = _layernorm(x, ln2w_ref[d], ln2b_ref[d])
        m = jnp.dot(h2.astype(jnp.bfloat16), w1_ref[d],
                    preferred_element_type=jnp.float32) + b1_ref[d]
        m = _gelu_tanh(m)
        m = jnp.dot(m.astype(jnp.bfloat16), w2_ref[d],
                    preferred_element_type=jnp.float32) + b2_ref[d]
        x = x + m                                                          # residual
        # NOTE: padded rows (17..23 of each batch block) accumulate garbage across
        # depth; they are never read (masked as keys, never used as outputs) --
        # safe at DEPTH=2, keep an eye on this for much deeper models.

    # ---- epilogue: gather both cls rows, single final LN, single store ----
    cls_rows = jnp.concatenate(
        [x[b * SEQ_PAD + CLS_ROW: b * SEQ_PAD + CLS_ROW + 1, :] for b in range(B)],
        axis=0)                                                            # (B, DIM)
    out_ref[...] = _layernorm(cls_rows, lnf_w_ref[...],
                              lnf_b_ref[...]).astype(out_ref.dtype)


# ----------------------- wrapper helpers -----------------------
def extract_patches(x):
    # NCHW -> (B, N_PATCH, C*P*P), matching a stride-P conv patch embedding.
    Bx, Cx, Hx, Wx = x.shape
    x = x.reshape(Bx, Cx, Hx // PATCH, PATCH, Wx // PATCH, PATCH)
    x = x.transpose(0, 2, 4, 1, 3, 5)
    return x.reshape(Bx, N_PATCH, Cx * PATCH * PATCH)


def _build_patches_padded(x):
    # (ROWS, PATCH_DIM): rows [b*SEQ_PAD, b*SEQ_PAD+N_PATCH) hold patch pixels;
    # cls + pad rows are zero so they contribute nothing through the matmul.
    p = extract_patches(x)
    pad = jnp.zeros((B, SEQ_PAD - N_PATCH, PATCH_DIM), p.dtype)
    return jnp.concatenate([p, pad], axis=1).reshape(ROWS, PATCH_DIM).astype(jnp.bfloat16)


def _build_base(params):
    # Per batch block of SEQ_PAD rows: rows 0..15 = pos[1:] + b_patch,
    # row 16 = cls + pos[0], rows 17..23 = 0.  Internal token order is a
    # permutation (cls last), equivalent under fully (masked) attention.
    pos, cls_tok, b_patch = params["pos"], params["cls"], params["b_patch"]
    patch_part = jnp.broadcast_to(pos[:, 1:SEQ, :] + b_patch[None, :, :],
                                  (B, N_PATCH, DIM))
    cls_part = jnp.broadcast_to(cls_tok + pos[:, 0:1, :], (B, 1, DIM))
    pad_part = jnp.zeros((B, SEQ_PAD - SEQ, DIM), jnp.float32)
    return jnp.concatenate([patch_part, cls_part, pad_part],
                           axis=1).reshape(ROWS, DIM).astype(jnp.float32)


def _build_attn_bias():
    # Head-stacked row index i = h*ROWS + b*SEQ_PAD + s, so i // SEQ_PAD uniquely
    # identifies the (head, batch) block; keys valid only for s < SEQ.
    idx = jnp.arange(HR)
    blk = idx // SEQ_PAD
    key_ok = (idx % SEQ_PAD) < SEQ
    valid = (blk[:, None] == blk[None, :]) & key_ok[None, :]
    return jnp.where(valid, 0.0, NEG).astype(jnp.float32)       # (HR, HR)


# ----------------------- forward (== VisionTransformerWithMargins.forward) -----------------------
def vit_forward(x, params):
    patches = _build_patches_padded(x)          # (ROWS, PATCH_DIM) bf16
    base = _build_base(params)                  # (ROWS, DIM) f32 (pos + cls + b_patch)
    bias = _build_attn_bias()                   # (HR, HR) f32 block-diag mask

    # Fold the softmax scale 1/sqrt(HEAD_DIM) into the Q columns of Wqkv / bqkv.
    scale = 1.0 / math.sqrt(HEAD_DIM)
    col_scale = jnp.concatenate([jnp.full((DIM,), scale, jnp.float32),
                                 jnp.ones((2 * DIM,), jnp.float32)])
    wqkv = (params["wqkv"].astype(jnp.float32) * col_scale).astype(jnp.bfloat16)
    bqkv = params["bqkv"] * col_scale

    vmem = pl.BlockSpec(memory_space=pltpu.MemorySpace.VMEM)    # whole array in VMEM
    n_inputs = 18

    return pl.pallas_call(
        _fused_vit_kernel,
        out_shape=jax.ShapeDtypeStruct((B, DIM), jnp.float32),
        in_specs=[vmem] * n_inputs,
        out_specs=vmem,
    )(patches, params["w_patch"], base, bias,
      params["ln1w"], params["ln1b"], wqkv, bqkv,
      params["wo"], params["bo"], params["ln2w"], params["ln2b"],
      params["w1"], params["b1"], params["w2"], params["b2"],
      params["ln_f_w"], params["ln_f_b"])


def get_margins(params):
    # Equivalent of VisionTransformerWithMargins.get_margins()
    return params["m1"], params["m2"]


# ----------------------- parameter init (deterministic) -----------------------
def init_params(key):
    f32, bf16 = jnp.float32, jnp.bfloat16

    def nrm(k, shape, dtype):
        return (0.02 * jax.random.normal(k, shape, dtype=jnp.float32)).astype(dtype)

    ks = jax.random.split(key, 8)
    return {
        "w_patch": nrm(ks[0], (PATCH_DIM, DIM), bf16),
        "b_patch": jnp.zeros((1, DIM), f32),
        "cls": nrm(ks[1], (1, 1, DIM), f32),
        "pos": nrm(ks[2], (1, SEQ, DIM), f32),
        # per-layer weights stacked along a leading DEPTH axis
        "ln1w": jnp.ones((DEPTH, 1, DIM), f32),
        "ln1b": jnp.zeros((DEPTH, 1, DIM), f32),
        "wqkv": nrm(ks[3], (DEPTH, DIM, 3 * DIM), bf16),
        "bqkv": jnp.zeros((DEPTH, 1, 3 * DIM), f32),
        "wo": nrm(ks[4], (DEPTH, DIM, DIM), bf16),
        "bo": jnp.zeros((DEPTH, 1, DIM), f32),
        "ln2w": jnp.ones((DEPTH, 1, DIM), f32),
        "ln2b": jnp.zeros((DEPTH, 1, DIM), f32),
        "w1": nrm(ks[5], (DEPTH, DIM, MLP_DIM), bf16),
        "b1": jnp.zeros((DEPTH, 1, MLP_DIM), f32),
        "w2": nrm(ks[6], (DEPTH, MLP_DIM, DIM), bf16),
        "b2": jnp.zeros((DEPTH, 1, DIM), f32),
        "ln_f_w": jnp.ones((1, DIM), f32),
        "ln_f_b": jnp.zeros((1, DIM), f32),
        # LearnableMargins (m1_init=0.0, m2_init=0.2) — parameters, unused in forward
        "m1": jnp.float32(0.0),
        "m2": jnp.float32(0.2),
    }


# ----------------------- main -----------------------
if __name__ == "__main__":
    key = jax.random.PRNGKey(0)
    k_x, k_p = jax.random.split(key)
    x = jax.random.normal(k_x, (B, C, IMG, IMG), dtype=jnp.float32)  # NCHW like PyTorch
    params = init_params(k_p)

    fwd = jax.jit(lambda xx: vit_forward(xx, params))
    emb = jax.block_until_ready(fwd(x))

    m1, m2 = get_margins(params)
    assert emb.shape == (B, DIM) and emb.dtype == jnp.float32
    assert bool(jnp.all(jnp.isfinite(emb)))
    print("KERNEL_OK")
</pallas_src>

<mosaic_0001>
module attributes {stable_mosaic.version = 11 : i64} {
  func.func @_fused_vit_kernel(%arg0: memref<48x64xbf16, #tpu.memory_space<vmem>>, %arg1: memref<64x32xbf16, #tpu.memory_space<vmem>>, %arg2: memref<48x32xf32, #tpu.memory_space<vmem>>, %arg3: memref<192x192xf32, #tpu.memory_space<vmem>>, %arg4: memref<2x1x32xf32, #tpu.memory_space<vmem>>, %arg5: memref<2x1x32xf32, #tpu.memory_space<vmem>>, %arg6: memref<2x32x96xbf16, #tpu.memory_space<vmem>>, %arg7: memref<2x1x96xf32, #tpu.memory_space<vmem>>, %arg8: memref<2x32x32xbf16, #tpu.memory_space<vmem>>, %arg9: memref<2x1x32xf32, #tpu.memory_space<vmem>>, %arg10: memref<2x1x32xf32, #tpu.memory_space<vmem>>, %arg11: memref<2x1x32xf32, #tpu.memory_space<vmem>>, %arg12: memref<2x32x64xbf16, #tpu.memory_space<vmem>>, %arg13: memref<2x1x64xf32, #tpu.memory_space<vmem>>, %arg14: memref<2x64x32xbf16, #tpu.memory_space<vmem>>, %arg15: memref<2x1x32xf32, #tpu.memory_space<vmem>>, %arg16: memref<1x32xf32, #tpu.memory_space<vmem>>, %arg17: memref<1x32xf32, #tpu.memory_space<vmem>>, %arg18: memref<2x32xf32, #tpu.memory_space<vmem>>) attributes {dimension_semantics = [], scalar_prefetch = 0 : i64, scratch_operands = 0 : i64, tpu.core_type = #tpu.core_type<tc>} {
    %c0 = arith.constant 0 : index
    %c0_0 = arith.constant 0 : index
    %0 = vector.load %arg2[%c0, %c0_0] : memref<48x32xf32, #tpu.memory_space<vmem>>, vector<48x32xf32>
    %c0_1 = arith.constant 0 : index
    %c0_2 = arith.constant 0 : index
    %1 = vector.load %arg0[%c0_1, %c0_2] : memref<48x64xbf16, #tpu.memory_space<vmem>>, vector<48x64xbf16>
    %c0_3 = arith.constant 0 : index
    %c0_4 = arith.constant 0 : index
    %2 = vector.load %arg1[%c0_3, %c0_4] : memref<64x32xbf16, #tpu.memory_space<vmem>>, vector<64x32xbf16>
    %cst = arith.constant dense<0.000000e+00> : vector<48x32xf32>
    %3 = tpu.matmul %1, %2, %cst {dimension_numbers = #tpu.dot_dimension_numbers<[1], [0], [0], [1], [0, 0, 1, 1], [], []>} : vector<48x64xbf16>, vector<64x32xbf16>, vector<48x32xf32> -> vector<48x32xf32>
    %4 = arith.addf %0, %3 : vector<48x32xf32>
    %c0_5 = arith.constant 0 : index
    %c0_6 = arith.constant 0 : index
    %5 = vector.load %arg3[%c0_5, %c0_6] : memref<192x192xf32, #tpu.memory_space<vmem>>, vector<192x192xf32>
    %c0_7 = arith.constant 0 : index
    %c0_8 = arith.constant 0 : index
    %c0_9 = arith.constant 0 : index
    %6 = vector.load %arg4[%c0_7, %c0_8, %c0_9] : memref<2x1x32xf32, #tpu.memory_space<vmem>>, vector<1x1x32xf32>
    %7 = vector.shape_cast %6 : vector<1x1x32xf32> to vector<1x32xf32>
    %c0_10 = arith.constant 0 : index
    %c0_11 = arith.constant 0 : index
    %c0_12 = arith.constant 0 : index
    %8 = vector.load %arg5[%c0_10, %c0_11, %c0_12] : memref<2x1x32xf32, #tpu.memory_space<vmem>>, vector<1x1x32xf32>
    %9 = vector.shape_cast %8 : vector<1x1x32xf32> to vector<1x32xf32>
    %cst_13 = arith.constant dense<0.000000e+00> : vector<48xf32>
    %10 = vector.multi_reduction <add>, %4, %cst_13 [1] : vector<48x32xf32> to vector<48xf32>
    %11 = vector.shape_cast %10 : vector<48xf32> to vector<48x1xf32>
    %cst_14 = arith.constant 3.200000e+01 : f32
    %12 = vector.broadcast %cst_14 : f32 to vector<48x1xf32>
    %13 = arith.divf %11, %12 : vector<48x1xf32>
    %14 = vector.broadcast %13 : vector<48x1xf32> to vector<48x32xf32>
    %15 = arith.subf %4, %14 : vector<48x32xf32>
    %16 = arith.mulf %15, %15 : vector<48x32xf32>
    %cst_15 = arith.constant dense<0.000000e+00> : vector<48xf32>
    %17 = vector.multi_reduction <add>, %16, %cst_15 [1] : vector<48x32xf32> to vector<48xf32>
    %18 = vector.shape_cast %17 : vector<48xf32> to vector<48x1xf32>
    %cst_16 = arith.constant 3.200000e+01 : f32
    %19 = vector.broadcast %cst_16 : f32 to vector<48x1xf32>
    %20 = arith.divf %18, %19 : vector<48x1xf32>
    %cst_17 = arith.constant 9.99999997E-7 : f32
    %21 = vector.broadcast %cst_17 : f32 to vector<48x1xf32>
    %22 = arith.addf %20, %21 : vector<48x1xf32>
    %23 = math.rsqrt %22 : vector<48x1xf32>
    %24 = vector.broadcast %23 : vector<48x1xf32> to vector<48x32xf32>
    %25 = arith.mulf %15, %24 : vector<48x32xf32>
    %26 = vector.broadcast %7 : vector<1x32xf32> to vector<48x32xf32>
    %27 = arith.mulf %25, %26 : vector<48x32xf32>
    %28 = vector.broadcast %9 : vector<1x32xf32> to vector<48x32xf32>
    %29 = arith.addf %27, %28 : vector<48x32xf32>
    %30 = arith.truncf %29 : vector<48x32xf32> to vector<48x32xbf16>
    %c0_18 = arith.constant 0 : index
    %c0_19 = arith.constant 0 : index
    %c0_20 = arith.constant 0 : index
    %31 = vector.load %arg6[%c0_18, %c0_19, %c0_20] : memref<2x32x96xbf16, #tpu.memory_space<vmem>>, vector<1x32x96xbf16>
    %32 = vector.shape_cast %31 : vector<1x32x96xbf16> to vector<32x96xbf16>
    %cst_21 = arith.constant dense<0.000000e+00> : vector<48x96xf32>
    %33 = tpu.matmul %30, %32, %cst_21 {dimension_numbers = #tpu.dot_dimension_numbers<[1], [0], [0], [1], [0, 0, 1, 1], [], []>} : vector<48x32xbf16>, vector<32x96xbf16>, vector<48x96xf32> -> vector<48x96xf32>
    %c0_22 = arith.constant 0 : index
    %c0_23 = arith.constant 0 : index
    %c0_24 = arith.constant 0 : index
    %34 = vector.load %arg7[%c0_22, %c0_23, %c0_24] : memref<2x1x96xf32, #tpu.memory_space<vmem>>, vector<1x1x96xf32>
    %35 = vector.shape_cast %34 : vector<1x1x96xf32> to vector<1x96xf32>
    %36 = vector.broadcast %35 : vector<1x96xf32> to vector<48x96xf32>
    %37 = arith.addf %33, %36 : vector<48x96xf32>
    %38 = vector.extract_strided_slice %37 {offsets = [0, 0], sizes = [48, 8], strides = [1, 1]} : vector<48x96xf32> to vector<48x8xf32>
    %39 = vector.extract_strided_slice %37 {offsets = [0, 8], sizes = [48, 8], strides = [1, 1]} : vector<48x96xf32> to vector<48x8xf32>
    %40 = vector.extract_strided_slice %37 {offsets = [0, 16], sizes = [48, 8], strides = [1, 1]} : vector<48x96xf32> to vector<48x8xf32>
    %41 = vector.extract_strided_slice %37 {offsets = [0, 24], sizes = [48, 8], strides = [1, 1]} : vector<48x96xf32> to vector<48x8xf32>
    %42 = tpu.concatenate %38, %39, %40, %41 in 0 : vector<48x8xf32>, vector<48x8xf32>, vector<48x8xf32>, vector<48x8xf32> -> vector<192x8xf32>
    %43 = arith.truncf %42 : vector<192x8xf32> to vector<192x8xbf16>
    %44 = vector.extract_strided_slice %37 {offsets = [0, 32], sizes = [48, 8], strides = [1, 1]} : vector<48x96xf32> to vector<48x8xf32>
    %45 = vector.extract_strided_slice %37 {offsets = [0, 40], sizes = [48, 8], strides = [1, 1]} : vector<48x96xf32> to vector<48x8xf32>
    %46 = vector.extract_strided_slice %37 {offsets = [0, 48], sizes = [48, 8], strides = [1, 1]} : vector<48x96xf32> to vector<48x8xf32>
    %47 = vector.extract_strided_slice %37 {offsets = [0, 56], sizes = [48, 8], strides = [1, 1]} : vector<48x96xf32> to vector<48x8xf32>
    %48 = tpu.concatenate %44, %45, %46, %47 in 0 : vector<48x8xf32>, vector<48x8xf32>, vector<48x8xf32>, vector<48x8xf32> -> vector<192x8xf32>
    %49 = arith.truncf %48 : vector<192x8xf32> to vector<192x8xbf16>
    %50 = vector.extract_strided_slice %37 {offsets = [0, 64], sizes = [48, 8], strides = [1, 1]} : vector<48x96xf32> to vector<48x8xf32>
    %51 = vector.extract_strided_slice %37 {offsets = [0, 72], sizes = [48, 8], strides = [1, 1]} : vector<48x96xf32> to vector<48x8xf32>
    %52 = vector.extract_strided_slice %37 {offsets = [0, 80], sizes = [48, 8], strides = [1, 1]} : vector<48x96xf32> to vector<48x8xf32>
    %53 = vector.extract_strided_slice %37 {offsets = [0, 88], sizes = [48, 8], strides = [1, 1]} : vector<48x96xf32> to vector<48x8xf32>
    %54 = tpu.concatenate %50, %51, %52, %53 in 0 : vector<48x8xf32>, vector<48x8xf32>, vector<48x8xf32>, vector<48x8xf32> -> vector<192x8xf32>
    %55 = arith.truncf %54 : vector<192x8xf32> to vector<192x8xbf16>
    %cst_25 = arith.constant dense<0.000000e+00> : vector<192x192xf32>
    %56 = tpu.matmul %43, %49, %cst_25 {dimension_numbers = #tpu.dot_dimension_numbers<[1], [1], [0], [0], [0, 0, 1, 0], [], []>} : vector<192x8xbf16>, vector<192x8xbf16>, vector<192x192xf32> -> vector<192x192xf32>
    %57 = arith.addf %56, %5 : vector<192x192xf32>
    %cst_26 = arith.constant dense<0xFF800000> : vector<192xf32>
    %58 = vector.multi_reduction <maximumf>, %57, %cst_26 [1] : vector<192x192xf32> to vector<192xf32>
    %59 = vector.shape_cast %58 : vector<192xf32> to vector<192x1xf32>
    %60 = vector.broadcast %59 : vector<192x1xf32> to vector<192x192xf32>
    %61 = arith.subf %57, %60 : vector<192x192xf32>
    %62 = math.exp %61 : vector<192x192xf32>
    %cst_27 = arith.constant dense<0.000000e+00> : vector<192xf32>
    %63 = vector.multi_reduction <add>, %62, %cst_27 [1] : vector<192x192xf32> to vector<192xf32>
    %64 = vector.shape_cast %63 : vector<192xf32> to vector<192x1xf32>
    %65 = tpu.reciprocal %64 : vector<192x1xf32> -> vector<192x1xf32>
    %66 = vector.broadcast %65 : vector<192x1xf32> to vector<192x192xf32>
    %67 = arith.mulf %62, %66 : vector<192x192xf32>
    %68 = arith.truncf %67 : vector<192x192xf32> to vector<192x192xbf16>
    %cst_28 = arith.constant dense<0.000000e+00> : vector<192x8xf32>
    %69 = tpu.matmul %68, %55, %cst_28 {dimension_numbers = #tpu.dot_dimension_numbers<[1], [0], [0], [1], [0, 0, 1, 1], [], []>} : vector<192x192xbf16>, vector<192x8xbf16>, vector<192x8xf32> -> vector<192x8xf32>
    %70 = vector.extract_strided_slice %69 {offsets = [0, 0], sizes = [48, 8], strides = [1, 1]} : vector<192x8xf32> to vector<48x8xf32>
    %71 = vector.extract_strided_slice %69 {offsets = [48, 0], sizes = [48, 8], strides = [1, 1]} : vector<192x8xf32> to vector<48x8xf32>
    %72 = vector.extract_strided_slice %69 {offsets = [96, 0], sizes = [48, 8], strides = [1, 1]} : vector<192x8xf32> to vector<48x8xf32>
    %73 = vector.extract_strided_slice %69 {offsets = [144, 0], sizes = [48, 8], strides = [1, 1]} : vector<192x8xf32> to vector<48x8xf32>
    %74 = tpu.concatenate %70, %71, %72, %73 in 1 : vector<48x8xf32>, vector<48x8xf32>, vector<48x8xf32>, vector<48x8xf32> -> vector<48x32xf32>
    %75 = arith.truncf %74 : vector<48x32xf32> to vector<48x32xbf16>
    %c0_29 = arith.constant 0 : index
    %c0_30 = arith.constant 0 : index
    %c0_31 = arith.constant 0 : index
    %76 = vector.load %arg8[%c0_29, %c0_30, %c0_31] : memref<2x32x32xbf16, #tpu.memory_space<vmem>>, vector<1x32x32xbf16>
    %77 = vector.shape_cast %76 : vector<1x32x32xbf16> to vector<32x32xbf16>
    %cst_32 = arith.constant dense<0.000000e+00> : vector<48x32xf32>
    %78 = tpu.matmul %75, %77, %cst_32 {dimension_numbers = #tpu.dot_dimension_numbers<[1], [0], [0], [1], [0, 0, 1, 1], [], []>} : vector<48x32xbf16>, vector<32x32xbf16>, vector<48x32xf32> -> vector<48x32xf32>
    %c0_33 = arith.constant 0 : index
    %c0_34 = arith.constant 0 : index
    %c0_35 = arith.constant 0 : index
    %79 = vector.load %arg9[%c0_33, %c0_34, %c0_35] : memref<2x1x32xf32, #tpu.memory_space<vmem>>, vector<1x1x32xf32>
    %80 = vector.shape_cast %79 : vector<1x1x32xf32> to vector<1x32xf32>
    %81 = vector.broadcast %80 : vector<1x32xf32> to vector<48x32xf32>
    %82 = arith.addf %78, %81 : vector<48x32xf32>
    %83 = arith.addf %4, %82 : vector<48x32xf32>
    %c0_36 = arith.constant 0 : index
    %c0_37 = arith.constant 0 : index
    %c0_38 = arith.constant 0 : index
    %84 = vector.load %arg10[%c0_36, %c0_37, %c0_38] : memref<2x1x32xf32, #tpu.memory_space<vmem>>, vector<1x1x32xf32>
    %85 = vector.shape_cast %84 : vector<1x1x32xf32> to vector<1x32xf32>
    %c0_39 = arith.constant 0 : index
    %c0_40 = arith.constant 0 : index
    %c0_41 = arith.constant 0 : index
    %86 = vector.load %arg11[%c0_39, %c0_40, %c0_41] : memref<2x1x32xf32, #tpu.memory_space<vmem>>, vector<1x1x32xf32>
    %87 = vector.shape_cast %86 : vector<1x1x32xf32> to vector<1x32xf32>
    %cst_42 = arith.constant dense<0.000000e+00> : vector<48xf32>
    %88 = vector.multi_reduction <add>, %83, %cst_42 [1] : vector<48x32xf32> to vector<48xf32>
    %89 = vector.shape_cast %88 : vector<48xf32> to vector<48x1xf32>
    %cst_43 = arith.constant 3.200000e+01 : f32
    %90 = vector.broadcast %cst_43 : f32 to vector<48x1xf32>
    %91 = arith.divf %89, %90 : vector<48x1xf32>
    %92 = vector.broadcast %91 : vector<48x1xf32> to vector<48x32xf32>
    %93 = arith.subf %83, %92 : vector<48x32xf32>
    %94 = arith.mulf %93, %93 : vector<48x32xf32>
    %cst_44 = arith.constant dense<0.000000e+00> : vector<48xf32>
    %95 = vector.multi_reduction <add>, %94, %cst_44 [1] : vector<48x32xf32> to vector<48xf32>
    %96 = vector.shape_cast %95 : vector<48xf32> to vector<48x1xf32>
    %cst_45 = arith.constant 3.200000e+01 : f32
    %97 = vector.broadcast %cst_45 : f32 to vector<48x1xf32>
    %98 = arith.divf %96, %97 : vector<48x1xf32>
    %cst_46 = arith.constant 9.99999997E-7 : f32
    %99 = vector.broadcast %cst_46 : f32 to vector<48x1xf32>
    %100 = arith.addf %98, %99 : vector<48x1xf32>
    %101 = math.rsqrt %100 : vector<48x1xf32>
    %102 = vector.broadcast %101 : vector<48x1xf32> to vector<48x32xf32>
    %103 = arith.mulf %93, %102 : vector<48x32xf32>
    %104 = vector.broadcast %85 : vector<1x32xf32> to vector<48x32xf32>
    %105 = arith.mulf %103, %104 : vector<48x32xf32>
    %106 = vector.broadcast %87 : vector<1x32xf32> to vector<48x32xf32>
    %107 = arith.addf %105, %106 : vector<48x32xf32>
    %108 = arith.truncf %107 : vector<48x32xf32> to vector<48x32xbf16>
    %c0_47 = arith.constant 0 : index
    %c0_48 = arith.constant 0 : index
    %c0_49 = arith.constant 0 : index
    %109 = vector.load %arg12[%c0_47, %c0_48, %c0_49] : memref<2x32x64xbf16, #tpu.memory_space<vmem>>, vector<1x32x64xbf16>
    %110 = vector.shape_cast %109 : vector<1x32x64xbf16> to vector<32x64xbf16>
    %cst_50 = arith.constant dense<0.000000e+00> : vector<48x64xf32>
    %111 = tpu.matmul %108, %110, %cst_50 {dimension_numbers = #tpu.dot_dimension_numbers<[1], [0], [0], [1], [0, 0, 1, 1], [], []>} : vector<48x32xbf16>, vector<32x64xbf16>, vector<48x64xf32> -> vector<48x64xf32>
    %c0_51 = arith.constant 0 : index
    %c0_52 = arith.constant 0 : index
    %c0_53 = arith.constant 0 : index
    %112 = vector.load %arg13[%c0_51, %c0_52, %c0_53] : memref<2x1x64xf32, #tpu.memory_space<vmem>>, vector<1x1x64xf32>
    %113 = vector.shape_cast %112 : vector<1x1x64xf32> to vector<1x64xf32>
    %114 = vector.broadcast %113 : vector<1x64xf32> to vector<48x64xf32>
    %115 = arith.addf %111, %114 : vector<48x64xf32>
    %cst_54 = arith.constant 5.000000e-01 : f32
    %116 = vector.broadcast %cst_54 : f32 to vector<48x64xf32>
    %117 = arith.mulf %116, %115 : vector<48x64xf32>
    %cst_55 = arith.constant 4.471500e-02 : f32
    %118 = vector.broadcast %cst_55 : f32 to vector<48x64xf32>
    %119 = arith.mulf %118, %115 : vector<48x64xf32>
    %120 = arith.mulf %119, %115 : vector<48x64xf32>
    %121 = arith.mulf %120, %115 : vector<48x64xf32>
    %122 = arith.addf %115, %121 : vector<48x64xf32>
    %cst_56 = arith.constant 0.797884583 : f32
    %123 = vector.broadcast %cst_56 : f32 to vector<48x64xf32>
    %124 = arith.mulf %123, %122 : vector<48x64xf32>
    %125 = math.tanh %124 : vector<48x64xf32>
    %cst_57 = arith.constant 1.000000e+00 : f32
    %126 = vector.broadcast %cst_57 : f32 to vector<48x64xf32>
    %127 = arith.addf %126, %125 : vector<48x64xf32>
    %128 = arith.mulf %117, %127 : vector<48x64xf32>
    %129 = arith.truncf %128 : vector<48x64xf32> to vector<48x64xbf16>
    %c0_58 = arith.constant 0 : index
    %c0_59 = arith.constant 0 : index
    %c0_60 = arith.constant 0 : index
    %130 = vector.load %arg14[%c0_58, %c0_59, %c0_60] : memref<2x64x32xbf16, #tpu.memory_space<vmem>>, vector<1x64x32xbf16>
    %131 = vector.shape_cast %130 : vector<1x64x32xbf16> to vector<64x32xbf16>
    %cst_61 = arith.constant dense<0.000000e+00> : vector<48x32xf32>
    %132 = tpu.matmul %129, %131, %cst_61 {dimension_numbers = #tpu.dot_dimension_numbers<[1], [0], [0], [1], [0, 0, 1, 1], [], []>} : vector<48x64xbf16>, vector<64x32xbf16>, vector<48x32xf32> -> vector<48x32xf32>
    %c0_62 = arith.constant 0 : index
    %c0_63 = arith.constant 0 : index
    %c0_64 = arith.constant 0 : index
    %133 = vector.load %arg15[%c0_62, %c0_63, %c0_64] : memref<2x1x32xf32, #tpu.memory_space<vmem>>, vector<1x1x32xf32>
    %134 = vector.shape_cast %133 : vector<1x1x32xf32> to vector<1x32xf32>
    %135 = vector.broadcast %134 : vector<1x32xf32> to vector<48x32xf32>
    %136 = arith.addf %132, %135 : vector<48x32xf32>
    %137 = arith.addf %83, %136 : vector<48x32xf32>
    %c1 = arith.constant 1 : index
    %c0_65 = arith.constant 0 : index
    %c0_66 = arith.constant 0 : index
    %138 = vector.load %arg4[%c1, %c0_65, %c0_66] : memref<2x1x32xf32, #tpu.memory_space<vmem>>, vector<1x1x32xf32>
    %139 = vector.shape_cast %138 : vector<1x1x32xf32> to vector<1x32xf32>
    %c1_67 = arith.constant 1 : index
    %c0_68 = arith.constant 0 : index
    %c0_69 = arith.constant 0 : index
    %140 = vector.load %arg5[%c1_67, %c0_68, %c0_69] : memref<2x1x32xf32, #tpu.memory_space<vmem>>, vector<1x1x32xf32>
    %141 = vector.shape_cast %140 : vector<1x1x32xf32> to vector<1x32xf32>
    %cst_70 = arith.constant dense<0.000000e+00> : vector<48xf32>
    %142 = vector.multi_reduction <add>, %137, %cst_70 [1] : vector<48x32xf32> to vector<48xf32>
    %143 = vector.shape_cast %142 : vector<48xf32> to vector<48x1xf32>
    %cst_71 = arith.constant 3.200000e+01 : f32
    %144 = vector.broadcast %cst_71 : f32 to vector<48x1xf32>
    %145 = arith.divf %143, %144 : vector<48x1xf32>
    %146 = vector.broadcast %145 : vector<48x1xf32> to vector<48x32xf32>
    %147 = arith.subf %137, %146 : vector<48x32xf32>
    %148 = arith.mulf %147, %147 : vector<48x32xf32>
    %cst_72 = arith.constant dense<0.000000e+00> : vector<48xf32>
    %149 = vector.multi_reduction <add>, %148, %cst_72 [1] : vector<48x32xf32> to vector<48xf32>
    %150 = vector.shape_cast %149 : vector<48xf32> to vector<48x1xf32>
    %cst_73 = arith.constant 3.200000e+01 : f32
    %151 = vector.broadcast %cst_73 : f32 to vector<48x1xf32>
    %152 = arith.divf %150, %151 : vector<48x1xf32>
    %cst_74 = arith.constant 9.99999997E-7 : f32
    %153 = vector.broadcast %cst_74 : f32 to vector<48x1xf32>
    %154 = arith.addf %152, %153 : vector<48x1xf32>
    %155 = math.rsqrt %154 : vector<48x1xf32>
    %156 = vector.broadcast %155 : vector<48x1xf32> to vector<48x32xf32>
    %157 = arith.mulf %147, %156 : vector<48x32xf32>
    %158 = vector.broadcast %139 : vector<1x32xf32> to vector<48x32xf32>
    %159 = arith.mulf %157, %158 : vector<48x32xf32>
    %160 = vector.broadcast %141 : vector<1x32xf32> to vector<48x32xf32>
    %161 = arith.addf %159, %160 : vector<48x32xf32>
    %162 = arith.truncf %161 : vector<48x32xf32> to vector<48x32xbf16>
    %c1_75 = arith.constant 1 : index
    %c0_76 = arith.constant 0 : index
    %c0_77 = arith.constant 0 : index
    %163 = vector.load %arg6[%c1_75, %c0_76, %c0_77] : memref<2x32x96xbf16, #tpu.memory_space<vmem>>, vector<1x32x96xbf16>
    %164 = vector.shape_cast %163 : vector<1x32x96xbf16> to vector<32x96xbf16>
    %cst_78 = arith.constant dense<0.000000e+00> : vector<48x96xf32>
    %165 = tpu.matmul %162, %164, %cst_78 {dimension_numbers = #tpu.dot_dimension_numbers<[1], [0], [0], [1], [0, 0, 1, 1], [], []>} : vector<48x32xbf16>, vector<32x96xbf16>, vector<48x96xf32> -> vector<48x96xf32>
    %c1_79 = arith.constant 1 : index
    %c0_80 = arith.constant 0 : index
    %c0_81 = arith.constant 0 : index
    %166 = vector.load %arg7[%c1_79, %c0_80, %c0_81] : memref<2x1x96xf32, #tpu.memory_space<vmem>>, vector<1x1x96xf32>
    %167 = vector.shape_cast %166 : vector<1x1x96xf32> to vector<1x96xf32>
    %168 = vector.broadcast %167 : vector<1x96xf32> to vector<48x96xf32>
    %169 = arith.addf %165, %168 : vector<48x96xf32>
    %170 = vector.extract_strided_slice %169 {offsets = [0, 0], sizes = [48, 8], strides = [1, 1]} : vector<48x96xf32> to vector<48x8xf32>
    %171 = vector.extract_strided_slice %169 {offsets = [0, 8], sizes = [48, 8], strides = [1, 1]} : vector<48x96xf32> to vector<48x8xf32>
    %172 = vector.extract_strided_slice %169 {offsets = [0, 16], sizes = [48, 8], strides = [1, 1]} : vector<48x96xf32> to vector<48x8xf32>
    %173 = vector.extract_strided_slice %169 {offsets = [0, 24], sizes = [48, 8], strides = [1, 1]} : vector<48x96xf32> to vector<48x8xf32>
    %174 = tpu.concatenate %170, %171, %172, %173 in 0 : vector<48x8xf32>, vector<48x8xf32>, vector<48x8xf32>, vector<48x8xf32> -> vector<192x8xf32>
    %175 = arith.truncf %174 : vector<192x8xf32> to vector<192x8xbf16>
    %176 = vector.extract_strided_slice %169 {offsets = [0, 32], sizes = [48, 8], strides = [1, 1]} : vector<48x96xf32> to vector<48x8xf32>
    %177 = vector.extract_strided_slice %169 {offsets = [0, 40], sizes = [48, 8], strides = [1, 1]} : vector<48x96xf32> to vector<48x8xf32>
    %178 = vector.extract_strided_slice %169 {offsets = [0, 48], sizes = [48, 8], strides = [1, 1]} : vector<48x96xf32> to vector<48x8xf32>
    %179 = vector.extract_strided_slice %169 {offsets = [0, 56], sizes = [48, 8], strides = [1, 1]} : vector<48x96xf32> to vector<48x8xf32>
    %180 = tpu.concatenate %176, %177, %178, %179 in 0 : vector<48x8xf32>, vector<48x8xf32>, vector<48x8xf32>, vector<48x8xf32> -> vector<192x8xf32>
    %181 = arith.truncf %180 : vector<192x8xf32> to vector<192x8xbf16>
    %182 = vector.extract_strided_slice %169 {offsets = [0, 64], sizes = [48, 8], strides = [1, 1]} : vector<48x96xf32> to vector<48x8xf32>
    %183 = vector.extract_strided_slice %169 {offsets = [0, 72], sizes = [48, 8], strides = [1, 1]} : vector<48x96xf32> to vector<48x8xf32>
    %184 = vector.extract_strided_slice %169 {offsets = [0, 80], sizes = [48, 8], strides = [1, 1]} : vector<48x96xf32> to vector<48x8xf32>
    %185 = vector.extract_strided_slice %169 {offsets = [0, 88], sizes = [48, 8], strides = [1, 1]} : vector<48x96xf32> to vector<48x8xf32>
    %186 = tpu.concatenate %182, %183, %184, %185 in 0 : vector<48x8xf32>, vector<48x8xf32>, vector<48x8xf32>, vector<48x8xf32> -> vector<192x8xf32>
    %187 = arith.truncf %186 : vector<192x8xf32> to vector<192x8xbf16>
    %cst_82 = arith.constant dense<0.000000e+00> : vector<192x192xf32>
    %188 = tpu.matmul %175, %181, %cst_82 {dimension_numbers = #tpu.dot_dimension_numbers<[1], [1], [0], [0], [0, 0, 1, 0], [], []>} : vector<192x8xbf16>, vector<192x8xbf16>, vector<192x192xf32> -> vector<192x192xf32>
    %189 = arith.addf %188, %5 : vector<192x192xf32>
    %cst_83 = arith.constant dense<0xFF800000> : vector<192xf32>
    %190 = vector.multi_reduction <maximumf>, %189, %cst_83 [1] : vector<192x192xf32> to vector<192xf32>
    %191 = vector.shape_cast %190 : vector<192xf32> to vector<192x1xf32>
    %192 = vector.broadcast %191 : vector<192x1xf32> to vector<192x192xf32>
    %193 = arith.subf %189, %192 : vector<192x192xf32>
    %194 = math.exp %193 : vector<192x192xf32>
    %cst_84 = arith.constant dense<0.000000e+00> : vector<192xf32>
    %195 = vector.multi_reduction <add>, %194, %cst_84 [1] : vector<192x192xf32> to vector<192xf32>
    %196 = vector.shape_cast %195 : vector<192xf32> to vector<192x1xf32>
    %197 = tpu.reciprocal %196 : vector<192x1xf32> -> vector<192x1xf32>
    %198 = vector.broadcast %197 : vector<192x1xf32> to vector<192x192xf32>
    %199 = arith.mulf %194, %198 : vector<192x192xf32>
    %200 = arith.truncf %199 : vector<192x192xf32> to vector<192x192xbf16>
    %cst_85 = arith.constant dense<0.000000e+00> : vector<192x8xf32>
    %201 = tpu.matmul %200, %187, %cst_85 {dimension_numbers = #tpu.dot_dimension_numbers<[1], [0], [0], [1], [0, 0, 1, 1], [], []>} : vector<192x192xbf16>, vector<192x8xbf16>, vector<192x8xf32> -> vector<192x8xf32>
    %202 = vector.extract_strided_slice %201 {offsets = [0, 0], sizes = [48, 8], strides = [1, 1]} : vector<192x8xf32> to vector<48x8xf32>
    %203 = vector.extract_strided_slice %201 {offsets = [48, 0], sizes = [48, 8], strides = [1, 1]} : vector<192x8xf32> to vector<48x8xf32>
    %204 = vector.extract_strided_slice %201 {offsets = [96, 0], sizes = [48, 8], strides = [1, 1]} : vector<192x8xf32> to vector<48x8xf32>
    %205 = vector.extract_strided_slice %201 {offsets = [144, 0], sizes = [48, 8], strides = [1, 1]} : vector<192x8xf32> to vector<48x8xf32>
    %206 = tpu.concatenate %202, %203, %204, %205 in 1 : vector<48x8xf32>, vector<48x8xf32>, vector<48x8xf32>, vector<48x8xf32> -> vector<48x32xf32>
    %207 = arith.truncf %206 : vector<48x32xf32> to vector<48x32xbf16>
    %c1_86 = arith.constant 1 : index
    %c0_87 = arith.constant 0 : index
    %c0_88 = arith.constant 0 : index
    %208 = vector.load %arg8[%c1_86, %c0_87, %c0_88] : memref<2x32x32xbf16, #tpu.memory_space<vmem>>, vector<1x32x32xbf16>
    %209 = vector.shape_cast %208 : vector<1x32x32xbf16> to vector<32x32xbf16>
    %cst_89 = arith.constant dense<0.000000e+00> : vector<48x32xf32>
    %210 = tpu.matmul %207, %209, %cst_89 {dimension_numbers = #tpu.dot_dimension_numbers<[1], [0], [0], [1], [0, 0, 1, 1], [], []>} : vector<48x32xbf16>, vector<32x32xbf16>, vector<48x32xf32> -> vector<48x32xf32>
    %c1_90 = arith.constant 1 : index
    %c0_91 = arith.constant 0 : index
    %c0_92 = arith.constant 0 : index
    %211 = vector.load %arg9[%c1_90, %c0_91, %c0_92] : memref<2x1x32xf32, #tpu.memory_space<vmem>>, vector<1x1x32xf32>
    %212 = vector.shape_cast %211 : vector<1x1x32xf32> to vector<1x32xf32>
    %213 = vector.broadcast %212 : vector<1x32xf32> to vector<48x32xf32>
    %214 = arith.addf %210, %213 : vector<48x32xf32>
    %215 = arith.addf %137, %214 : vector<48x32xf32>
    %c1_93 = arith.constant 1 : index
    %c0_94 = arith.constant 0 : index
    %c0_95 = arith.constant 0 : index
    %216 = vector.load %arg10[%c1_93, %c0_94, %c0_95] : memref<2x1x32xf32, #tpu.memory_space<vmem>>, vector<1x1x32xf32>
    %217 = vector.shape_cast %216 : vector<1x1x32xf32> to vector<1x32xf32>
    %c1_96 = arith.constant 1 : index
    %c0_97 = arith.constant 0 : index
    %c0_98 = arith.constant 0 : index
    %218 = vector.load %arg11[%c1_96, %c0_97, %c0_98] : memref<2x1x32xf32, #tpu.memory_space<vmem>>, vector<1x1x32xf32>
    %219 = vector.shape_cast %218 : vector<1x1x32xf32> to vector<1x32xf32>
    %cst_99 = arith.constant dense<0.000000e+00> : vector<48xf32>
    %220 = vector.multi_reduction <add>, %215, %cst_99 [1] : vector<48x32xf32> to vector<48xf32>
    %221 = vector.shape_cast %220 : vector<48xf32> to vector<48x1xf32>
    %cst_100 = arith.constant 3.200000e+01 : f32
    %222 = vector.broadcast %cst_100 : f32 to vector<48x1xf32>
    %223 = arith.divf %221, %222 : vector<48x1xf32>
    %224 = vector.broadcast %223 : vector<48x1xf32> to vector<48x32xf32>
    %225 = arith.subf %215, %224 : vector<48x32xf32>
    %226 = arith.mulf %225, %225 : vector<48x32xf32>
    %cst_101 = arith.constant dense<0.000000e+00> : vector<48xf32>
    %227 = vector.multi_reduction <add>, %226, %cst_101 [1] : vector<48x32xf32> to vector<48xf32>
    %228 = vector.shape_cast %227 : vector<48xf32> to vector<48x1xf32>
    %cst_102 = arith.constant 3.200000e+01 : f32
    %229 = vector.broadcast %cst_102 : f32 to vector<48x1xf32>
    %230 = arith.divf %228, %229 : vector<48x1xf32>
    %cst_103 = arith.constant 9.99999997E-7 : f32
    %231 = vector.broadcast %cst_103 : f32 to vector<48x1xf32>
    %232 = arith.addf %230, %231 : vector<48x1xf32>
    %233 = math.rsqrt %232 : vector<48x1xf32>
    %234 = vector.broadcast %233 : vector<48x1xf32> to vector<48x32xf32>
    %235 = arith.mulf %225, %234 : vector<48x32xf32>
    %236 = vector.broadcast %217 : vector<1x32xf32> to vector<48x32xf32>
    %237 = arith.mulf %235, %236 : vector<48x32xf32>
    %238 = vector.broadcast %219 : vector<1x32xf32> to vector<48x32xf32>
    %239 = arith.addf %237, %238 : vector<48x32xf32>
    %240 = arith.truncf %239 : vector<48x32xf32> to vector<48x32xbf16>
    %c1_104 = arith.constant 1 : index
    %c0_105 = arith.constant 0 : index
    %c0_106 = arith.constant 0 : index
    %241 = vector.load %arg12[%c1_104, %c0_105, %c0_106] : memref<2x32x64xbf16, #tpu.memory_space<vmem>>, vector<1x32x64xbf16>
    %242 = vector.shape_cast %241 : vector<1x32x64xbf16> to vector<32x64xbf16>
    %cst_107 = arith.constant dense<0.000000e+00> : vector<48x64xf32>
    %243 = tpu.matmul %240, %242, %cst_107 {dimension_numbers = #tpu.dot_dimension_numbers<[1], [0], [0], [1], [0, 0, 1, 1], [], []>} : vector<48x32xbf16>, vector<32x64xbf16>, vector<48x64xf32> -> vector<48x64xf32>
    %c1_108 = arith.constant 1 : index
    %c0_109 = arith.constant 0 : index
    %c0_110 = arith.constant 0 : index
    %244 = vector.load %arg13[%c1_108, %c0_109, %c0_110] : memref<2x1x64xf32, #tpu.memory_space<vmem>>, vector<1x1x64xf32>
    %245 = vector.shape_cast %244 : vector<1x1x64xf32> to vector<1x64xf32>
    %246 = vector.broadcast %245 : vector<1x64xf32> to vector<48x64xf32>
    %247 = arith.addf %243, %246 : vector<48x64xf32>
    %cst_111 = arith.constant 5.000000e-01 : f32
    %248 = vector.broadcast %cst_111 : f32 to vector<48x64xf32>
    %249 = arith.mulf %248, %247 : vector<48x64xf32>
    %cst_112 = arith.constant 4.471500e-02 : f32
    %250 = vector.broadcast %cst_112 : f32 to vector<48x64xf32>
    %251 = arith.mulf %250, %247 : vector<48x64xf32>
    %252 = arith.mulf %251, %247 : vector<48x64xf32>
    %253 = arith.mulf %252, %247 : vector<48x64xf32>
    %254 = arith.addf %247, %253 : vector<48x64xf32>
    %cst_113 = arith.constant 0.797884583 : f32
    %255 = vector.broadcast %cst_113 : f32 to vector<48x64xf32>
    %256 = arith.mulf %255, %254 : vector<48x64xf32>
    %257 = math.tanh %256 : vector<48x64xf32>
    %cst_114 = arith.constant 1.000000e+00 : f32
    %258 = vector.broadcast %cst_114 : f32 to vector<48x64xf32>
    %259 = arith.addf %258, %257 : vector<48x64xf32>
    %260 = arith.mulf %249, %259 : vector<48x64xf32>
    %261 = arith.truncf %260 : vector<48x64xf32> to vector<48x64xbf16>
    %c1_115 = arith.constant 1 : index
    %c0_116 = arith.constant 0 : index
    %c0_117 = arith.constant 0 : index
    %262 = vector.load %arg14[%c1_115, %c0_116, %c0_117] : memref<2x64x32xbf16, #tpu.memory_space<vmem>>, vector<1x64x32xbf16>
    %263 = vector.shape_cast %262 : vector<1x64x32xbf16> to vector<64x32xbf16>
    %cst_118 = arith.constant dense<0.000000e+00> : vector<48x32xf32>
    %264 = tpu.matmul %261, %263, %cst_118 {dimension_numbers = #tpu.dot_dimension_numbers<[1], [0], [0], [1], [0, 0, 1, 1], [], []>} : vector<48x64xbf16>, vector<64x32xbf16>, vector<48x32xf32> -> vector<48x32xf32>
    %c1_119 = arith.constant 1 : index
    %c0_120 = arith.constant 0 : index
    %c0_121 = arith.constant 0 : index
    %265 = vector.load %arg15[%c1_119, %c0_120, %c0_121] : memref<2x1x32xf32, #tpu.memory_space<vmem>>, vector<1x1x32xf32>
    %266 = vector.shape_cast %265 : vector<1x1x32xf32> to vector<1x32xf32>
    %267 = vector.broadcast %266 : vector<1x32xf32> to vector<48x32xf32>
    %268 = arith.addf %264, %267 : vector<48x32xf32>
    %269 = arith.addf %215, %268 : vector<48x32xf32>
    %270 = vector.extract_strided_slice %269 {offsets = [16, 0], sizes = [1, 32], strides = [1, 1]} : vector<48x32xf32> to vector<1x32xf32>
    %271 = vector.extract_strided_slice %269 {offsets = [40, 0], sizes = [1, 32], strides = [1, 1]} : vector<48x32xf32> to vector<1x32xf32>
    %272 = tpu.concatenate %270, %271 in 0 : vector<1x32xf32>, vector<1x32xf32> -> vector<2x32xf32>
    %c0_122 = arith.constant 0 : index
    %c0_123 = arith.constant 0 : index
    %273 = vector.load %arg16[%c0_122, %c0_123] : memref<1x32xf32, #tpu.memory_space<vmem>>, vector<1x32xf32>
    %c0_124 = arith.constant 0 : index
    %c0_125 = arith.constant 0 : index
    %274 = vector.load %arg17[%c0_124, %c0_125] : memref<1x32xf32, #tpu.memory_space<vmem>>, vector<1x32xf32>
    %cst_126 = arith.constant dense<0.000000e+00> : vector<2xf32>
    %275 = vector.multi_reduction <add>, %272, %cst_126 [1] : vector<2x32xf32> to vector<2xf32>
    %276 = vector.shape_cast %275 : vector<2xf32> to vector<2x1xf32>
    %cst_127 = arith.constant 3.200000e+01 : f32
    %277 = vector.broadcast %cst_127 : f32 to vector<2x1xf32>
    %278 = arith.divf %276, %277 : vector<2x1xf32>
    %279 = vector.broadcast %278 : vector<2x1xf32> to vector<2x32xf32>
    %280 = arith.subf %272, %279 : vector<2x32xf32>
    %281 = arith.mulf %280, %280 : vector<2x32xf32>
    %cst_128 = arith.constant dense<0.000000e+00> : vector<2xf32>
    %282 = vector.multi_reduction <add>, %281, %cst_128 [1] : vector<2x32xf32> to vector<2xf32>
    %283 = vector.shape_cast %282 : vector<2xf32> to vector<2x1xf32>
    %cst_129 = arith.constant 3.200000e+01 : f32
    %284 = vector.broadcast %cst_129 : f32 to vector<2x1xf32>
    %285 = arith.divf %283, %284 : vector<2x1xf32>
    %cst_130 = arith.constant 9.99999997E-7 : f32
    %286 = vector.broadcast %cst_130 : f32 to vector<2x1xf32>
    %287 = arith.addf %285, %286 : vector<2x1xf32>
    %288 = math.rsqrt %287 : vector<2x1xf32>
    %289 = vector.broadcast %288 : vector<2x1xf32> to vector<2x32xf32>
    %290 = arith.mulf %280, %289 : vector<2x32xf32>
    %291 = vector.broadcast %273 : vector<1x32xf32> to vector<2x32xf32>
    %292 = arith.mulf %290, %291 : vector<2x32xf32>
    %293 = vector.broadcast %274 : vector<1x32xf32> to vector<2x32xf32>
    %294 = arith.addf %292, %293 : vector<2x32xf32>
    %c0_131 = arith.constant 0 : index
    %c0_132 = arith.constant 0 : index
    %295 = vector.load %arg18[%c0_131, %c0_132] : memref<2x32xf32, #tpu.memory_space<vmem>>, vector<2x32xf32>
    tpu.vector_store %arg18[%c0_131, %c0_132], %294 {strides = array<i32>} : memref<2x32xf32, #tpu.memory_space<vmem>>, vector<2x32xf32>,
    return
  }
}

</mosaic_0001>

<bundles_post_ra>
// kernel: _lambda_.1
= control target key start
LH: loop header
LB: loop body
LE: loop exit
PB: predicated region body
PF: predicated region fallthrough
CT: control target
= control target key end

     0   :  { %s6999_s0 = inlined_call_operand.vmem [shape: bf16[48,64], index: 0, kind: input, shape index: {}]   ;;  %s7000_s1 = inlined_call_operand.vmem [shape: bf16[64,32], index: 1, kind: input, shape index: {}]   ;;  %s7001_s2 = inlined_call_operand.vmem [shape: f32[48,32], index: 2, kind: input, shape index: {}]   ;;  %s7002_s3 = inlined_call_operand.vmem [shape: f32[192,192], index: 3, kind: input, shape index: {}]   ;;  %s7003_s4 = inlined_call_operand.vmem [shape: f32[2,1,32], index: 4, kind: input, shape index: {}, may-alias: {4,10}]   ;;  %s7004_s5 = inlined_call_operand.vmem [shape: f32[2,1,32], index: 5, kind: input, shape index: {}, may-alias: {5,9,11,15}]   ;;  %s7005_s6 = inlined_call_operand.vmem [shape: bf16[2,32,96], index: 6, kind: input, shape index: {}]   ;;  %s7006_s7 = inlined_call_operand.vmem [shape: f32[2,1,96], index: 7, kind: input, shape index: {}]   ;;  %s7007_s8 = inlined_call_operand.vmem [shape: bf16[2,32,32], index: 8, kind: input, shape index: {}]   ;;  %s7008_s9 = inlined_call_operand.vmem [shape: f32[2,1,32], index: 9, kind: input, shape index: {}, may-alias: {5,9,11,15}]   ;;  %s7009_s10 = inlined_call_operand.vmem [shape: f32[2,1,32], index: 10, kind: input, shape index: {}, may-alias: {4,10}]   ;;  %s7010_s11 = inlined_call_operand.vmem [shape: f32[2,1,32], index: 11, kind: input, shape index: {}, may-alias: {5,9,11,15}]   ;;  %s7011_s12 = inlined_call_operand.vmem [shape: bf16[2,32,64], index: 12, kind: input, shape index: {}]   ;;  %s7012_s13 = inlined_call_operand.vmem [shape: f32[2,1,64], index: 13, kind: input, shape index: {}]   ;;  %s7013_s14 = inlined_call_operand.vmem [shape: bf16[2,64,32], index: 14, kind: input, shape index: {}]   ;;  %s7014_s15 = inlined_call_operand.vmem [shape: f32[2,1,32], index: 15, kind: input, shape index: {}, may-alias: {5,9,11,15}]   ;;  %s7015_s16 = inlined_call_operand.vmem [shape: f32[1,32], index: 16, kind: input, shape index: {}]   ;;  %s7016_s17 = inlined_call_operand.vmem [shape: f32[1,32], index: 17, kind: input, shape index: {}]   ;;  %s7017_s18 = inlined_call_operand.hbm [shape: f32[2,32], index: 18, kind: output, shape index: {}]  }
   0x1   :  { %7047 = sst [smem:[#allocation15_spill]] %s6999_s0 }
   0x2   :  { %7048 = sst [smem:[#allocation16_spill]] %s7000_s1 }
   0x3   :  { %7049 = sst [smem:[#allocation17_spill]] %s7001_s2 }
   0x4   :  { %s7050_s29 = sld [smem:[#allocation16_spill]]  ;;  %v7021_v1 = vmov 0.0   ;;  %vm4745_vm0 = vmmov 0   ;;  %vm120_vm1 = vcmask 523264   ;;  %s7051_s23 = sld [smem:[#allocation15_spill]] }
   0x5   :  { %3927 = vmatprep.subr.bf16.mxu0 %v7021_v1  ;;  %3947 = vmatprep.subr.bf16.mxu1 %v7021_v1 }
   0x6   :  { %3935 = vmatprep.mubr.msk.bf16.mxu0 %vm4745_vm0, %v7021_v1  ;;  %3951 = vmatprep.mubr.msk.bf16.mxu1 %vm4745_vm0, %v7021_v1 }
   0xa   :  { %v4283_v0 = vld [vmem:[%s7050_s29] sm:$0xff]   ;;  %v4284_v2 = vld [vmem:[%s7050_s29 + $0x8] sm:$0xff]   ;;  %v4285_v3 = vld [vmem:[%s7050_s29 + $0x10] sm:$0xff]  }
   0xb   :  { %3928 = vmatpush3.bf16.msra.mxu0 %v4283_v0  ;;  %v4286_v4 = vld [vmem:[%s7050_s29 + $0x18] sm:$0xff]   ;;  %v4287_v5 = vld [vmem:[%s7051_s23] sm:$0xff]  }
   0xc   :  { %3929 = vmatprep.subr.bf16.mxu0 %v7021_v1 }
   0xf   :  { %3930 = vmatpush3.bf16.msra.mxu0 %v4284_v2 }
  0x10   :  { %3931 = vmatprep.subr.bf16.mxu0 %v7021_v1 }
  0x13   :  { %3932 = vmatpush3.bf16.msra.mxu0 %v4285_v3 }
  0x14   :  { %3933 = vmatprep.subr.bf16.mxu0 %v7021_v1 }
  0x17   :  { %3934 = vmatpush3.bf16.msra.mxu0 %v4286_v4 }
  0x1a   :  { %3936 = vmatmul.mubr.msk.bf16.vlgmr.msra.gmra.mrb[0].mxu0 %vm120_vm1, %v4287_v5 }
  0x1b   :  { %3939 = vmatprep.mubr.msk.bf16.mxu0 %vm4745_vm0, %v7021_v1 }
  0x1c   :  { %23 = vsyncpa [#allocation3], 0  ;;  %v4288_v6 = vld [vmem:[%s7051_s23 + $0x8] sm:$0xff]   ;;  %v4289_v7 = vld [vmem:[%s7051_s23 + $0x10] sm:$0xff]   ;;  %s7052_s30 = sld [smem:[#allocation17_spill]]  ;;  %vm243_vm2 = vcmask 261120  }
  0x1d   :  { %v4290_v5 = vld [vmem:[%s7005_s6] sm:$0xff]   ;;  %s4746_s22 = smov 120   ;;  %s4747_s2 = smov 112   ;;  %vm547_vm3 = vcmask 64512   ;;  %vm1484_vm4 = vcmask 130048   ;;  %vm1491_vm5 = vcmask 195584  }
  0x1e   :  { %3948 = vmatpush3.bf16.msra.mxu1 %v4290_v5  ;;  %s4749_s23 = smov 104   ;;  %s4750_s24 = smov 96   ;;  %vm3681_vm6 = vcmask 1040384   ;;  %vm3685_vm7 = vcmask 254976  }
  0x1f   :  { %3949 = vmatprep.subr.bf16.mxu1 %v7021_v1  ;;  %s4751_s25 = smov 64   ;;  %s4752_s26 = smov 8  }
  0x20   :  { %s4753_s27 = smov 16   ;;  %s7034_s28 = smov 24  }
  0x22   :  { %3940 = vmatmul.mubr.msk.bf16.gmra.mrb[4].mxu0 %vm120_vm1, %v4288_v6  ;;  %v61_v8 = vld [vmem:[%s7052_s30] sm:$0xff]  ;;  %v62_v10 = vld [vmem:[%s7052_s30 + $0x8] sm:$0xff]  ;;  %v63_v17 = vld [vmem:[%s7052_s30 + $0x10] sm:$0xff] }
  0x23   :  { %3943 = vmatprep.mubr.msk.bf16.mxu0 %vm4745_vm0, %v7021_v1  ;;  %v64_v20 = vld [vmem:[%s7052_s30 + $0x18] sm:$0xff]  ;;  %v65_v27 = vld [vmem:[%s7052_s30 + $0x20] sm:$0xff]  ;;  %v66_v30 = vld [vmem:[%s7052_s30 + $0x28] sm:$0xff] }
  0x24   :  { %v4291_v6 = vld [vmem:[%s7005_s6 + $0x8] sm:$0xff]  }
  0x25   :  { %3950 = vmatpush3.bf16.msra.mxu1 %v4291_v6 }
  0x2a   :  { %3944 = vmatmul.mubr.msk.bf16.gmra.mrb[8].mxu0 %vm120_vm1, %v4289_v7 }
  0xed   :  { %v164_v9 = vpop.f32.mrb[0].mxu0 }
  0xee   :  { %v4894_v11 = vadd.f32 %v164_v9, %v61_v8  ;;  %v3937_v12 = vpop.f32.mrb[1].mxu0 }
  0xef   :  { %v167_v13 = vpop.f32.mrb[2].mxu0 }
  0xf0   :  { %7053 = vst [vmem:[#allocation5_spill] sm:$0xff] %v4894_v11  ;;  %v4896_v14 = vadd.f32 %v167_v13, %v62_v10  ;;  %v3938_v15 = vpop.f32.mrb[3].mxu0  ;;  %v244_v16 = vsel %vm243_vm2, %v4894_v11, 0.0 }
  0xf1   :  { %245 = vadd.xlane.f32.xlu0 %v244_v16 }
  0xf2   :  { %7054 = vst [vmem:[#allocation6_spill] sm:$0xff] %v4896_v14  ;;  %v247_v18 = vsel %vm243_vm2, %v4896_v14, 0.0 }
  0xf5   :  { %v172_v19 = vpop.f32.mrb[4].mxu0  ;;  %248 = vadd.xlane.f32.xlu0 %v247_v18 }
  0xf6   :  { %v4908_v21 = vadd.f32 %v172_v19, %v63_v17  ;;  %v3941_v22 = vpop.f32.mrb[5].mxu0 }
  0xf7   :  { %v175_v23 = vpop.f32.mrb[6].mxu0 }
  0xf8   :  { %7055 = vst [vmem:[#allocation7_spill] sm:$0xff] %v4908_v21  ;;  %v4910_v24 = vadd.f32 %v175_v23, %v64_v20  ;;  %v3942_v25 = vpop.f32.mrb[7].mxu0  ;;  %v250_v26 = vsel %vm243_vm2, %v4908_v21, 0.0 }
  0xf9   :  { %251 = vadd.xlane.f32.xlu1 %v250_v26 }
  0xfa   :  { %7056 = vst [vmem:[#allocation8_spill] sm:$0xff] %v4910_v24  ;;  %v253_v28 = vsel %vm243_vm2, %v4910_v24, 0.0 }
  0xfd   :  { %v180_v29 = vpop.f32.mrb[8].mxu0  ;;  %254 = vadd.xlane.f32.xlu1 %v253_v28 }
  0xfe   :  { %v4922_v31 = vadd.f32 %v180_v29, %v65_v27  ;;  %v3945_v32 = vpop.f32.mrb[9].mxu0  ;;  %v3738_v27 = vld [vmem:[%s7003_s4] ss:$0 sm:$0xff] }
  0xff   :  { %v183_v33 = vpop.f32.mrb[10].mxu0 }
 0x100   :  { %7057 = vst [vmem:[#allocation9_spill] sm:$0xff] %v4922_v31  ;;  %v4924_v34 = vadd.f32 %v183_v33, %v66_v30  ;;  %v3946_v35 = vpop.f32.mrb[11].mxu0  ;;  %v256_v36 = vsel %vm243_vm2, %v4922_v31, 0.0 }
 0x101   :  { %257 = vadd.xlane.f32.xlu0 %v256_v36 }
 0x102   :  { %7058 = vst [vmem:[#allocation10_spill] sm:$0xff] %v4924_v34  ;;  %v259_v37 = vsel %vm243_vm2, %v4924_v34, 0.0 }
 0x103   :  { %260 = vadd.xlane.f32.xlu1 %v259_v37  ;;  %v3739_v37 = vld [vmem:[%s7004_s5] ss:$0 sm:$0xff] }
 0x17e   :  { %v246_v38 = vpop.xlane.xlu0 %245 }
 0x17f   :  { %v263_v39 = vmul.f32 0.03125, %v246_v38 }
 0x181   :  { %v269_v40 = vsub.f32 %v4894_v11, %v263_v39 }
 0x182   :  { %v249_v41 = vpop.xlane.xlu0 %248 }
 0x183   :  { %v264_v42 = vmul.f32 0.03125, %v249_v41  ;;  %v275_v43 = vmul.f32 %v269_v40, %v269_v40 }
 0x185   :  { %v270_v44 = vsub.f32 %v4896_v14, %v264_v42  ;;  %v281_v45 = vsel %vm243_vm2, %v275_v43, 0.0 }
 0x186   :  { %v252_v46 = vpop.xlane.xlu1 %251  ;;  %282 = vadd.xlane.f32.xlu0 %v281_v45 }
 0x187   :  { %v265_v47 = vmul.f32 0.03125, %v252_v46  ;;  %v276_v48 = vmul.f32 %v270_v44, %v270_v44 }
 0x189   :  { %v4934_v49 = vsub.f32 %v4908_v21, %v265_v47  ;;  %v284_v50 = vsel %vm243_vm2, %v276_v48, 0.0 }
 0x18a   :  { %v255_v51 = vpop.xlane.xlu1 %254  ;;  %285 = vadd.xlane.f32.xlu1 %v284_v50 }
 0x18b   :  { %v266_v52 = vmul.f32 0.03125, %v255_v51  ;;  %v277_v53 = vmul.f32 %v4934_v49, %v4934_v49 }
 0x18d   :  { %v272_v54 = vsub.f32 %v4910_v24, %v266_v52  ;;  %v287_v55 = vsel %vm243_vm2, %v277_v53, 0.0 }
 0x18e   :  { %288 = vadd.xlane.f32.xlu0 %v287_v55  ;;  %v258_v56 = vpop.xlane.xlu0 %257 }
 0x18f   :  { %v267_v57 = vmul.f32 0.03125, %v258_v56  ;;  %v278_v58 = vmul.f32 %v272_v54, %v272_v54 }
 0x190   :  { %v261_v59 = vpop.xlane.xlu1 %260 }
 0x191   :  { %v273_v60 = vsub.f32 %v4922_v31, %v267_v57  ;;  %v268_v61 = vmul.f32 0.03125, %v261_v59  ;;  %v290_v62 = vsel %vm243_vm2, %v278_v58, 0.0 }
 0x192   :  { %291 = vadd.xlane.f32.xlu1 %v290_v62 }
 0x193   :  { %v274_v63 = vsub.f32 %v4924_v34, %v268_v61  ;;  %v279_v0 = vmul.f32 %v273_v60, %v273_v60  ;;  %v3740_v61 = vld [vmem:[%s7006_s7] ss:$0 sm:$0xff] }
 0x195   :  { %v293_v2 = vsel %vm243_vm2, %v279_v0, 0.0  ;;  %v280_v3 = vmul.f32 %v274_v63, %v274_v63 }
 0x196   :  { %294 = vadd.xlane.f32.xlu0 %v293_v2 }
 0x197   :  { %v296_v4 = vsel %vm243_vm2, %v280_v3, 0.0 }
 0x198   :  { %297 = vadd.xlane.f32.xlu1 %v296_v4 }
 0x213   :  { %v283_v7 = vpop.xlane.xlu0 %282 }
 0x214   :  { %v299_v8 = vmul.f32 0.03125, %v283_v7 }
 0x216   :  { %v305_v9 = vadd.f32 1e-06, %v299_v8 }
 0x217   :  { %v286_v10 = vpop.xlane.xlu1 %285 }
 0x218   :  { %4310 = vrsqrt.f32 %v305_v9  ;;  %v300_v12 = vmul.f32 0.03125, %v286_v10 }
 0x21a   :  { %v306_v13 = vadd.f32 1e-06, %v300_v12 }
 0x21b   :  { %v289_v15 = vpop.xlane.xlu0 %288 }
 0x21c   :  { %4312 = vrsqrt.f32 %v306_v13  ;;  %v301_v16 = vmul.f32 0.03125, %v289_v15 }
 0x21e   :  { %v307_v17 = vadd.f32 1e-06, %v301_v16 }
 0x21f   :  { %v292_v18 = vpop.xlane.xlu1 %291 }
 0x220   :  { %4314 = vrsqrt.f32 %v307_v17  ;;  %v302_v19 = vmul.f32 0.03125, %v292_v18 }
 0x222   :  { %v4311_v20 = vpop.eup %4310  ;;  %v308_v22 = vadd.f32 1e-06, %v302_v19  ;;  %v7023_v19 = vmov 0  }
 0x223   :  { %v295_v23 = vpop.xlane.xlu0 %294  ;;  %v317_v25 = vmul.f32 %v4311_v20, %v269_v40  ;;  %620 = vmatprep.subr.bf16.mxu1 %v7023_v19  ;;  %1277 = vmatprep.subr.bf16.mxu0 %v7023_v19 }
 0x224   :  { %4316 = vrsqrt.f32 %v308_v22  ;;  %v303_v26 = vmul.f32 0.03125, %v295_v23 }
 0x225   :  { %v298_v28 = vpop.xlane.xlu1 %297  ;;  %v329_v35 = vmul.f32 %v3738_v27, %v317_v25 }
 0x226   :  { %v4313_v29 = vpop.eup %4312  ;;  %v309_v30 = vadd.f32 1e-06, %v303_v26  ;;  %v304_v32 = vmul.f32 0.03125, %v298_v28 }
 0x227   :  { %v318_v33 = vmul.f32 %v4313_v29, %v270_v44  ;;  %v341_v40 = vadd.f32 %v3739_v37, %v329_v35 }
 0x228   :  { %4318 = vrsqrt.f32 %v309_v30  ;;  %v310_v36 = vadd.f32 1e-06, %v304_v32 }
 0x229   :  { %v330_v38 = vmul.f32 %v3738_v27, %v318_v33 }
 0x22a   :  { %v4315_v39 = vpop.eup %4314  ;;  %4320 = vrsqrt.f32 %v310_v36 }
 0x22b   :  { %v342_v41 = vadd.f32 %v3739_v37, %v330_v38  ;;  %v319_v42 = vmul.f32 %v4315_v39, %v4934_v49 }
 0x22d   :  { %v347_v43 = vpack.c.bf16 %v342_v41, %v341_v40  ;;  %v331_v44 = vmul.f32 %v3738_v27, %v319_v42 }
 0x22e   :  { %v4317_v45 = vpop.eup %4316 }
 0x22f   :  { %3952 = vmatmul.mubr.msk.bf16.vlgmr.msra.gmra.mrb[0].mxu1 %vm243_vm2, %v347_v43  ;;  %v320_v46 = vmul.f32 %v4317_v45, %v272_v54  ;;  %v343_v50 = vadd.f32 %v3739_v37, %v331_v44 }
 0x230   :  { %3955 = vmatprep.mubr.msk.bf16.mxu1 %vm4745_vm0, %v7021_v1 }
 0x231   :  { %v332_v47 = vmul.f32 %v3738_v27, %v320_v46 }
 0x232   :  { %v4319_v48 = vpop.eup %4318 }
 0x233   :  { %v344_v51 = vadd.f32 %v3739_v37, %v332_v47  ;;  %v321_v52 = vmul.f32 %v4319_v48, %v273_v60 }
 0x234   :  { %v4321_v53 = vpop.eup %4320 }
 0x235   :  { %v348_v55 = vpack.c.bf16 %v344_v51, %v343_v50  ;;  %v322_v56 = vmul.f32 %v4321_v53, %v274_v63  ;;  %v333_v49 = vmul.f32 %v3738_v27, %v321_v52 }
 0x237   :  { %3956 = vmatmul.mubr.msk.bf16.gmra.mrb[4].mxu1 %vm243_vm2, %v348_v55  ;;  %v334_v57 = vmul.f32 %v3738_v27, %v322_v56  ;;  %v345_v58 = vadd.f32 %v3739_v37, %v333_v49 }
 0x238   :  { %3959 = vmatprep.mubr.msk.bf16.mxu1 %vm4745_vm0, %v7021_v1 }
 0x239   :  { %v346_v54 = vadd.f32 %v3739_v37, %v334_v57 }
 0x23b   :  { %v349_v59 = vpack.c.bf16 %v346_v54, %v345_v58 }
 0x23f   :  { %3960 = vmatmul.mubr.msk.bf16.gmra.mrb[8].mxu1 %vm243_vm2, %v349_v59 }
 0x240   :  { %652 = vmatprep.mubr.bf16.mxu1 %v7023_v19 }
 0x302   :  { %v416_v60 = vpop.f32.mrb[0].mxu1 }
 0x303   :  { %v3953_v62 = vpop.f32.mrb[1].mxu1  ;;  %v417_v63 = vadd.f32 %v3740_v61, %v416_v60 }
 0x304   :  { %v419_v0 = vpop.f32.mrb[2].mxu1 }
 0x305   :  { %v420_v2 = vadd.f32 %v3740_v61, %v419_v0  ;;  %v3954_v3 = vpop.f32.mrb[3].mxu1 }
 0x307   :  { %v4103_v4 = vpack.i.bf16 %v420_v2, %v417_v63  ;;  %v4970_v5 = vpack.c.bf16 %v420_v2, %v417_v63 }
 0x309   :  { %4104 = vrot.lane.b32.xlu0 %v4103_v4, %s4746_s22 }
 0x30a   :  { %v424_v6 = vpop.f32.mrb[4].mxu1 }
 0x30b   :  { %v3957_v7 = vpop.f32.mrb[5].mxu1  ;;  %v425_v9 = vadd.f32 %v3740_v61, %v424_v6 }
 0x30c   :  { %v427_v8 = vpop.f32.mrb[6].mxu1 }
 0x30d   :  { %v428_v10 = vadd.f32 %v3740_v61, %v427_v8  ;;  %v3958_v12 = vpop.f32.mrb[7].mxu1 }
 0x30f   :  { %v4123_v13 = vpack.i.bf16 %v428_v10, %v425_v9  ;;  %v4973_v15 = vpack.c.bf16 %v428_v10, %v425_v9 }
 0x311   :  { %4124 = vrot.lane.b32.xlu0 %v4123_v13, %s4747_s2  ;;  %4109 = vrot.lane.b32.xlu1 %v4123_v13, %s4746_s22 }
 0x312   :  { %v432_v16 = vpop.f32.mrb[8].mxu1 }
 0x313   :  { %v3961_v17 = vpop.f32.mrb[9].mxu1  ;;  %v433_v20 = vadd.f32 %v3740_v61, %v432_v16 }
 0x314   :  { %v435_v18 = vpop.f32.mrb[10].mxu1 }
 0x315   :  { %v436_v22 = vadd.f32 %v3740_v61, %v435_v18  ;;  %v3962_v23 = vpop.f32.mrb[11].mxu1 }
 0x317   :  { %v4128_v25 = vpack.i.bf16 %v436_v22, %v433_v20  ;;  %v4980_v26 = vpack.c.bf16 %v436_v22, %v433_v20 }
 0x319   :  { %4129 = vrot.lane.b32.xlu0 %v4128_v25, %s4747_s2  ;;  %4114 = vrot.lane.b32.xlu1 %v4128_v25, %s4746_s22 }
 0x31d   :  { %4134 = vrot.lane.b32.xlu0 %v4103_v4, %s4749_s23  ;;  %4119 = vrot.lane.b32.xlu1 %v4103_v4, %s4747_s2 }
 0x321   :  { %4139 = vrot.lane.b32.xlu0 %v4123_v13, %s4749_s23  ;;  %523 = vrot.lane.b32.xlu1 %v4970_v5, %s4750_s24 }
 0x325   :  { %4144 = vrot.lane.b32.xlu0 %v4128_v25, %s4749_s23  ;;  %525 = vrot.lane.b32.xlu1 %v4973_v15, %s4750_s24 }
 0x329   :  { %527 = vrot.lane.b32.xlu1 %v4980_v26, %s4750_s24 }
 0x37b   :  { %v4105_v27 = vpop.permute.xlu0 %4104 }
 0x37c   :  { %v4107_v28 = vunpack.i.h.bf16 %v4105_v27  ;;  %v4106_v29 = vunpack.i.l.bf16 %v4105_v27 }
 0x37e   :  { %v4994_v30 = vpack.c.bf16 %v4107_v28, %v4106_v29 }
 0x380   :  { %529 = vrot.lane.b32.xlu1 %v4994_v30, %s4750_s24 }
 0x383   :  { %v4110_v32 = vpop.permute.xlu1 %4109  ;;  %v4125_v37 = vpop.permute.xlu0 %4124 }
 0x384   :  { %v4112_v33 = vunpack.i.h.bf16 %v4110_v32  ;;  %v4111_v35 = vunpack.i.l.bf16 %v4110_v32  ;;  %v4127_v42 = vunpack.i.h.bf16 %v4125_v37  ;;  %v4126_v43 = vunpack.i.l.bf16 %v4125_v37 }
 0x386   :  { %v4998_v36 = vpack.c.bf16 %v4112_v33, %v4111_v35  ;;  %v5006_v51 = vpack.c.bf16 %v4127_v42, %v4126_v43 }
 0x388   :  { %531 = vrot.lane.b32.xlu1 %v4998_v36, %s4750_s24 }
 0x38b   :  { %v4115_v38 = vpop.permute.xlu1 %4114  ;;  %v4130_v39 = vpop.permute.xlu0 %4129 }
 0x38c   :  { %v4117_v40 = vunpack.i.h.bf16 %v4115_v38  ;;  %v4116_v41 = vunpack.i.l.bf16 %v4115_v38  ;;  %v4132_v50 = vunpack.i.h.bf16 %v4130_v39  ;;  %v4131_v52 = vunpack.i.l.bf16 %v4130_v39 }
 0x38e   :  { %v5002_v45 = vpack.c.bf16 %v4117_v40, %v4116_v41  ;;  %v5017_v60 = vpack.c.bf16 %v4132_v50, %v4131_v52 }
 0x38f   :  { %v4120_v46 = vpop.permute.xlu1 %4119  ;;  %v4135_v44 = vpop.permute.xlu0 %4134 }
 0x390   :  { %v4122_v47 = vunpack.i.h.bf16 %v4120_v46  ;;  %v4121_v48 = vunpack.i.l.bf16 %v4120_v46  ;;  %533 = vrot.lane.b32.xlu0 %v5002_v45, %s4750_s24  ;;  %v4137_v53 = vunpack.i.h.bf16 %v4135_v44  ;;  %v4136_v55 = vunpack.i.l.bf16 %v4135_v44 }
 0x392   :  { %v5008_v56 = vpack.c.bf16 %v4122_v47, %v4121_v48  ;;  %v5015_v61 = vpack.c.bf16 %v4137_v53, %v4136_v55  ;;  %v195_v48 = vld [vmem:[%s7002_s3 + $0x10] sm:$0xff] }
 0x393   :  { %v524_v49 = vpop.permute.xlu1 %523  ;;  %v4140_v57 = vpop.permute.xlu0 %4139 }
 0x394   :  { %v585_v54 = vsel %vm547_vm3, %v524_v49, 0  ;;  %537 = vrot.lane.b32.xlu0 %v5006_v51, %s4750_s24  ;;  %535 = vrot.lane.b32.xlu1 %v5008_v56, %s4750_s24  ;;  %v4142_v58 = vunpack.i.h.bf16 %v4140_v57  ;;  %v4141_v59 = vunpack.i.l.bf16 %v4140_v57 }
 0x395   :  { %621 = vmatpush1.bf16.xpose.msra.mxu1 %v585_v54  ;;  %v198_v54 = vld [vmem:[%s7002_s3 + $0x28] sm:$0xff] }
 0x396   :  { %622 = vmatprep.subr.bf16.mxu1 %v7023_v19  ;;  %v5026_v4 = vpack.c.bf16 %v4142_v58, %v4141_v59  ;;  %v197_v59 = vld [vmem:[%s7002_s3 + $0x20] sm:$0xff] }
 0x397   :  { %v4145_v62 = vpop.permute.xlu0 %4144  ;;  %v526_v2 = vpop.permute.xlu1 %525 }
 0x398   :  { %v4147_v0 = vunpack.i.h.bf16 %v4145_v62  ;;  %v4146_v63 = vunpack.i.l.bf16 %v4145_v62  ;;  %541 = vrot.lane.b32.xlu0 %v5015_v61, %s4750_s24  ;;  %539 = vrot.lane.b32.xlu1 %v5017_v60, %s4750_s24  ;;  %v588_v6 = vsel %vm547_vm3, %v526_v2, 0 }
 0x39a   :  { %v5024_v3 = vpack.c.bf16 %v4147_v0, %v4146_v63  ;;  %v200_v0 = vld [vmem:[%s7002_s3 + $0x38] sm:$0xff] }
 0x39b   :  { %v528_v7 = vpop.permute.xlu1 %527 }
 0x39c   :  { %545 = vrot.lane.b32.xlu0 %v5024_v3, %s4750_s24  ;;  %543 = vrot.lane.b32.xlu1 %v5026_v4, %s4750_s24  ;;  %v591_v8 = vsel %vm547_vm3, %v528_v7, 0 }
 0x39d   :  { %623 = vmatpush1.bf16.xpose.msra.mxu1 %v588_v6 }
 0x39e   :  { %624 = vmatprep.subr.bf16.mxu1 %v7023_v19 }
 0x3a0   :  { %1207 = vrot.lane.b32.xlu0 %v4973_v15, %s4751_s25  ;;  %1205 = vrot.lane.b32.xlu1 %v4970_v5, %s4751_s25 }
 0x3a4   :  { %1211 = vrot.lane.b32.xlu0 %v4994_v30, %s4751_s25  ;;  %1209 = vrot.lane.b32.xlu1 %v4980_v26, %s4751_s25 }
 0x3a5   :  { %625 = vmatpush1.bf16.xpose.msra.mxu1 %v591_v8  ;;  %v199_v8 = vld [vmem:[%s7002_s3 + $0x30] sm:$0xff] }
 0x3a6   :  { %626 = vmatprep.subr.bf16.mxu1 %v7023_v19 }
 0x3a8   :  { %1215 = vrot.lane.b32.xlu0 %v5002_v45, %s4751_s25  ;;  %1213 = vrot.lane.b32.xlu1 %v4998_v36, %s4751_s25 }
 0x3ac   :  { %1221 = vrot.lane.b32.xlu0 %v5017_v60, %s4751_s25  ;;  %1217 = vrot.lane.b32.xlu1 %v5008_v56, %s4751_s25 }
 0x3b0   :  { %1219 = vrot.lane.b32.xlu1 %v5006_v51, %s4751_s25 }
 0x3f2   :  { %v530_v9 = vpop.permute.xlu1 %529 }
 0x3f3   :  { %v594_v10 = vsel %vm547_vm3, %v530_v9, 0 }
 0x3f4   :  { %627 = vmatpush1.bf16.xpose.msra.mxu1 %v594_v10 }
 0x3f5   :  { %628 = vmatprep.subr.bf16.mxu1 %v7023_v19 }
 0x3fa   :  { %v532_v12 = vpop.permute.xlu1 %531 }
 0x3fb   :  { %v597_v13 = vsel %vm547_vm3, %v532_v12, 0 }
 0x3fc   :  { %629 = vmatpush1.bf16.xpose.msra.mxu1 %v597_v13 }
 0x3fd   :  { %630 = vmatprep.subr.bf16.mxu1 %v7023_v19 }
 0x402   :  { %v534_v16 = vpop.permute.xlu0 %533 }
 0x403   :  { %v600_v17 = vsel %vm547_vm3, %v534_v16, 0 }
 0x404   :  { %631 = vmatpush1.bf16.xpose.msra.mxu1 %v600_v17  ;;  %v202_v17 = vld [vmem:[%s7002_s3 + $0x48] sm:$0xff] }
 0x405   :  { %632 = vmatprep.subr.bf16.mxu1 %v7023_v19 }
 0x406   :  { %v538_v18 = vpop.permute.xlu0 %537  ;;  %v536_v20 = vpop.permute.xlu1 %535 }
 0x407   :  { %v603_v25 = vsel %vm547_vm3, %v536_v20, 0  ;;  %v606_v32 = vsel %vm547_vm3, %v538_v18, 0  ;;  %v201_v18 = vld [vmem:[%s7002_s3 + $0x40] sm:$0xff] }
 0x40a   :  { %v542_v22 = vpop.permute.xlu0 %541  ;;  %v540_v23 = vpop.permute.xlu1 %539 }
 0x40b   :  { %v609_v37 = vsel %vm547_vm3, %v540_v23, 0  ;;  %v612_v40 = vsel %vm547_vm3, %v542_v22, 0  ;;  %v204_v23 = vld [vmem:[%s7002_s3 + $0x58] sm:$0xff] }
 0x40c   :  { %633 = vmatpush1.bf16.xpose.msra.mxu1 %v603_v25 }
 0x40d   :  { %634 = vmatprep.subr.bf16.mxu1 %v7023_v19 }
 0x40e   :  { %v544_v27 = vpop.permute.xlu1 %543  ;;  %v546_v28 = vpop.permute.xlu0 %545 }
 0x40f   :  { %v615_v43 = vsel %vm547_vm3, %v544_v27, 0  ;;  %v618_v47 = vsel %vm547_vm3, %v546_v28, 0  ;;  %v203_v28 = vld [vmem:[%s7002_s3 + $0x50] sm:$0xff] }
 0x412   :  { %v1206_v29 = vpop.permute.xlu1 %1205  ;;  %v1208_v33 = vpop.permute.xlu0 %1207 }
 0x413   :  { %1278 = vmatpush1.bf16.msra.mxu0 %v1206_v29 }
 0x414   :  { %635 = vmatpush1.bf16.xpose.msra.mxu1 %v606_v32  ;;  %1279 = vmatprep.subr.bf16.mxu0 %v7023_v19 }
 0x415   :  { %636 = vmatprep.subr.bf16.mxu1 %v7023_v19 }
 0x416   :  { %v1210_v35 = vpop.permute.xlu1 %1209  ;;  %v1212_v38 = vpop.permute.xlu0 %1211 }
 0x417   :  { %1280 = vmatpush1.bf16.msra.mxu0 %v1208_v33 }
 0x418   :  { %1281 = vmatprep.subr.bf16.mxu0 %v7023_v19 }
 0x41a   :  { %v1214_v39 = vpop.permute.xlu1 %1213  ;;  %v1216_v41 = vpop.permute.xlu0 %1215 }
 0x41b   :  { %1282 = vmatpush1.bf16.msra.mxu0 %v1210_v35 }
 0x41c   :  { %637 = vmatpush1.bf16.xpose.msra.mxu1 %v609_v37  ;;  %1283 = vmatprep.subr.bf16.mxu0 %v7023_v19 }
 0x41d   :  { %638 = vmatprep.subr.bf16.mxu1 %v7023_v19 }
 0x41e   :  { %v1218_v42 = vpop.permute.xlu1 %1217  ;;  %v1222_v44 = vpop.permute.xlu0 %1221 }
 0x41f   :  { %1284 = vmatpush1.bf16.msra.mxu0 %v1212_v38 }
 0x420   :  { %1285 = vmatprep.subr.bf16.mxu0 %v7023_v19 }
 0x422   :  { %v1220_v46 = vpop.permute.xlu1 %1219 }
 0x423   :  { %1286 = vmatpush1.bf16.msra.mxu0 %v1214_v39 }
 0x424   :  { %639 = vmatpush1.bf16.xpose.msra.mxu1 %v612_v40  ;;  %1287 = vmatprep.subr.bf16.mxu0 %v7023_v19 }
 0x425   :  { %640 = vmatprep.subr.bf16.mxu1 %v7023_v19 }
 0x427   :  { %1288 = vmatpush1.bf16.msra.mxu0 %v1216_v41  ;;  %v206_v41 = vld [vmem:[%s7002_s3 + $0x68] sm:$0xff] }
 0x428   :  { %1289 = vmatprep.subr.bf16.mxu0 %v7023_v19 }
 0x42b   :  { %1290 = vmatpush1.bf16.msra.mxu0 %v1218_v42 }
 0x42c   :  { %641 = vmatpush1.bf16.xpose.msra.mxu1 %v615_v43  ;;  %1291 = vmatprep.subr.bf16.mxu0 %v7023_v19  ;;  %v205_v43 = vld [vmem:[%s7002_s3 + $0x60] sm:$0xff] }
 0x42d   :  { %642 = vmatprep.subr.bf16.mxu1 %v7023_v19 }
 0x42f   :  { %1292 = vmatpush1.bf16.msra.mxu0 %v1220_v46 }
 0x430   :  { %1293 = vmatprep.subr.bf16.mxu0 %v7023_v19 }
 0x433   :  { %1294 = vmatpush1.bf16.msra.mxu0 %v1222_v44 }
 0x434   :  { %643 = vmatpush1.bf16.xpose.msra.mxu1 %v618_v47  ;;  %1295 = vmatprep.subr.bf16.mxu0 %v7023_v19  ;;  %v208_v47 = vld [vmem:[%s7002_s3 + $0x78] sm:$0xff] }
 0x435   :  { %3995 = vmatprep.subr.bf16.mxu1 %v7021_v1 }
 0x43b   :  { %3746 = vmatmul.mubr.msk.bf16.vlgmr.msra.gmra.mrb[12].mxu1 %vm547_vm3, %v4970_v5  ;;  %v194_v5 = vld [vmem:[%s7002_s3 + $0x8] sm:$0xff] }
 0x43c   :  { %662 = vmatprep.mubr.bf16.mxu1 %v7023_v19 }
 0x443   :  { %3747 = vmatmul.mubr.msk.bf16.gmra.mrb[16].mxu1 %vm547_vm3, %v4973_v15  ;;  %v193_v15 = vld [vmem:[%s7002_s3] sm:$0xff] }
 0x444   :  { %672 = vmatprep.mubr.bf16.mxu1 %v7023_v19 }
 0x44b   :  { %3748 = vmatmul.mubr.msk.bf16.gmra.mrb[20].mxu1 %vm547_vm3, %v4980_v26 }
 0x44c   :  { %682 = vmatprep.mubr.bf16.mxu1 %v7023_v19 }
 0x453   :  { %3749 = vmatmul.mubr.msk.bf16.gmra.mrb[24].mxu1 %vm547_vm3, %v4994_v30 }
 0x454   :  { %692 = vmatprep.mubr.bf16.mxu1 %v7023_v19 }
 0x45b   :  { %3750 = vmatmul.mubr.msk.bf16.gmra.mrb[28].mxu1 %vm547_vm3, %v4998_v36  ;;  %v196_v36 = vld [vmem:[%s7002_s3 + $0x18] sm:$0xff] }
 0x45c   :  { %702 = vmatprep.mubr.bf16.mxu1 %v7023_v19 }
 0x463   :  { %3751 = vmatmul.mubr.msk.bf16.gmra.mrb[32].mxu1 %vm547_vm3, %v5002_v45 }
 0x464   :  { %712 = vmatprep.mubr.bf16.mxu1 %v7023_v19 }
 0x46b   :  { %3752 = vmatmul.mubr.msk.bf16.gmra.mrb[36].mxu1 %vm547_vm3, %v5008_v56 }
 0x46c   :  { %722 = vmatprep.mubr.bf16.mxu1 %v7023_v19 }
 0x473   :  { %3753 = vmatmul.mubr.msk.bf16.gmra.mrb[40].mxu1 %vm547_vm3, %v5006_v51 }
 0x474   :  { %732 = vmatprep.mubr.bf16.mxu1 %v7023_v19 }
 0x47b   :  { %3754 = vmatmul.mubr.msk.bf16.gmra.mrb[44].mxu1 %vm547_vm3, %v5017_v60 }
 0x47c   :  { %742 = vmatprep.mubr.bf16.mxu1 %v7023_v19 }
 0x483   :  { %3755 = vmatmul.mubr.msk.bf16.gmra.mrb[48].mxu1 %vm547_vm3, %v5015_v61 }
 0x484   :  { %752 = vmatprep.mubr.bf16.mxu1 %v7023_v19 }
 0x48b   :  { %3756 = vmatmul.mubr.msk.bf16.gmra.mrb[52].mxu1 %vm547_vm3, %v5026_v4 }
 0x48c   :  { %762 = vmatprep.mubr.bf16.mxu1 %v7023_v19 }
 0x493   :  { %3757 = vmatmul.mubr.msk.bf16.gmra.mrb[56].mxu1 %vm547_vm3, %v5024_v3 }
 0x494   :  { %4003 = vmatprep.mubr.msk.bf16.mxu1 %vm4745_vm0, %v7021_v1 }
 0x50e   :  { %v654_v26 = vpop.f32.mrb[12].mxu1 }
 0x50f   :  { %v656_v30 = vpop.f32.mrb[13].mxu1  ;;  %v5132_v51 = vadd.f32 %v654_v26, %v193_v15  ;;  %v207_v15 = vld [vmem:[%s7002_s3 + $0x70] sm:$0xff] }
 0x510   :  { %v5127_v45 = vadd.f32 %v656_v30, %v194_v5  ;;  %v658_v50 = vpop.f32.mrb[14].mxu1 }
 0x511   :  { %v660_v52 = vpop.f32.mrb[15].mxu1  ;;  %v5138_v56 = vadd.f32 %v658_v50, %v195_v48 }
 0x512   :  { %v5134_v53 = vadd.f32 %v660_v52, %v196_v36  ;;  %v773_v55 = vsel %vm120_vm1, %v5127_v45, -inf }
 0x513   :  { %v774_v49 = vmax.f32 %v5132_v51, %v773_v55 }
 0x514   :  { %v777_v57 = vsel %vm120_vm1, %v5134_v53, -inf }
 0x515   :  { %775 = vmax.xlane.f32.xlu1 %v774_v49  ;;  %v778_v58 = vmax.f32 %v5138_v56, %v777_v57  ;;  %v210_v57 = vld [vmem:[%s7002_s3 + $0x88] sm:$0xff] }
 0x516   :  { %v664_v60 = vpop.f32.mrb[16].mxu1 }
 0x517   :  { %v666_v62 = vpop.f32.mrb[17].mxu1  ;;  %779 = vmax.xlane.f32.xlu0 %v778_v58  ;;  %v5155_v6 = vadd.f32 %v664_v60, %v197_v59  ;;  %v209_v58 = vld [vmem:[%s7002_s3 + $0x80] sm:$0xff] }
 0x518   :  { %v5153_v63 = vadd.f32 %v666_v62, %v198_v54  ;;  %v668_v2 = vpop.f32.mrb[18].mxu1  ;;  %v212_v62 = vld [vmem:[%s7002_s3 + $0x98] sm:$0xff] }
 0x519   :  { %v670_v7 = vpop.f32.mrb[19].mxu1  ;;  %v5167_v16 = vadd.f32 %v668_v2, %v199_v8  ;;  %v211_v2 = vld [vmem:[%s7002_s3 + $0x90] sm:$0xff] }
 0x51a   :  { %v5160_v9 = vadd.f32 %v670_v7, %v200_v0  ;;  %v781_v10 = vsel %vm120_vm1, %v5153_v63, -inf }
 0x51b   :  { %v782_v12 = vmax.f32 %v5155_v6, %v781_v10 }
 0x51c   :  { %v785_v13 = vsel %vm120_vm1, %v5160_v9, -inf }
 0x51d   :  { %783 = vmax.xlane.f32.xlu0 %v782_v12  ;;  %v786_v25 = vmax.f32 %v5167_v16, %v785_v13 }
 0x51e   :  { %v674_v20 = vpop.f32.mrb[20].mxu1 }
 0x51f   :  { %v676_v22 = vpop.f32.mrb[21].mxu1  ;;  %v5184_v32 = vadd.f32 %v674_v20, %v201_v18 }
 0x520   :  { %v5179_v27 = vadd.f32 %v676_v22, %v202_v17  ;;  %v678_v29 = vpop.f32.mrb[22].mxu1  ;;  %v214_v22 = vld [vmem:[%s7002_s3 + $0xa8] sm:$0xff] }
 0x521   :  { %v680_v33 = vpop.f32.mrb[23].mxu1  ;;  %787 = vmax.xlane.f32.xlu0 %v786_v25  ;;  %v5190_v38 = vadd.f32 %v678_v29, %v203_v28  ;;  %v213_v25 = vld [vmem:[%s7002_s3 + $0xa0] sm:$0xff] }
 0x522   :  { %v5186_v35 = vadd.f32 %v680_v33, %v204_v23  ;;  %v789_v37 = vsel %vm120_vm1, %v5179_v27, -inf  ;;  %v216_v33 = vld [vmem:[%s7002_s3 + $0xb8] sm:$0xff] }
 0x523   :  { %v790_v39 = vmax.f32 %v5184_v32, %v789_v37 }
 0x524   :  { %v793_v40 = vsel %vm120_vm1, %v5186_v35, -inf }
 0x525   :  { %791 = vmax.xlane.f32.xlu1 %v790_v39  ;;  %v794_v42 = vmax.f32 %v5190_v38, %v793_v40  ;;  %v215_v39 = vld [vmem:[%s7002_s3 + $0xb0] sm:$0xff] }
 0x526   :  { %v684_v46 = vpop.f32.mrb[24].mxu1 }
 0x527   :  { %v686_v44 = vpop.f32.mrb[25].mxu1  ;;  %795 = vmax.xlane.f32.xlu0 %v794_v42  ;;  %v5210_v30 = vadd.f32 %v684_v46, %v205_v43 }
 0x528   :  { %v5205_v5 = vadd.f32 %v686_v44, %v206_v41  ;;  %v688_v26 = vpop.f32.mrb[26].mxu1 }
 0x529   :  { %v690_v36 = vpop.f32.mrb[27].mxu1  ;;  %v5216_v52 = vadd.f32 %v688_v26, %v207_v15 }
 0x52a   :  { %v5212_v48 = vadd.f32 %v690_v36, %v208_v47  ;;  %v797_v50 = vsel %vm120_vm1, %v5205_v5, -inf }
 0x52b   :  { %v798_v55 = vmax.f32 %v5210_v30, %v797_v50 }
 0x52c   :  { %v801_v49 = vsel %vm120_vm1, %v5212_v48, -inf }
 0x52d   :  { %799 = vmax.xlane.f32.xlu1 %v798_v55  ;;  %v802_v54 = vmax.f32 %v5216_v52, %v801_v49  ;;  %v220_v55 = vld [vmem:[%s7002_s3 + $0xd8] sm:$0xff]  ;;  %v219_v49 = vld [vmem:[%s7002_s3 + $0xd0] sm:$0xff] }
 0x52e   :  { %v694_v59 = vpop.f32.mrb[28].mxu1 }
 0x52f   :  { %v696_v60 = vpop.f32.mrb[29].mxu1  ;;  %803 = vmax.xlane.f32.xlu0 %v802_v54  ;;  %v5236_v8 = vadd.f32 %v694_v59, %v209_v58 }
 0x530   :  { %v5231_v0 = vadd.f32 %v696_v60, %v210_v57  ;;  %v698_v7 = vpop.f32.mrb[30].mxu1 }
 0x531   :  { %v700_v10 = vpop.f32.mrb[31].mxu1  ;;  %v5242_v17 = vadd.f32 %v698_v7, %v211_v2 }
 0x532   :  { %v5238_v12 = vadd.f32 %v700_v10, %v212_v62  ;;  %v805_v13 = vsel %vm120_vm1, %v5231_v0, -inf  ;;  %v224_v10 = vld [vmem:[%s7002_s3 + $0xf8] sm:$0xff] }
 0x533   :  { %v806_v18 = vmax.f32 %v5236_v8, %v805_v13  ;;  %v223_v13 = vld [vmem:[%s7002_s3 + $0xf0] sm:$0xff] }
 0x534   :  { %v809_v20 = vsel %vm120_vm1, %v5238_v12, -inf }
 0x535   :  { %807 = vmax.xlane.f32.xlu1 %v806_v18  ;;  %v810_v23 = vmax.f32 %v5242_v17, %v809_v20 }
 0x536   :  { %v704_v28 = vpop.f32.mrb[32].mxu1 }
 0x537   :  { %v706_v29 = vpop.f32.mrb[33].mxu1  ;;  %811 = vmax.xlane.f32.xlu0 %v810_v23  ;;  %v5262_v41 = vadd.f32 %v704_v28, %v213_v25 }
 0x538   :  { %v5257_v37 = vadd.f32 %v706_v29, %v214_v22  ;;  %v708_v40 = vpop.f32.mrb[34].mxu1 }
 0x539   :  { %v710_v42 = vpop.f32.mrb[35].mxu1  ;;  %v5268_v44 = vadd.f32 %v708_v40, %v215_v39  ;;  %v228_v39 = vld [vmem:[%s7002_s3 + $0x118] sm:$0xff]  ;;  %v227_v40 = vld [vmem:[%s7002_s3 + $0x110] sm:$0xff] }
 0x53a   :  { %v5264_v43 = vadd.f32 %v710_v42, %v216_v33  ;;  %v813_v46 = vsel %vm120_vm1, %v5257_v37, -inf }
 0x53b   :  { %v814_v47 = vmax.f32 %v5262_v41, %v813_v46 }
 0x53c   :  { %v817_v15 = vsel %vm120_vm1, %v5264_v43, -inf }
 0x53d   :  { %815 = vmax.xlane.f32.xlu1 %v814_v47  ;;  %v818_v26 = vmax.f32 %v5268_v44, %v817_v15 }
 0x53e   :  { %v5274_v36 = vpop.f32.mrb[36].mxu1 }
 0x53f   :  { %v716_v50 = vpop.f32.mrb[37].mxu1  ;;  %819 = vmax.xlane.f32.xlu0 %v818_v26 }
 0x540   :  { %v718_v57 = vpop.f32.mrb[38].mxu1 }
 0x541   :  { %v720_v54 = vpop.f32.mrb[39].mxu1  ;;  %v5284_v59 = vadd.f32 %v718_v57, %v219_v49  ;;  %v232_v57 = vld [vmem:[%s7002_s3 + $0x138] sm:$0xff] }
 0x542   :  { %v5282_v58 = vadd.f32 %v720_v54, %v220_v55  ;;  %v231_v54 = vld [vmem:[%s7002_s3 + $0x130] sm:$0xff] }
 0x544   :  { %v825_v60 = vsel %vm120_vm1, %v5282_v58, -inf }
 0x545   :  { %v826_v62 = vmax.f32 %v5284_v59, %v825_v60 }
 0x546   :  { %v5289_v2 = vpop.f32.mrb[40].mxu1 }
 0x547   :  { %v726_v7 = vpop.f32.mrb[41].mxu1  ;;  %827 = vmax.xlane.f32.xlu0 %v826_v62 }
 0x548   :  { %v728_v18 = vpop.f32.mrb[42].mxu1 }
 0x549   :  { %v730_v20 = vpop.f32.mrb[43].mxu1  ;;  %v5299_v23 = vadd.f32 %v728_v18, %v223_v13 }
 0x54a   :  { %v5297_v22 = vadd.f32 %v730_v20, %v224_v10 }
 0x54c   :  { %v833_v25 = vsel %vm120_vm1, %v5297_v22, -inf }
 0x54d   :  { %v834_v28 = vmax.f32 %v5299_v23, %v833_v25 }
 0x54e   :  { %v5304_v29 = vpop.f32.mrb[44].mxu1  ;;  %1223 = vrot.lane.b32.xlu1 %v5015_v61, %s4751_s25 }
 0x54f   :  { %v736_v33 = vpop.f32.mrb[45].mxu1  ;;  %835 = vmax.xlane.f32.xlu0 %v834_v28 }
 0x550   :  { %v738_v42 = vpop.f32.mrb[46].mxu1 }
 0x551   :  { %v740_v46 = vpop.f32.mrb[47].mxu1  ;;  %v5316_v15 = vadd.f32 %v738_v42, %v227_v40  ;;  %v235_v40 = vld [vmem:[%s7002_s3 + $0x150] sm:$0xff] }
 0x552   :  { %v5314_v47 = vadd.f32 %v740_v46, %v228_v39  ;;  %v236_v39 = vld [vmem:[%s7002_s3 + $0x158] sm:$0xff] }
 0x554   :  { %v841_v26 = vsel %vm120_vm1, %v5314_v47, -inf }
 0x555   :  { %v842_v61 = vmax.f32 %v5316_v15, %v841_v26 }
 0x556   :  { %v744_v55 = vpop.f32.mrb[48].mxu1 }
 0x557   :  { %v746_v49 = vpop.f32.mrb[49].mxu1  ;;  %843 = vmax.xlane.f32.xlu0 %v842_v61 }
 0x558   :  { %v748_v60 = vpop.f32.mrb[50].mxu1 }
 0x559   :  { %v750_v62 = vpop.f32.mrb[51].mxu1  ;;  %v5329_v13 = vadd.f32 %v748_v60, %v231_v54  ;;  %v218_v60 = vld [vmem:[%s7002_s3 + $0xc8] sm:$0xff] }
 0x55a   :  { %v5327_v10 = vadd.f32 %v750_v62, %v232_v57 }
 0x55c   :  { %v849_v18 = vsel %vm120_vm1, %v5327_v10, -inf }
 0x55d   :  { %v850_v20 = vmax.f32 %v5329_v13, %v849_v18 }
 0x55e   :  { %v754_v25 = vpop.f32.mrb[52].mxu1 }
 0x55f   :  { %v756_v28 = vpop.f32.mrb[53].mxu1  ;;  %851 = vmax.xlane.f32.xlu0 %v850_v20  ;;  %v240_v20 = vld [vmem:[%s7002_s3 + $0x178] sm:$0xff] }
 0x560   :  { %v758_v42 = vpop.f32.mrb[54].mxu1 }
 0x561   :  { %v760_v46 = vpop.f32.mrb[55].mxu1  ;;  %v5342_v61 = vadd.f32 %v758_v42, %v235_v40  ;;  %v5356_v42 = vadd.f32 %v716_v50, %v218_v60 }
 0x562   :  { %v5340_v26 = vadd.f32 %v760_v46, %v236_v39  ;;  %v239_v39 = vld [vmem:[%s7002_s3 + $0x170] sm:$0xff] }
 0x563   :  { %v821_v60 = vsel %vm120_vm1, %v5356_v42, -inf }
 0x564   :  { %v857_v57 = vsel %vm120_vm1, %v5340_v26, -inf }
 0x565   :  { %v858_v54 = vmax.f32 %v5342_v61, %v857_v57  ;;  %v222_v57 = vld [vmem:[%s7002_s3 + $0xe8] sm:$0xff] }
 0x566   :  { %v764_v62 = vpop.f32.mrb[56].mxu1  ;;  %v5370_v31 = vadd.f32 %v726_v7, %v222_v57  ;;  %v225_v57 = vld [vmem:[%s7002_s3 + $0x100] sm:$0xff] }
 0x567   :  { %v766_v18 = vpop.f32.mrb[57].mxu1  ;;  %859 = vmax.xlane.f32.xlu0 %v858_v54  ;;  %v217_v54 = vld [vmem:[%s7002_s3 + $0xc0] sm:$0xff] }
 0x568   :  { %v768_v40 = vpop.f32.mrb[58].mxu1  ;;  %v5376_v24 = vadd.f32 %v5274_v36, %v217_v54  ;;  %v230_v36 = vld [vmem:[%s7002_s3 + $0x128] sm:$0xff] }
 0x569   :  { %v770_v46 = vpop.f32.mrb[59].mxu1  ;;  %v5366_v19 = vadd.f32 %v768_v40, %v239_v39  ;;  %v221_v39 = vld [vmem:[%s7002_s3 + $0xe0] sm:$0xff] }
 0x56a   :  { %v5361_v1 = vadd.f32 %v770_v46, %v240_v20  ;;  %v226_v20 = vld [vmem:[%s7002_s3 + $0x108] sm:$0xff]  ;;  %v822_v7 = vmax.f32 %v5376_v24, %v821_v60  ;;  %v5390_v46 = vadd.f32 %v5289_v2, %v221_v39  ;;  %v5404_v60 = vadd.f32 %v5304_v29, %v225_v57 }
 0x56b   :  { %v5385_v40 = vadd.f32 %v736_v33, %v226_v20  ;;  %v234_v2 = vld [vmem:[%s7002_s3 + $0x148] sm:$0xff]  ;;  %v229_v20 = vld [vmem:[%s7002_s3 + $0x120] sm:$0xff] }
 0x56c   :  { %v865_v34 = vsel %vm120_vm1, %v5361_v1, -inf  ;;  %v238_v29 = vld [vmem:[%s7002_s3 + $0x168] sm:$0xff] }
 0x56d   :  { %v866_v50 = vmax.f32 %v5366_v19, %v865_v34  ;;  %v829_v34 = vsel %vm120_vm1, %v5370_v31, -inf  ;;  %v837_v33 = vsel %vm120_vm1, %v5385_v40, -inf }
 0x56e   :  { %v830_v54 = vmax.f32 %v5390_v46, %v829_v34  ;;  %v838_v39 = vmax.f32 %v5404_v60, %v837_v33  ;;  %v5417_v34 = vadd.f32 %v744_v55, %v229_v20  ;;  %v237_v55 = vld [vmem:[%s7002_s3 + $0x160] sm:$0xff] }
 0x56f   :  { %867 = vmax.xlane.f32.xlu0 %v866_v50  ;;  %v5399_v50 = vadd.f32 %v746_v49, %v230_v36  ;;  %v233_v36 = vld [vmem:[%s7002_s3 + $0x140] sm:$0xff] }
 0x570   :  { %v5430_v33 = vadd.f32 %v754_v25, %v233_v36 }
 0x571   :  { %v845_v49 = vsel %vm120_vm1, %v5399_v50, -inf }
 0x572   :  { %823 = vmax.xlane.f32.xlu1 %v822_v7  ;;  %v5413_v7 = vadd.f32 %v756_v28, %v234_v2  ;;  %v846_v57 = vmax.f32 %v5417_v34, %v845_v49 }
 0x574   :  { %v853_v28 = vsel %vm120_vm1, %v5413_v7, -inf }
 0x575   :  { %v854_v2 = vmax.f32 %v5430_v33, %v853_v28 }
 0x576   :  { %831 = vmax.xlane.f32.xlu1 %v830_v54  ;;  %v5426_v54 = vadd.f32 %v766_v18, %v238_v29 }
 0x578   :  { %v861_v20 = vsel %vm120_vm1, %v5426_v54, -inf }
 0x57a   :  { %839 = vmax.xlane.f32.xlu1 %v838_v39  ;;  %v5438_v39 = vadd.f32 %v764_v62, %v237_v55 }
 0x57c   :  { %v862_v18 = vmax.f32 %v5438_v39, %v861_v20 }
 0x57e   :  { %847 = vmax.xlane.f32.xlu1 %v846_v57 }
 0x582   :  { %855 = vmax.xlane.f32.xlu1 %v854_v2 }
 0x586   :  { %863 = vmax.xlane.f32.xlu1 %v862_v18 }
 0x5a2   :  { %v776_v49 = vpop.xlane.xlu1 %775 }
 0x5a3   :  { %v869_v25 = vsub.f32 %v5132_v51, %v776_v49  ;;  %v870_v29 = vsub.f32 %v5127_v45, %v776_v49 }
 0x5a4   :  { %v780_v36 = vpop.xlane.xlu0 %779 }
 0x5a5   :  { %v917_v57 = vmul.f32 1.442695, %v869_v25  ;;  %v919_v21 = vmul.f32 1.442695, %v870_v29  ;;  %v871_v14 = vsub.f32 %v5138_v56, %v780_v36  ;;  %v872_v28 = vsub.f32 %v5134_v53, %v780_v36 }
 0x5a7   :  { %4322 = vpow2.f32 %v917_v57  ;;  %v921_v11 = vmul.f32 1.442695, %v871_v14  ;;  %v923_v62 = vmul.f32 1.442695, %v872_v28 }
 0x5a8   :  { %4324 = vpow2.f32 %v919_v21 }
 0x5a9   :  { %4326 = vpow2.f32 %v923_v62 }
 0x5aa   :  { %v784_v55 = vpop.xlane.xlu0 %783  ;;  %4328 = vpow2.f32 %v921_v11 }
 0x5ab   :  { %v873_v2 = vsub.f32 %v5155_v6, %v784_v55  ;;  %v874_v51 = vsub.f32 %v5153_v63, %v784_v55 }
 0x5ad   :  { %v925_v20 = vmul.f32 1.442695, %v873_v2  ;;  %v927_v45 = vmul.f32 1.442695, %v874_v51 }
 0x5ae   :  { %v788_v18 = vpop.xlane.xlu0 %787 }
 0x5af   :  { %4330 = vpow2.f32 %v925_v20  ;;  %v875_v49 = vsub.f32 %v5167_v16, %v788_v18  ;;  %v876_v56 = vsub.f32 %v5160_v9, %v788_v18 }
 0x5b0   :  { %4332 = vpow2.f32 %v927_v45 }
 0x5b1   :  { %v5449_v53 = vpop.eup %4322  ;;  %v929_v14 = vmul.f32 1.442695, %v875_v49  ;;  %v931_v21 = vmul.f32 1.442695, %v876_v56 }
 0x5b2   :  { %v5451_v25 = vpop.eup %4324  ;;  %v792_v11 = vpop.xlane.xlu1 %791 }
 0x5b3   :  { %4334 = vpow2.f32 %v929_v14  ;;  %v877_v6 = vsub.f32 %v5184_v32, %v792_v11  ;;  %v878_v63 = vsub.f32 %v5179_v27, %v792_v11  ;;  %v1013_v29 = vsel %vm120_vm1, %v5451_v25, 0.0  ;;  %v5457_v36 = vpop.eup %4326 }
 0x5b4   :  { %4336 = vpow2.f32 %v931_v21  ;;  %v796_v9 = vpop.xlane.xlu0 %795  ;;  %v1014_v16 = vadd.f32 %v5449_v53, %v1013_v29  ;;  %v5460_v57 = vpop.eup %4328  ;;  %v1017_v27 = vsel %vm120_vm1, %v5457_v36, 0.0 }
 0x5b5   :  { %v933_v28 = vmul.f32 1.442695, %v877_v6  ;;  %v935_v62 = vmul.f32 1.442695, %v878_v63  ;;  %v879_v55 = vsub.f32 %v5190_v38, %v796_v9  ;;  %v880_v2 = vsub.f32 %v5186_v35, %v796_v9 }
 0x5b6   :  { %1015 = vadd.xlane.f32.xlu0 %v1014_v16  ;;  %v1018_v20 = vadd.f32 %v5460_v57, %v1017_v27 }
 0x5b7   :  { %4338 = vpow2.f32 %v933_v28  ;;  %v937_v32 = vmul.f32 1.442695, %v879_v55  ;;  %v939_v51 = vmul.f32 1.442695, %v880_v2 }
 0x5b8   :  { %4340 = vpow2.f32 %v935_v62 }
 0x5b9   :  { %v5467_v45 = vpop.eup %4330  ;;  %4342 = vpow2.f32 %v937_v32 }
 0x5ba   :  { %v5469_v18 = vpop.eup %4332  ;;  %4344 = vpow2.f32 %v939_v51  ;;  %1019 = vadd.xlane.f32.xlu0 %v1018_v20  ;;  %v800_v38 = vpop.xlane.xlu1 %799 }
 0x5bb   :  { %v881_v35 = vsub.f32 %v5210_v30, %v800_v38  ;;  %v882_v49 = vsub.f32 %v5205_v5, %v800_v38  ;;  %v1021_v56 = vsel %vm120_vm1, %v5469_v18, 0.0 }
 0x5bc   :  { %v1022_v14 = vadd.f32 %v5467_v45, %v1021_v56 }
 0x5bd   :  { %v5476_v21 = vpop.eup %4334  ;;  %v941_v11 = vmul.f32 1.442695, %v881_v35  ;;  %v943_v6 = vmul.f32 1.442695, %v882_v49 }
 0x5be   :  { %v5478_v63 = vpop.eup %4336  ;;  %1023 = vadd.xlane.f32.xlu1 %v1022_v14  ;;  %v7062_v14 = vmov 0  }
 0x5bf   :  { %4346 = vpow2.f32 %v941_v11  ;;  %v1025_v29 = vsel %vm120_vm1, %v5478_v63, 0.0  ;;  %v804_v11 = vpop.xlane.xlu0 %803 }
 0x5c0   :  { %4348 = vpow2.f32 %v943_v6  ;;  %v1026_v30 = vadd.f32 %v5476_v21, %v1025_v29 }
 0x5c1   :  { %v5483_v5 = vpop.eup %4338 }
 0x5c2   :  { %7059 = vst [vmem:[#allocation11_spill] sm:$0xff] %v5483_v5  ;;  %v5485_v9 = vpop.eup %4340  ;;  %1027 = vadd.xlane.f32.xlu0 %v1026_v30  ;;  %v808_v2 = vpop.xlane.xlu1 %807  ;;  %v884_v30 = vsub.f32 %v5212_v48, %v804_v11 }
 0x5c3   :  { %v5487_v16 = vpop.eup %4342  ;;  %v1029_v28 = vsel %vm120_vm1, %v5485_v9, 0.0 }
 0x5c4   :  { %v5491_v62 = vpop.eup %4344  ;;  %v1030_v55 = vadd.f32 %v5483_v5, %v1029_v28  ;;  %v812_v6 = vpop.xlane.xlu0 %811 }
 0x5c5   :  { %v1033_v27 = vsel %vm120_vm1, %v5491_v62, 0.0 }
 0x5c6   :  { %1031 = vadd.xlane.f32.xlu1 %v1030_v55  ;;  %v1034_v32 = vadd.f32 %v5487_v16, %v1033_v27  ;;  %v883_v55 = vsub.f32 %v5216_v52, %v804_v11  ;;  %v886_v27 = vsub.f32 %v5231_v0, %v808_v2  ;;  %v887_v0 = vsub.f32 %v5242_v17, %v812_v6 }
 0x5c8   :  { %1035 = vadd.xlane.f32.xlu0 %v1034_v32  ;;  %v947_v32 = vmul.f32 1.442695, %v884_v30 }
 0x5c9   :  { %v5497_v51 = vpop.eup %4346 }
 0x5ca   :  { %7060 = vst [vmem:[#allocation12_spill] sm:$0xff] %v5497_v51  ;;  %v5499_v20 = vpop.eup %4348  ;;  %v816_v38 = vpop.xlane.xlu1 %815  ;;  %4350 = vpow2.f32 %v947_v32 }
 0x5cb   :  { %7061 = vst [vmem:[#allocation13_spill] sm:$0xff] %v5499_v20  ;;  %v1037_v35 = vsel %vm120_vm1, %v5499_v20, 0.0 }
 0x5cc   :  { %v1038_v49 = vadd.f32 %v5497_v51, %v1037_v35  ;;  %v820_v29 = vpop.xlane.xlu0 %819  ;;  %v951_v51 = vmul.f32 1.442695, %v886_v27 }
 0x5cd   :  { %v891_v48 = vsub.f32 %v5268_v44, %v820_v29 }
 0x5ce   :  { %1039 = vadd.xlane.f32.xlu1 %v1038_v49  ;;  %v1224_v56 = vpop.permute.xlu1 %1223  ;;  %v892_v49 = vsub.f32 %v5264_v43, %v820_v29  ;;  %v890_v43 = vsub.f32 %v5257_v37, %v816_v38 }
 0x5cf   :  { %1296 = vmatpush1.bf16.msra.mxu0 %v1224_v56  ;;  %v945_v56 = vmul.f32 1.442695, %v883_v55  ;;  %v961_v30 = vmul.f32 1.442695, %v891_v48 }
 0x5d0   :  { %1297 = vmatprep.subr.bf16.mxu0 %v7062_v14  ;;  %v963_v5 = vmul.f32 1.442695, %v892_v49  ;;  %v959_v44 = vmul.f32 1.442695, %v890_v43 }
 0x5d1   :  { %4352 = vpow2.f32 %v945_v56 }
 0x5d2   :  { %4354 = vpow2.f32 %v951_v51 }
 0x5d3   :  { %4356 = vpow2.f32 %v963_v5 }
 0x5d4   :  { %v5510_v28 = vpop.xlane.xlu0 %827  ;;  %v5529_v51 = vpop.eup %4350 }
 0x5db   :  { %v5531_v32 = vpop.eup %4352 }
 0x5dc   :  { %v5514_v35 = vpop.xlane.xlu0 %835  ;;  %v5533_v5 = vpop.eup %4354 }
 0x5de   :  { %1225 = vrot.lane.b32.xlu0 %v5026_v4, %s4751_s25  ;;  %v885_v4 = vsub.f32 %v5236_v8, %v808_v2  ;;  %v953_v8 = vmul.f32 1.442695, %v887_v0 }
 0x5df   :  { %1227 = vrot.lane.b32.xlu1 %v5024_v3, %s4751_s25  ;;  %v888_v3 = vsub.f32 %v5238_v12, %v812_v6  ;;  %v889_v12 = vsub.f32 %v5262_v41, %v816_v38  ;;  %v1041_v41 = vsel %vm120_vm1, %v5529_v51, 0.0  ;;  %v5537_v38 = vpop.eup %4356 }
 0x5e0   :  { %v949_v52 = vmul.f32 1.442695, %v885_v4  ;;  %v1042_v56 = vadd.f32 %v5531_v32, %v1041_v41  ;;  %v1045_v4 = vsel %vm120_vm1, %v5533_v5, 0.0 }
 0x5e1   :  { %v955_v11 = vmul.f32 1.442695, %v888_v3  ;;  %v957_v37 = vmul.f32 1.442695, %v889_v12 }
 0x5e2   :  { %4358 = vpow2.f32 %v949_v52 }
 0x5e3   :  { %4360 = vpow2.f32 %v955_v11 }
 0x5e4   :  { %v5520_v20 = vpop.xlane.xlu0 %843  ;;  %4362 = vpow2.f32 %v961_v30 }
 0x5e5   :  { %4364 = vpow2.f32 %v953_v8 }
 0x5e6   :  { %4366 = vpow2.f32 %v959_v44 }
 0x5ec   :  { %v5524_v55 = vpop.xlane.xlu0 %851 }
 0x5f4   :  { %v860_v2 = vpop.xlane.xlu0 %859 }
 0x5f5   :  { %v911_v29 = vsub.f32 %v5342_v61, %v860_v2  ;;  %v912_v17 = vsub.f32 %v5340_v26, %v860_v2  ;;  %v896_v26 = vsub.f32 %v5282_v58, %v5510_v28  ;;  %v5541_v61 = vpop.eup %4358  ;;  %v1057_v58 = vsel %vm120_vm1, %v5537_v38, 0.0 }
 0x5f6   :  { %v5546_v3 = vpop.eup %4360  ;;  %v1046_v12 = vadd.f32 %v5541_v61, %v1045_v4  ;;  %v895_v2 = vsub.f32 %v5284_v59, %v5510_v28  ;;  %v900_v4 = vsub.f32 %v5297_v22, %v5514_v35 }
 0x5f7   :  { %v1001_v6 = vmul.f32 1.442695, %v911_v29  ;;  %v1003_v27 = vmul.f32 1.442695, %v912_v17  ;;  %v5550_v0 = vpop.eup %4362  ;;  %v971_v11 = vmul.f32 1.442695, %v896_v26 }
 0x5f8   :  { %v5555_v44 = vpop.eup %4364  ;;  %v1049_v29 = vsel %vm120_vm1, %v5546_v3, 0.0  ;;  %v1058_v17 = vadd.f32 %v5550_v0, %v1057_v58  ;;  %v969_v28 = vmul.f32 1.442695, %v895_v2 }
 0x5f9   :  { %4368 = vpow2.f32 %v1001_v6 }
 0x5fa   :  { %4370 = vpow2.f32 %v1003_v27 }
 0x5fb   :  { %4372 = vpow2.f32 %v957_v37  ;;  %v5564_v37 = vpop.eup %4366 }
 0x5fc   :  { %v868_v49 = vpop.xlane.xlu0 %867 }
 0x5fd   :  { %v915_v48 = vsub.f32 %v5366_v19, %v868_v49  ;;  %v916_v52 = vsub.f32 %v5361_v1, %v868_v49  ;;  %1043 = vadd.xlane.f32.xlu0 %v1042_v56 }
 0x5ff   :  { %v1009_v43 = vmul.f32 1.442695, %v915_v48  ;;  %v1011_v30 = vmul.f32 1.442695, %v916_v52  ;;  %v824_v8 = vpop.xlane.xlu1 %823  ;;  %v1053_v52 = vsel %vm120_vm1, %v5564_v37, 0.0 }
 0x600   :  { %v893_v19 = vsub.f32 %v5376_v24, %v824_v8  ;;  %v894_v1 = vsub.f32 %v5356_v42, %v824_v8  ;;  %v1050_v24 = vadd.f32 %v5555_v44, %v1049_v29 }
 0x601   :  { %4374 = vpow2.f32 %v1009_v43  ;;  %1047 = vadd.xlane.f32.xlu0 %v1046_v12 }
 0x602   :  { %4376 = vpow2.f32 %v1011_v30  ;;  %v965_v6 = vmul.f32 1.442695, %v893_v19  ;;  %v967_v27 = vmul.f32 1.442695, %v894_v1  ;;  %v979_v30 = vmul.f32 1.442695, %v900_v4 }
 0x603   :  { %v5566_v41 = vpop.eup %4368  ;;  %4378 = vpow2.f32 %v971_v11  ;;  %1059 = vadd.xlane.f32.xlu1 %v1058_v17  ;;  %v832_v59 = vpop.xlane.xlu1 %831 }
 0x604   :  { %v5569_v42 = vpop.eup %4370  ;;  %4380 = vpow2.f32 %v965_v6  ;;  %v897_v26 = vsub.f32 %v5390_v46, %v832_v59  ;;  %v898_v49 = vsub.f32 %v5370_v31, %v832_v59  ;;  %v899_v31 = vsub.f32 %v5299_v23, %v5514_v35 }
 0x605   :  { %v5573_v56 = vpop.eup %4372  ;;  %4382 = vpow2.f32 %v967_v27  ;;  %v1097_v48 = vsel %vm120_vm1, %v5569_v42, 0.0  ;;  %1051 = vadd.xlane.f32.xlu0 %v1050_v24  ;;  %v904_v23 = vsub.f32 %v5314_v47, %v5520_v20 }
 0x606   :  { %v975_v58 = vmul.f32 1.442695, %v898_v49  ;;  %v1098_v11 = vadd.f32 %v5566_v41, %v1097_v48  ;;  %4384 = vpow2.f32 %v969_v28  ;;  %v973_v46 = vmul.f32 1.442695, %v897_v26 }
 0x607   :  { %v840_v43 = vpop.xlane.xlu1 %839  ;;  %v1054_v22 = vadd.f32 %v5573_v56, %v1053_v52  ;;  %v977_v19 = vmul.f32 1.442695, %v899_v31  ;;  %v987_v28 = vmul.f32 1.442695, %v904_v23 }
 0x608   :  { %1099 = vadd.xlane.f32.xlu1 %v1098_v11  ;;  %4386 = vpow2.f32 %v975_v58  ;;  %v902_v8 = vsub.f32 %v5385_v40, %v840_v43  ;;  %v901_v1 = vsub.f32 %v5404_v60, %v840_v43  ;;  %v903_v60 = vsub.f32 %v5316_v15, %v5520_v20 }
 0x609   :  { %1055 = vadd.xlane.f32.xlu0 %v1054_v22  ;;  %4388 = vpow2.f32 %v973_v46  ;;  %v908_v11 = vsub.f32 %v5327_v10, %v5524_v55 }
 0x60a   :  { %4390 = vpow2.f32 %v979_v30  ;;  %v983_v35 = vmul.f32 1.442695, %v902_v8  ;;  %v981_v24 = vmul.f32 1.442695, %v901_v1  ;;  %v985_v15 = vmul.f32 1.442695, %v903_v60 }
 0x60b   :  { %v5586_v12 = vpop.eup %4374  ;;  %v848_v6 = vpop.xlane.xlu1 %847  ;;  %4392 = vpow2.f32 %v977_v19  ;;  %v995_v8 = vmul.f32 1.442695, %v908_v11 }
 0x60c   :  { %v5588_v2 = vpop.eup %4376  ;;  %4394 = vpow2.f32 %v983_v35  ;;  %v906_v26 = vsub.f32 %v5399_v50, %v848_v6  ;;  %v905_v20 = vsub.f32 %v5417_v34, %v848_v6  ;;  %v907_v34 = vsub.f32 %v5329_v13, %v5524_v55 }
 0x60d   :  { %v5591_v29 = vpop.eup %4378  ;;  %v1105_v17 = vsel %vm120_vm1, %v5588_v2, 0.0  ;;  %4396 = vpow2.f32 %v981_v24 }
 0x60e   :  { %v5597_v40 = vpop.eup %4380  ;;  %v1106_v27 = vadd.f32 %v5586_v12, %v1105_v17  ;;  %v1065_v48 = vsel %vm120_vm1, %v5591_v29, 0.0  ;;  %4398 = vpow2.f32 %v987_v28  ;;  %v991_v50 = vmul.f32 1.442695, %v906_v26 }
 0x60f   :  { %v5600_v59 = vpop.eup %4382  ;;  %v856_v58 = vpop.xlane.xlu1 %855  ;;  %4400 = vpow2.f32 %v985_v15  ;;  %v989_v30 = vmul.f32 1.442695, %v905_v20  ;;  %v993_v6 = vmul.f32 1.442695, %v907_v34 }
 0x610   :  { %1107 = vadd.xlane.f32.xlu1 %v1106_v27  ;;  %v1061_v47 = vsel %vm120_vm1, %v5600_v59, 0.0  ;;  %v5608_v4 = vpop.eup %4384  ;;  %4402 = vpow2.f32 %v991_v50  ;;  %v910_v10 = vsub.f32 %v5413_v7, %v856_v58  ;;  %v909_v13 = vsub.f32 %v5430_v33, %v856_v58 }
 0x611   :  { %v1062_v49 = vadd.f32 %v5597_v40, %v1061_v47  ;;  %v1066_v43 = vadd.f32 %v5608_v4, %v1065_v48  ;;  %4404 = vpow2.f32 %v989_v30 }
 0x612   :  { %v5612_v52 = vpop.eup %4386  ;;  %4406 = vpow2.f32 %v995_v8  ;;  %v999_v55 = vmul.f32 1.442695, %v910_v10  ;;  %v997_v28 = vmul.f32 1.442695, %v909_v13 }
 0x613   :  { %1063 = vadd.xlane.f32.xlu0 %v1062_v49  ;;  %v5618_v31 = vpop.eup %4388  ;;  %v1069_v46 = vsel %vm120_vm1, %v5612_v52, 0.0  ;;  %v864_v23 = vpop.xlane.xlu1 %863  ;;  %4408 = vpow2.f32 %v993_v6 }
 0x614   :  { %v5622_v22 = vpop.eup %4390  ;;  %v1070_v19 = vadd.f32 %v5618_v31, %v1069_v46  ;;  %v914_v27 = vsub.f32 %v5426_v54, %v864_v23  ;;  %v913_v26 = vsub.f32 %v5438_v39, %v864_v23  ;;  %4410 = vpow2.f32 %v999_v55 }
 0x615   :  { %v5628_v1 = vpop.eup %4392  ;;  %v1073_v35 = vsel %vm120_vm1, %v5622_v22, 0.0  ;;  %4412 = vpow2.f32 %v997_v28 }
 0x616   :  { %v5632_v17 = vpop.eup %4394  ;;  %v1074_v7 = vadd.f32 %v5628_v1, %v1073_v35  ;;  %v1007_v33 = vmul.f32 1.442695, %v914_v27  ;;  %v1005_v20 = vmul.f32 1.442695, %v913_v26 }
 0x617   :  { %1067 = vadd.xlane.f32.xlu0 %v1066_v43  ;;  %v5637_v60 = vpop.eup %4396  ;;  %v1077_v24 = vsel %vm120_vm1, %v5632_v17, 0.0 }
 0x618   :  { %v5641_v47 = vpop.eup %4398  ;;  %v1078_v49 = vadd.f32 %v5637_v60, %v1077_v24  ;;  %4414 = vpow2.f32 %v1007_v33 }
 0x619   :  { %v5645_v48 = vpop.eup %4400  ;;  %v1081_v54 = vsel %vm120_vm1, %v5641_v47, 0.0  ;;  %4416 = vpow2.f32 %v1005_v20 }
 0x61a   :  { %v5649_v15 = vpop.eup %4402  ;;  %v1082_v58 = vadd.f32 %v5645_v48, %v1081_v54 }
 0x61b   :  { %1071 = vadd.xlane.f32.xlu0 %v1070_v19  ;;  %v5652_v11 = vpop.eup %4404  ;;  %v1085_v39 = vsel %vm120_vm1, %v5649_v15, 0.0 }
 0x61c   :  { %v5656_v50 = vpop.eup %4406  ;;  %v1086_v43 = vadd.f32 %v5652_v11, %v1085_v39 }
 0x61d   :  { %v5659_v46 = vpop.eup %4408  ;;  %v1089_v34 = vsel %vm120_vm1, %v5656_v50, 0.0 }
 0x61e   :  { %v5663_v30 = vpop.eup %4410  ;;  %v1090_v8 = vadd.f32 %v5659_v46, %v1089_v34 }
 0x61f   :  { %1075 = vadd.xlane.f32.xlu0 %v1074_v7  ;;  %v5666_v10 = vpop.eup %4412  ;;  %v1093_v19 = vsel %vm120_vm1, %v5663_v30, 0.0 }
 0x620   :  { %v1094_v35 = vadd.f32 %v5666_v10, %v1093_v19 }
 0x622   :  { %v5670_v23 = vpop.eup %4414 }
 0x623   :  { %1079 = vadd.xlane.f32.xlu0 %v1078_v49  ;;  %v5673_v6 = vpop.eup %4416  ;;  %v1101_v13 = vsel %vm120_vm1, %v5670_v23, 0.0 }
 0x624   :  { %v1102_v55 = vadd.f32 %v5673_v6, %v1101_v13 }
 0x627   :  { %1083 = vadd.xlane.f32.xlu0 %v1082_v58 }
 0x62b   :  { %1087 = vadd.xlane.f32.xlu0 %v1086_v43 }
 0x62f   :  { %1091 = vadd.xlane.f32.xlu0 %v1090_v8 }
 0x633   :  { %1095 = vadd.xlane.f32.xlu0 %v1094_v35 }
 0x637   :  { %1103 = vadd.xlane.f32.xlu0 %v1102_v55 }
 0x643   :  { %v1016_v27 = vpop.xlane.xlu0 %1015 }
 0x644   :  { %4418 = vrcp.f32 %v1016_v27 }
 0x647   :  { %v1020_v7 = vpop.xlane.xlu0 %1019 }
 0x648   :  { %4420 = vrcp.f32 %v1020_v7  ;;  %v7063_v7 = vmov 0.0  }
 0x64b   :  { %v1024_v26 = vpop.xlane.xlu1 %1023 }
 0x64e   :  { %v4419_v28 = vpop.eup %4418 }
 0x64f   :  { %v1028_v24 = vpop.xlane.xlu0 %1027  ;;  %v1134_v49 = vmul.f32 %v4419_v28, %v5451_v25 }
 0x650   :  { %4422 = vrcp.f32 %v1028_v24 }
 0x651   :  { %4424 = vrcp.f32 %v1024_v26 }
 0x652   :  { %v4421_v33 = vpop.eup %4420 }
 0x653   :  { %v1136_v54 = vmul.f32 %v4421_v33, %v5457_v36  ;;  %v1032_v39 = vpop.xlane.xlu1 %1031  ;;  %v1135_v35 = vmul.f32 %v4421_v33, %v5460_v57  ;;  %v1133_v36 = vmul.f32 %v4419_v28, %v5449_v53 }
 0x655   :  { %v1182_v20 = vpack.c.bf16 %v1136_v54, %v1134_v49  ;;  %v1036_v58 = vpop.xlane.xlu0 %1035  ;;  %v1181_v27 = vpack.c.bf16 %v1135_v35, %v1133_v36  ;;  %v7065_v35 = vld [vmem:[#allocation13_spill] sm:$0xff]  ;;  %v7066_v36 = vld [vmem:[#allocation12_spill] sm:$0xff] }
 0x656   :  { %4426 = vrcp.f32 %v1036_v58 }
 0x657   :  { %3758 = vmatprep.mubr.msk.bf16.mxu0 %vm120_vm1, %v1182_v20  ;;  %4428 = vrcp.f32 %v1032_v39  ;;  %v7064_v20 = vld [vmem:[#allocation11_spill] sm:$0xff] }
 0x659   :  { %v1226_v43 = vpop.permute.xlu0 %1225 }
 0x65a   :  { %v4423_v34 = vpop.eup %4422  ;;  %1298 = vmatpush1.bf16.msra.mxu0 %v1226_v43 }
 0x65b   :  { %v1040_v8 = vpop.xlane.xlu1 %1039  ;;  %1299 = vmatprep.subr.bf16.mxu0 %v7062_v14  ;;  %v4425_v19 = vpop.eup %4424  ;;  %v1140_v25 = vmul.f32 %v4423_v34, %v5478_v63  ;;  %v1139_v54 = vmul.f32 %v4423_v34, %v5476_v21 }
 0x65c   :  { %v1138_v55 = vmul.f32 %v4425_v19, %v5469_v18  ;;  %v1137_v63 = vmul.f32 %v4425_v19, %v5467_v45  ;;  %4430 = vrcp.f32 %v1040_v8 }
 0x65e   :  { %v1184_v24 = vpack.c.bf16 %v1140_v25, %v1138_v55  ;;  %v1183_v28 = vpack.c.bf16 %v1139_v54, %v1137_v63 }
 0x65f   :  { %v1228_v13 = vpop.permute.xlu1 %1227 }
 0x660   :  { %1300 = vmatpush1.bf16.msra.mxu0 %v1228_v13  ;;  %v4427_v26 = vpop.eup %4426 }
 0x661   :  { %3963 = vmatprep.subr.bf16.mxu0 %v7063_v7  ;;  %v4429_v49 = vpop.eup %4428  ;;  %v1144_v57 = vmul.f32 %v4427_v26, %v5491_v62  ;;  %v1143_v18 = vmul.f32 %v4427_v26, %v5487_v16 }
 0x662   :  { %v1142_v53 = vmul.f32 %v4429_v49, %v5485_v9  ;;  %v1141_v58 = vmul.f32 %v4429_v49, %v7064_v20 }
 0x663   :  { %1310 = vmatmul.mubr.bf16.vlgmr.msra.gmra.mrb[12].mxu0 %v1181_v27 }
 0x664   :  { %3759 = vmatprep.mubr.msk.bf16.mxu0 %vm120_vm1, %v1184_v24  ;;  %v1186_v33 = vpack.c.bf16 %v1144_v57, %v1142_v53  ;;  %v1185_v39 = vpack.c.bf16 %v1143_v18, %v1141_v58 }
 0x666   :  { %v4431_v34 = vpop.eup %4430 }
 0x667   :  { %v1146_v25 = vmul.f32 %v4431_v34, %v7065_v35  ;;  %v1145_v13 = vmul.f32 %v4431_v34, %v7066_v36 }
 0x66b   :  { %1318 = vmatmul.mubr.bf16.gmra.mrb[16].mxu0 %v1183_v28 }
 0x66c   :  { %3760 = vmatprep.mubr.msk.bf16.mxu0 %vm120_vm1, %v1186_v33 }
 0x673   :  { %1326 = vmatmul.mubr.bf16.gmra.mrb[20].mxu0 %v1185_v39 }
 0x68a   :  { %v1044_v43 = vpop.xlane.xlu0 %1043 }
 0x68b   :  { %4432 = vrcp.f32 %v1044_v43 }
 0x68e   :  { %v1048_v21 = vpop.xlane.xlu0 %1047 }
 0x68f   :  { %4434 = vrcp.f32 %v1048_v21 }
 0x690   :  { %v1060_v62 = vpop.xlane.xlu1 %1059 }
 0x692   :  { %v1052_v45 = vpop.xlane.xlu0 %1051 }
 0x693   :  { %4436 = vrcp.f32 %v1052_v45 }
 0x694   :  { %4438 = vrcp.f32 %v1060_v62 }
 0x695   :  { %v4433_v9 = vpop.eup %4432 }
 0x696   :  { %v1056_v19 = vpop.xlane.xlu0 %1055  ;;  %v1148_v16 = vmul.f32 %v4433_v9, %v5529_v51  ;;  %v1147_v55 = vmul.f32 %v4433_v9, %v5531_v32 }
 0x697   :  { %4440 = vrcp.f32 %v1056_v19 }
 0x698   :  { %v1188_v8 = vpack.c.bf16 %v1148_v16, %v1146_v25  ;;  %v1187_v27 = vpack.c.bf16 %v1147_v55, %v1145_v13  ;;  %v1100_v55 = vpop.xlane.xlu1 %1099 }
 0x699   :  { %v4435_v24 = vpop.eup %4434 }
 0x69a   :  { %3761 = vmatprep.mubr.msk.bf16.mxu0 %vm120_vm1, %v1188_v8  ;;  %v1150_v49 = vmul.f32 %v4435_v24, %v5533_v5  ;;  %v1149_v57 = vmul.f32 %v4435_v24, %v5541_v61 }
 0x69b   :  { %1334 = vmatmul.mubr.bf16.gmra.mrb[24].mxu0 %v1187_v27 }
 0x69d   :  { %v4437_v26 = vpop.eup %4436 }
 0x69e   :  { %v1152_v54 = vmul.f32 %v4437_v26, %v5546_v3  ;;  %v1151_v51 = vmul.f32 %v4437_v26, %v5555_v44  ;;  %v4439_v63 = vpop.eup %4438 }
 0x69f   :  { %v1156_v20 = vmul.f32 %v4439_v63, %v5537_v38  ;;  %v1155_v58 = vmul.f32 %v4439_v63, %v5550_v0 }
 0x6a0   :  { %v1064_v53 = vpop.xlane.xlu0 %1063  ;;  %v1190_v28 = vpack.c.bf16 %v1152_v54, %v1150_v49  ;;  %v1189_v32 = vpack.c.bf16 %v1151_v51, %v1149_v57  ;;  %v1108_v49 = vpop.xlane.xlu1 %1107 }
 0x6a1   :  { %v4441_v33 = vpop.eup %4440  ;;  %4442 = vrcp.f32 %v1064_v53 }
 0x6a2   :  { %3762 = vmatprep.mubr.msk.bf16.mxu0 %vm120_vm1, %v1190_v28  ;;  %v1154_v18 = vmul.f32 %v4441_v33, %v5564_v37  ;;  %v1153_v61 = vmul.f32 %v4441_v33, %v5573_v56 }
 0x6a3   :  { %1342 = vmatmul.mubr.bf16.gmra.mrb[28].mxu0 %v1189_v32 }
 0x6a4   :  { %v1068_v5 = vpop.xlane.xlu0 %1067  ;;  %v1192_v3 = vpack.c.bf16 %v1156_v20, %v1154_v18  ;;  %v1191_v39 = vpack.c.bf16 %v1155_v58, %v1153_v61 }
 0x6a5   :  { %4444 = vrcp.f32 %v1068_v5 }
 0x6a6   :  { %3763 = vmatprep.mubr.msk.bf16.mxu0 %vm120_vm1, %v1192_v3 }
 0x6a8   :  { %v1072_v44 = vpop.xlane.xlu0 %1071 }
 0x6a9   :  { %4446 = vrcp.f32 %v1072_v44 }
 0x6ab   :  { %1350 = vmatmul.mubr.bf16.gmra.mrb[32].mxu0 %v1191_v39  ;;  %v4443_v21 = vpop.eup %4442 }
 0x6ac   :  { %v1076_v43 = vpop.xlane.xlu0 %1075  ;;  %v1158_v38 = vmul.f32 %v4443_v21, %v5600_v59  ;;  %v1157_v34 = vmul.f32 %v4443_v21, %v5597_v40 }
 0x6ad   :  { %4448 = vrcp.f32 %v1076_v43 }
 0x6af   :  { %v4445_v37 = vpop.eup %4444 }
 0x6b0   :  { %v1080_v62 = vpop.xlane.xlu0 %1079  ;;  %v1160_v45 = vmul.f32 %v4445_v37, %v5591_v29  ;;  %v1159_v56 = vmul.f32 %v4445_v37, %v5608_v4 }
 0x6b1   :  { %4450 = vrcp.f32 %v1080_v62 }
 0x6b2   :  { %v1194_v9 = vpack.c.bf16 %v1160_v45, %v1158_v38  ;;  %v1193_v19 = vpack.c.bf16 %v1159_v56, %v1157_v34 }
 0x6b3   :  { %v4447_v35 = vpop.eup %4446 }
 0x6b4   :  { %v1084_v0 = vpop.xlane.xlu0 %1083  ;;  %3764 = vmatprep.mubr.msk.bf16.mxu0 %vm120_vm1, %v1194_v9  ;;  %v1162_v36 = vmul.f32 %v4447_v35, %v5612_v52  ;;  %v1161_v29 = vmul.f32 %v4447_v35, %v5618_v31  ;;  %v4293_v9 = vld [vmem:[%s7007_s8 + $0x8] sm:$0xff]  }
 0x6b5   :  { %4452 = vrcp.f32 %v1084_v0  ;;  %1358 = vmatmul.mubr.bf16.gmra.mrb[36].mxu0 %v1193_v19 }
 0x6b7   :  { %v4449_v25 = vpop.eup %4448 }
 0x6b8   :  { %v1088_v16 = vpop.xlane.xlu0 %1087  ;;  %v1164_v59 = vmul.f32 %v4449_v25, %v5622_v22  ;;  %v1163_v40 = vmul.f32 %v4449_v25, %v5628_v1 }
 0x6b9   :  { %4454 = vrcp.f32 %v1088_v16 }
 0x6ba   :  { %v1196_v4 = vpack.c.bf16 %v1164_v59, %v1162_v36  ;;  %v1195_v13 = vpack.c.bf16 %v1163_v40, %v1161_v29 }
 0x6bb   :  { %v4451_v27 = vpop.eup %4450 }
 0x6bc   :  { %v1092_v8 = vpop.xlane.xlu0 %1091  ;;  %3765 = vmatprep.mubr.msk.bf16.mxu0 %vm120_vm1, %v1196_v4  ;;  %v1166_v52 = vmul.f32 %v4451_v27, %v5632_v17  ;;  %v1165_v31 = vmul.f32 %v4451_v27, %v5637_v60 }
 0x6bd   :  { %4456 = vrcp.f32 %v1092_v8  ;;  %1366 = vmatmul.mubr.bf16.gmra.mrb[40].mxu0 %v1195_v13 }
 0x6be   :  { %4458 = vrcp.f32 %v1100_v55 }
 0x6bf   :  { %v4453_v24 = vpop.eup %4452 }
 0x6c0   :  { %v1096_v26 = vpop.xlane.xlu0 %1095  ;;  %v1168_v22 = vmul.f32 %v4453_v24, %v5641_v47  ;;  %v1167_v1 = vmul.f32 %v4453_v24, %v5645_v48 }
 0x6c1   :  { %4460 = vrcp.f32 %v1096_v26 }
 0x6c2   :  { %v1198_v54 = vpack.c.bf16 %v1168_v22, %v1166_v52  ;;  %v1197_v57 = vpack.c.bf16 %v1167_v1, %v1165_v31  ;;  %4462 = vrcp.f32 %v1108_v49 }
 0x6c3   :  { %v4455_v63 = vpop.eup %4454 }
 0x6c4   :  { %v1104_v51 = vpop.xlane.xlu0 %1103  ;;  %3766 = vmatprep.mubr.msk.bf16.mxu0 %vm120_vm1, %v1198_v54  ;;  %v1170_v17 = vmul.f32 %v4455_v63, %v5649_v15  ;;  %v1169_v60 = vmul.f32 %v4455_v63, %v5652_v11 }
 0x6c5   :  { %4464 = vrcp.f32 %v1104_v51  ;;  %1374 = vmatmul.mubr.bf16.gmra.mrb[44].mxu0 %v1197_v57 }
 0x6c7   :  { %v4457_v53 = vpop.eup %4456 }
 0x6c8   :  { %v1172_v47 = vmul.f32 %v4457_v53, %v5656_v50  ;;  %v1171_v48 = vmul.f32 %v4457_v53, %v5659_v46  ;;  %v4459_v28 = vpop.eup %4458 }
 0x6c9   :  { %v1176_v5 = vmul.f32 %v4459_v28, %v5569_v42  ;;  %v1175_v46 = vmul.f32 %v4459_v28, %v5566_v41  ;;  %v4292_v41 = vld [vmem:[%s7007_s8] sm:$0xff]  }
 0x6ca   :  { %v1200_v32 = vpack.c.bf16 %v1172_v47, %v1170_v17  ;;  %v1199_v33 = vpack.c.bf16 %v1171_v48, %v1169_v60  ;;  %3964 = vmatpush3.bf16.msra.mxu0 %v4292_v41 }
 0x6cb   :  { %v4461_v18 = vpop.eup %4460  ;;  %3965 = vmatprep.subr.bf16.mxu0 %v7063_v7 }
 0x6cc   :  { %3767 = vmatprep.mubr.msk.bf16.mxu0 %vm120_vm1, %v1200_v32  ;;  %v1174_v20 = vmul.f32 %v4461_v18, %v5663_v30  ;;  %v4463_v3 = vpop.eup %4462  ;;  %v1173_v50 = vmul.f32 %v4461_v18, %v5666_v10 }
 0x6cd   :  { %1382 = vmatmul.mubr.bf16.gmra.mrb[48].mxu0 %v1199_v33  ;;  %v1180_v44 = vmul.f32 %v4463_v3, %v5588_v2  ;;  %v1179_v30 = vmul.f32 %v4463_v3, %v5586_v12 }
 0x6ce   :  { %v1202_v61 = vpack.c.bf16 %v1176_v5, %v1174_v20  ;;  %v1201_v58 = vpack.c.bf16 %v1175_v46, %v1173_v50  ;;  %3966 = vmatpush3.bf16.msra.mxu0 %v4293_v9 }
 0x6cf   :  { %v4465_v15 = vpop.eup %4464  ;;  %3979 = vmatprep.subr.bf16.mxu0 %v7063_v7 }
 0x6d0   :  { %3768 = vmatprep.mubr.msk.bf16.mxu0 %vm120_vm1, %v1202_v61  ;;  %v1178_v11 = vmul.f32 %v4465_v15, %v5670_v23  ;;  %v1177_v42 = vmul.f32 %v4465_v15, %v5673_v6 }
 0x6d2   :  { %v1204_v39 = vpack.c.bf16 %v1180_v44, %v1178_v11  ;;  %v1203_v43 = vpack.c.bf16 %v1179_v30, %v1177_v42 }
 0x6d5   :  { %1390 = vmatmul.mubr.bf16.gmra.mrb[52].mxu0 %v1201_v58 }
 0x6d6   :  { %3769 = vmatprep.mubr.msk.bf16.mxu0 %vm120_vm1, %v1204_v39 }
 0x6dd   :  { %1398 = vmatmul.mubr.bf16.gmra.mrb[56].mxu0 %v1203_v43 }
 0x6de   :  { %3967 = vmatprep.mubr.msk.bf16.mxu0 %vm4745_vm0, %v7063_v7 }
 0x736   :  { %v5745_v10 = vpop.f32.mrb[12].mxu0 }
 0x737   :  { %v1313_v2 = vpop.f32.mrb[13].mxu0 }
 0x738   :  { %v5747_v23 = vpop.f32.mrb[14].mxu0 }
 0x739   :  { %v1316_v6 = vpop.f32.mrb[15].mxu0 }
 0x73e   :  { %v5750_v21 = vpop.f32.mrb[16].mxu0 }
 0x73f   :  { %v1321_v12 = vpop.f32.mrb[17].mxu0 }
 0x740   :  { %v5752_v37 = vpop.f32.mrb[18].mxu0 }
 0x741   :  { %v1324_v62 = vpop.f32.mrb[19].mxu0 }
 0x746   :  { %v5754_v38 = vpop.f32.mrb[20].mxu0 }
 0x747   :  { %v1329_v45 = vpop.f32.mrb[21].mxu0 }
 0x748   :  { %v5756_v34 = vpop.f32.mrb[22].mxu0 }
 0x749   :  { %v1332_v56 = vpop.f32.mrb[23].mxu0 }
 0x76e   :  { %v1335_v19 = vpop.f32.mrb[24].mxu0 }
 0x76f   :  { %v1337_v0 = vpop.f32.mrb[25].mxu0 }
 0x770   :  { %v1338_v35 = vpop.f32.mrb[26].mxu0 }
 0x771   :  { %v4148_v25 = vpack.i.bf16 %v1338_v35, %v1335_v19  ;;  %v1340_v16 = vpop.f32.mrb[27].mxu0 }
 0x773   :  { %4149 = vrot.lane.b32.xlu0 %v4148_v25, %s4752_s26 }
 0x776   :  { %v1343_v36 = vpop.f32.mrb[28].mxu0 }
 0x777   :  { %v1345_v59 = vpop.f32.mrb[29].mxu0 }
 0x778   :  { %v1346_v29 = vpop.f32.mrb[30].mxu0 }
 0x779   :  { %v4163_v40 = vpack.i.bf16 %v1346_v29, %v1343_v36  ;;  %v1348_v4 = vpop.f32.mrb[31].mxu0 }
 0x77b   :  { %4164 = vrot.lane.b32.xlu0 %v4163_v40, %s4752_s26 }
 0x77e   :  { %v1351_v13 = vpop.f32.mrb[32].mxu0 }
 0x77f   :  { %v1353_v55 = vpop.f32.mrb[33].mxu0 }
 0x780   :  { %v1354_v8 = vpop.f32.mrb[34].mxu0 }
 0x781   :  { %v4178_v27 = vpack.i.bf16 %v1354_v8, %v1351_v13  ;;  %v1356_v24 = vpop.f32.mrb[35].mxu0 }
 0x788   :  { %v1359_v26 = vpop.f32.mrb[36].mxu0 }
 0x789   :  { %v1361_v52 = vpop.f32.mrb[37].mxu0 }
 0x78a   :  { %v1362_v22 = vpop.f32.mrb[38].mxu0 }
 0x78b   :  { %v4153_v31 = vpack.i.bf16 %v1362_v22, %v1359_v26  ;;  %v1364_v1 = vpop.f32.mrb[39].mxu0 }
 0x78d   :  { %4154 = vrot.lane.b32.xlu1 %v4153_v31, %s4753_s27 }
 0x790   :  { %v1367_v49 = vpop.f32.mrb[40].mxu0 }
 0x791   :  { %v1369_v54 = vpop.f32.mrb[41].mxu0 }
 0x792   :  { %v1370_v57 = vpop.f32.mrb[42].mxu0 }
 0x793   :  { %v4168_v51 = vpack.i.bf16 %v1370_v57, %v1367_v49  ;;  %v1372_v63 = vpop.f32.mrb[43].mxu0 }
 0x798   :  { %v1375_v53 = vpop.f32.mrb[44].mxu0 }
 0x799   :  { %v1377_v17 = vpop.f32.mrb[45].mxu0 }
 0x79a   :  { %v1378_v47 = vpop.f32.mrb[46].mxu0 }
 0x79b   :  { %v4183_v60 = vpack.i.bf16 %v1378_v47, %v1375_v53  ;;  %v1380_v48 = vpop.f32.mrb[47].mxu0 }
 0x7a0   :  { %v1383_v28 = vpop.f32.mrb[48].mxu0 }
 0x7a1   :  { %v1385_v32 = vpop.f32.mrb[49].mxu0 }
 0x7a2   :  { %v1386_v33 = vpop.f32.mrb[50].mxu0 }
 0x7a3   :  { %v4158_v18 = vpack.i.bf16 %v1386_v33, %v1383_v28  ;;  %v1388_v20 = vpop.f32.mrb[51].mxu0 }
 0x7a5   :  { %4159 = vrot.lane.b32.xlu1 %v4158_v18, %s7034_s28 }
 0x7a8   :  { %v1391_v5 = vpop.f32.mrb[52].mxu0 }
 0x7a9   :  { %4169 = vrot.lane.b32.xlu1 %v4168_v51, %s4753_s27  ;;  %v1393_v3 = vpop.f32.mrb[53].mxu0 }
 0x7aa   :  { %v1394_v61 = vpop.f32.mrb[54].mxu0  ;;  %v7067_v3 = vld [vmem:[#allocation5_spill] sm:$0xff] }
 0x7ab   :  { %v4173_v15 = vpack.i.bf16 %v1394_v61, %v1391_v5  ;;  %v1396_v50 = vpop.f32.mrb[55].mxu0 }
 0x7ad   :  { %4179 = vrot.lane.b32.xlu1 %v4178_v27, %s4752_s26  ;;  %4174 = vrot.lane.b32.xlu0 %v4173_v15, %s7034_s28 }
 0x7b0   :  { %v1399_v11 = vpop.f32.mrb[56].mxu0 }
 0x7b1   :  { %4184 = vrot.lane.b32.xlu0 %v4183_v60, %s4753_s27  ;;  %v1401_v46 = vpop.f32.mrb[57].mxu0 }
 0x7b2   :  { %v1402_v44 = vpop.f32.mrb[58].mxu0 }
 0x7b3   :  { %v4188_v58 = vpack.i.bf16 %v1402_v44, %v1399_v11  ;;  %v1404_v39 = vpop.f32.mrb[59].mxu0  ;;  %v7068_v11 = vld [vmem:[#allocation6_spill] sm:$0xff] }
 0x7b5   :  { %4189 = vrot.lane.b32.xlu1 %v4188_v58, %s7034_s28 }
 0x7e5   :  { %v4150_v42 = vpop.permute.xlu0 %4149 }
 0x7e6   :  { %v4152_v43 = vunpack.i.h.bf16 %v4150_v42  ;;  %v4151_v41 = vunpack.i.l.bf16 %v4150_v42 }
 0x7e8   :  { %v1479_v62 = vsel %vm547_vm3, %v5747_v23, %v4152_v43  ;;  %v1478_v45 = vsel %vm547_vm3, %v5745_v10, %v4151_v41  ;;  %v7069_v41 = vld [vmem:[#allocation7_spill] sm:$0xff] }
 0x7ed   :  { %v4165_v19 = vpop.permute.xlu0 %4164 }
 0x7ee   :  { %v4167_v29 = vunpack.i.h.bf16 %v4165_v19  ;;  %v4166_v40 = vunpack.i.l.bf16 %v4165_v19 }
 0x7f0   :  { %v1481_v13 = vsel %vm547_vm3, %v5752_v37, %v4167_v29  ;;  %v1480_v55 = vsel %vm547_vm3, %v5750_v21, %v4166_v40  ;;  %v7072_v40 = vld [vmem:[#allocation10_spill] sm:$0xff] }
 0x7ff   :  { %v4155_v30 = vpop.permute.xlu1 %4154 }
 0x800   :  { %v4157_v2 = vunpack.i.h.bf16 %v4155_v30  ;;  %v4156_v6 = vunpack.i.l.bf16 %v4155_v30 }
 0x802   :  { %v1486_v0 = vsel %vm1484_vm4, %v1479_v62, %v4157_v2  ;;  %v1485_v35 = vsel %vm1484_vm4, %v1478_v45, %v4156_v6  ;;  %v7070_v62 = vld [vmem:[#allocation8_spill] sm:$0xff] }
 0x817   :  { %v4160_v12 = vpop.permute.xlu1 %4159 }
 0x818   :  { %v4162_v56 = vunpack.i.h.bf16 %v4160_v12  ;;  %v4161_v9 = vunpack.i.l.bf16 %v4160_v12 }
 0x81a   :  { %v1492_v25 = vsel %vm1491_vm5, %v1485_v35, %v4161_v9  ;;  %v1493_v16 = vsel %vm1491_vm5, %v1486_v0, %v4162_v56 }
 0x81b   :  { %v1498_v36 = vpack.c.bf16 %v1493_v16, %v1492_v25  ;;  %v4170_v59 = vpop.permute.xlu1 %4169  ;;  %v7071_v16 = vld [vmem:[#allocation9_spill] sm:$0xff] }
 0x81c   :  { %v4172_v4 = vunpack.i.h.bf16 %v4170_v59  ;;  %v4171_v23 = vunpack.i.l.bf16 %v4170_v59 }
 0x81d   :  { %3968 = vmatmul.mubr.msk.bf16.vlgmr.msra.gmra.mrb[60].mxu0 %vm243_vm2, %v1498_v36 }
 0x81e   :  { %3971 = vmatprep.mubr.msk.bf16.mxu0 %vm4745_vm0, %v7063_v7  ;;  %v1488_v24 = vsel %vm1484_vm4, %v1481_v13, %v4172_v4  ;;  %v1487_v26 = vsel %vm1484_vm4, %v1480_v55, %v4171_v23 }
 0x81f   :  { %v4175_v10 = vpop.permute.xlu0 %4174  ;;  %v4180_v52 = vpop.permute.xlu1 %4179 }
 0x820   :  { %v4177_v8 = vunpack.i.h.bf16 %v4175_v10  ;;  %v4176_v27 = vunpack.i.l.bf16 %v4175_v10  ;;  %v4182_v54 = vunpack.i.h.bf16 %v4180_v52  ;;  %v4181_v57 = vunpack.i.l.bf16 %v4180_v52 }
 0x822   :  { %v1494_v22 = vsel %vm1491_vm5, %v1487_v26, %v4176_v27  ;;  %v1495_v31 = vsel %vm1491_vm5, %v1488_v24, %v4177_v8  ;;  %v1483_v63 = vsel %vm547_vm3, %v5756_v34, %v4182_v54  ;;  %v1482_v53 = vsel %vm547_vm3, %v5754_v38, %v4181_v57  ;;  %v3770_v38 = vld [vmem:[%s7008_s9] ss:$0 sm:$0xff] }
 0x823   :  { %v4185_v1 = vpop.permute.xlu0 %4184  ;;  %v1499_v49 = vpack.c.bf16 %v1495_v31, %v1494_v22 }
 0x824   :  { %v4187_v51 = vunpack.i.h.bf16 %v4185_v1  ;;  %v4186_v37 = vunpack.i.l.bf16 %v4185_v1 }
 0x825   :  { %3972 = vmatmul.mubr.msk.bf16.gmra.mrb[64].mxu0 %vm243_vm2, %v1499_v49 }
 0x826   :  { %3975 = vmatprep.mubr.msk.bf16.mxu0 %vm4745_vm0, %v7063_v7  ;;  %v1489_v60 = vsel %vm1484_vm4, %v1482_v53, %v4186_v37  ;;  %v1490_v48 = vsel %vm1484_vm4, %v1483_v63, %v4187_v51 }
 0x827   :  { %v4190_v21 = vpop.permute.xlu1 %4189 }
 0x828   :  { %v4192_v17 = vunpack.i.h.bf16 %v4190_v21  ;;  %v4191_v47 = vunpack.i.l.bf16 %v4190_v21 }
 0x82a   :  { %v1496_v28 = vsel %vm1491_vm5, %v1489_v60, %v4191_v47  ;;  %v1497_v32 = vsel %vm1491_vm5, %v1490_v48, %v4192_v17 }
 0x82b   :  { %v1500_v33 = vpack.c.bf16 %v1497_v32, %v1496_v28 }
 0x82d   :  { %3976 = vmatmul.mubr.msk.bf16.gmra.mrb[68].mxu0 %vm243_vm2, %v1500_v33 }
 0x82e   :  { %3983 = vmatprep.mubr.msk.bf16.mxu0 %vm4745_vm0, %v7063_v7 }
 0x8f0   :  { %v1567_v34 = vpop.f32.mrb[60].mxu0 }
 0x8f1   :  { %v1568_v18 = vadd.f32 %v3770_v38, %v1567_v34  ;;  %v3969_v20 = vpop.f32.mrb[61].mxu0 }
 0x8f2   :  { %v1570_v5 = vpop.f32.mrb[62].mxu0 }
 0x8f3   :  { %v5808_v61 = vadd.f32 %v1568_v18, %v7067_v3  ;;  %v1571_v15 = vadd.f32 %v3770_v38, %v1570_v5  ;;  %v3970_v50 = vpop.f32.mrb[63].mxu0  ;;  %v4294_v3 = vld [vmem:[%s7011_s12] sm:$0xff]  }
 0x8f4   :  { %3980 = vmatpush3.bf16.msra.mxu0 %v4294_v3  ;;  %v4296_v50 = vld [vmem:[%s7013_s14] sm:$0xff]  }
 0x8f5   :  { %v5811_v46 = vadd.f32 %v1571_v15, %v7068_v11  ;;  %v1598_v44 = vsel %vm243_vm2, %v5808_v61, 0.0  ;;  %3981 = vmatprep.subr.bf16.mxu0 %v7063_v7  ;;  %v4295_v15 = vld [vmem:[%s7011_s12 + $0x8] sm:$0xff]   ;;  %3996 = vmatpush3.bf16.msra.mxu1 %v4296_v50 }
 0x8f6   :  { %1599 = vadd.xlane.f32.xlu0 %v1598_v44  ;;  %v4297_v11 = vld [vmem:[%s7013_s14 + $0x8] sm:$0xff]   ;;  %3997 = vmatprep.subr.bf16.mxu1 %v7063_v7  ;;  %v4298_v44 = vld [vmem:[%s7013_s14 + $0x10] sm:$0xff]  }
 0x8f7   :  { %v1601_v58 = vsel %vm243_vm2, %v5811_v46, 0.0 }
 0x8f8   :  { %1602 = vadd.xlane.f32.xlu1 %v1601_v58  ;;  %v1575_v39 = vpop.f32.mrb[64].mxu0  ;;  %3982 = vmatpush3.bf16.msra.mxu0 %v4295_v15 }
 0x8f9   :  { %v1576_v42 = vadd.f32 %v3770_v38, %v1575_v39  ;;  %v3973_v30 = vpop.f32.mrb[65].mxu0  ;;  %4015 = vmatprep.subr.bf16.mxu0 %v7063_v7  ;;  %3998 = vmatpush3.bf16.msra.mxu1 %v4297_v11 }
 0x8fa   :  { %v1578_v43 = vpop.f32.mrb[66].mxu0  ;;  %3999 = vmatprep.subr.bf16.mxu1 %v7063_v7 }
 0x8fb   :  { %v5818_v2 = vadd.f32 %v1576_v42, %v7069_v41  ;;  %v1579_v6 = vadd.f32 %v3770_v38, %v1578_v43  ;;  %v3974_v12 = vpop.f32.mrb[67].mxu0 }
 0x8fd   :  { %v5821_v45 = vadd.f32 %v1579_v6, %v7070_v62  ;;  %v1604_v56 = vsel %vm243_vm2, %v5818_v2, 0.0  ;;  %4000 = vmatpush3.bf16.msra.mxu1 %v4298_v44 }
 0x8fe   :  { %1605 = vadd.xlane.f32.xlu0 %v1604_v56  ;;  %4001 = vmatprep.subr.bf16.mxu1 %v7063_v7 }
 0x8ff   :  { %v1607_v35 = vsel %vm243_vm2, %v5821_v45, 0.0 }
 0x900   :  { %v1583_v9 = vpop.f32.mrb[68].mxu0 }
 0x901   :  { %v1584_v19 = vadd.f32 %v3770_v38, %v1583_v9  ;;  %v3977_v0 = vpop.f32.mrb[69].mxu0 }
 0x902   :  { %1608 = vadd.xlane.f32.xlu0 %v1607_v35  ;;  %v1586_v25 = vpop.f32.mrb[70].mxu0  ;;  %v3776_v0 = vld [vmem:[%s7009_s10] ss:$0 sm:$0xff] }
 0x903   :  { %v5828_v36 = vadd.f32 %v1584_v19, %v7071_v16  ;;  %v1587_v59 = vadd.f32 %v3770_v38, %v1586_v25  ;;  %v3978_v29 = vpop.f32.mrb[71].mxu0 }
 0x905   :  { %v5831_v4 = vadd.f32 %v1587_v59, %v7072_v40  ;;  %v1610_v23 = vsel %vm243_vm2, %v5828_v36, 0.0 }
 0x906   :  { %1611 = vadd.xlane.f32.xlu1 %v1610_v23 }
 0x907   :  { %v1613_v10 = vsel %vm243_vm2, %v5831_v4, 0.0 }
 0x908   :  { %1614 = vadd.xlane.f32.xlu0 %v1613_v10 }
 0x983   :  { %v1600_v13 = vpop.xlane.xlu0 %1599 }
 0x984   :  { %v1616_v55 = vmul.f32 0.03125, %v1600_v13  ;;  %v3777_v13 = vld [vmem:[%s7010_s11] ss:$0 sm:$0xff] }
 0x985   :  { %v1603_v8 = vpop.xlane.xlu1 %1602 }
 0x986   :  { %v5838_v27 = vsub.f32 %v5808_v61, %v1616_v55  ;;  %v1617_v24 = vmul.f32 0.03125, %v1603_v8 }
 0x988   :  { %v5841_v26 = vsub.f32 %v5811_v46, %v1617_v24  ;;  %v1628_v52 = vmul.f32 %v5838_v27, %v5838_v27 }
 0x98a   :  { %v1634_v22 = vsel %vm243_vm2, %v1628_v52, 0.0  ;;  %v1629_v31 = vmul.f32 %v5841_v26, %v5841_v26 }
 0x98b   :  { %v1606_v1 = vpop.xlane.xlu0 %1605  ;;  %1635 = vadd.xlane.f32.xlu1 %v1634_v22 }
 0x98c   :  { %v1618_v49 = vmul.f32 0.03125, %v1606_v1  ;;  %v1637_v54 = vsel %vm243_vm2, %v1629_v31, 0.0 }
 0x98d   :  { %1638 = vadd.xlane.f32.xlu0 %v1637_v54 }
 0x98e   :  { %v5850_v57 = vsub.f32 %v5818_v2, %v1618_v49 }
 0x98f   :  { %v1609_v51 = vpop.xlane.xlu0 %1608 }
 0x990   :  { %v1619_v37 = vmul.f32 0.03125, %v1609_v51  ;;  %v1630_v21 = vmul.f32 %v5850_v57, %v5850_v57 }
 0x992   :  { %v5855_v63 = vsub.f32 %v5821_v45, %v1619_v37  ;;  %v1640_v53 = vsel %vm243_vm2, %v1630_v21, 0.0 }
 0x993   :  { %1641 = vadd.xlane.f32.xlu1 %v1640_v53  ;;  %v1612_v17 = vpop.xlane.xlu1 %1611 }
 0x994   :  { %v1620_v47 = vmul.f32 0.03125, %v1612_v17  ;;  %v1631_v60 = vmul.f32 %v5855_v63, %v5855_v63 }
 0x995   :  { %v1615_v48 = vpop.xlane.xlu0 %1614 }
 0x996   :  { %v5861_v28 = vsub.f32 %v5828_v36, %v1620_v47  ;;  %v1621_v32 = vmul.f32 0.03125, %v1615_v48  ;;  %v1643_v33 = vsel %vm243_vm2, %v1631_v60, 0.0 }
 0x997   :  { %1644 = vadd.xlane.f32.xlu0 %v1643_v33 }
 0x998   :  { %v5865_v38 = vsub.f32 %v5831_v4, %v1621_v32  ;;  %v1632_v34 = vmul.f32 %v5861_v28, %v5861_v28 }
 0x99a   :  { %v1646_v18 = vsel %vm243_vm2, %v1632_v34, 0.0  ;;  %v1633_v20 = vmul.f32 %v5865_v38, %v5865_v38 }
 0x99b   :  { %1647 = vadd.xlane.f32.xlu1 %v1646_v18 }
 0x99c   :  { %v1649_v5 = vsel %vm243_vm2, %v1633_v20, 0.0 }
 0x99d   :  { %1650 = vadd.xlane.f32.xlu0 %v1649_v5 }
 0xa18   :  { %v1636_v58 = vpop.xlane.xlu1 %1635 }
 0xa19   :  { %v1652_v39 = vmul.f32 0.03125, %v1636_v58 }
 0xa1a   :  { %v1639_v42 = vpop.xlane.xlu0 %1638 }
 0xa1b   :  { %v1658_v30 = vadd.f32 1e-06, %v1652_v39  ;;  %v1653_v43 = vmul.f32 0.03125, %v1639_v42 }
 0xa1d   :  { %4466 = vrsqrt.f32 %v1658_v30  ;;  %v1659_v41 = vadd.f32 1e-06, %v1653_v43 }
 0xa1f   :  { %4468 = vrsqrt.f32 %v1659_v41 }
 0xa20   :  { %v1642_v6 = vpop.xlane.xlu1 %1641 }
 0xa21   :  { %v1654_v12 = vmul.f32 0.03125, %v1642_v6 }
 0xa23   :  { %v1660_v62 = vadd.f32 1e-06, %v1654_v12 }
 0xa24   :  { %v1645_v56 = vpop.xlane.xlu0 %1644 }
 0xa25   :  { %4470 = vrsqrt.f32 %v1660_v62  ;;  %v1655_v9 = vmul.f32 0.03125, %v1645_v56 }
 0xa27   :  { %v4467_v19 = vpop.eup %4466  ;;  %v1661_v35 = vadd.f32 1e-06, %v1655_v9 }
 0xa28   :  { %v1670_v25 = vmul.f32 %v4467_v19, %v5838_v27  ;;  %v1648_v16 = vpop.xlane.xlu1 %1647 }
 0xa29   :  { %v4469_v59 = vpop.eup %4468  ;;  %4472 = vrsqrt.f32 %v1661_v35  ;;  %v1656_v29 = vmul.f32 0.03125, %v1648_v16 }
 0xa2a   :  { %v1682_v40 = vmul.f32 %v3776_v0, %v1670_v25  ;;  %v1671_v23 = vmul.f32 %v4469_v59, %v5841_v26  ;;  %v1651_v10 = vpop.xlane.xlu0 %1650 }
 0xa2b   :  { %v1662_v55 = vadd.f32 1e-06, %v1656_v29  ;;  %v1657_v8 = vmul.f32 0.03125, %v1651_v10 }
 0xa2c   :  { %v1683_v24 = vmul.f32 %v3776_v0, %v1671_v23  ;;  %v1694_v22 = vadd.f32 %v3777_v13, %v1682_v40 }
 0xa2d   :  { %4474 = vrsqrt.f32 %v1662_v55  ;;  %v1663_v52 = vadd.f32 1e-06, %v1657_v8 }
 0xa2e   :  { %v1695_v31 = vadd.f32 %v3777_v13, %v1683_v24 }
 0xa2f   :  { %v4471_v27 = vpop.eup %4470  ;;  %4476 = vrsqrt.f32 %v1663_v52 }
 0xa30   :  { %v1700_v1 = vpack.c.bf16 %v1695_v31, %v1694_v22  ;;  %v1672_v49 = vmul.f32 %v4471_v27, %v5850_v57 }
 0xa32   :  { %3984 = vmatmul.mubr.msk.bf16.vlgmr.msra.gmra.mrb[72].mxu0 %vm243_vm2, %v1700_v1  ;;  %v1684_v51 = vmul.f32 %v3776_v0, %v1672_v49 }
 0xa33   :  { %v4473_v26 = vpop.eup %4472  ;;  %3987 = vmatprep.mubr.msk.bf16.mxu0 %vm4745_vm0, %v7063_v7 }
 0xa34   :  { %v1673_v54 = vmul.f32 %v4473_v26, %v5855_v63  ;;  %v1696_v53 = vadd.f32 %v3777_v13, %v1684_v51 }
 0xa36   :  { %v1685_v37 = vmul.f32 %v3776_v0, %v1673_v54 }
 0xa37   :  { %v4475_v21 = vpop.eup %4474 }
 0xa38   :  { %v1697_v17 = vadd.f32 %v3777_v13, %v1685_v37  ;;  %v1674_v47 = vmul.f32 %v4475_v21, %v5861_v28  ;;  %v4299_v28 = vld [vmem:[%s7013_s14 + $0x18] sm:$0xff]  }
 0xa39   :  { %v4477_v60 = vpop.eup %4476  ;;  %4002 = vmatpush3.bf16.msra.mxu1 %v4299_v28 }
 0xa3a   :  { %v1701_v48 = vpack.c.bf16 %v1697_v17, %v1696_v53  ;;  %v1675_v32 = vmul.f32 %v4477_v60, %v5865_v38  ;;  %v1686_v57 = vmul.f32 %v3776_v0, %v1674_v47  ;;  %2340 = vmatprep.subr.bf16.mxu1 %v7062_v14  ;;  %v3778_v38 = vld [vmem:[%s7012_s13] ss:$0 sm:$0xff] }
 0xa3c   :  { %3988 = vmatmul.mubr.msk.bf16.gmra.mrb[76].mxu0 %vm243_vm2, %v1701_v48  ;;  %v1687_v33 = vmul.f32 %v3776_v0, %v1675_v32  ;;  %v1698_v63 = vadd.f32 %v3777_v13, %v1686_v57 }
 0xa3d   :  { %3991 = vmatprep.mubr.msk.bf16.mxu0 %vm4745_vm0, %v7063_v7 }
 0xa3e   :  { %v1699_v34 = vadd.f32 %v3777_v13, %v1687_v33 }
 0xa40   :  { %v1702_v18 = vpack.c.bf16 %v1699_v34, %v1698_v63 }
 0xa44   :  { %3992 = vmatmul.mubr.msk.bf16.gmra.mrb[80].mxu0 %vm243_vm2, %v1702_v18 }
 0xa45   :  { %4019 = vmatprep.mubr.msk.bf16.mxu0 %vm4745_vm0, %v7063_v7 }
 0xb05   :  { %v1769_v20 = vpop.f32.mrb[72].mxu0 }
 0xb06   :  { %v1770_v5 = vadd.f32 %v3778_v38, %v1769_v20  ;;  %v3985_v3 = vpop.f32.mrb[73].mxu0 }
 0xb07   :  { %v1772_v15 = vpop.f32.mrb[74].mxu0 }
 0xb08   :  { %v1798_v50 = vmul.f32 0.044715, %v1770_v5  ;;  %v1773_v11 = vadd.f32 %v3778_v38, %v1772_v15  ;;  %v3986_v44 = vpop.f32.mrb[75].mxu0  ;;  %v1792_v60 = vmul.f32 0.5, %v1770_v5 }
 0xb0a   :  { %v1804_v58 = vmul.f32 %v1798_v50, %v1770_v5  ;;  %v1799_v39 = vmul.f32 0.044715, %v1773_v11  ;;  %v1793_v48 = vmul.f32 0.5, %v1773_v11 }
 0xb0c   :  { %v1810_v42 = vmul.f32 %v1804_v58, %v1770_v5  ;;  %v1805_v30 = vmul.f32 %v1799_v39, %v1773_v11 }
 0xb0e   :  { %v1816_v43 = vadd.f32 %v1810_v42, %v1770_v5  ;;  %v1811_v41 = vmul.f32 %v1805_v30, %v1773_v11 }
 0xb0f   :  { %v1777_v6 = vpop.f32.mrb[76].mxu0 }
 0xb10   :  { %v1822_v12 = vmul.f32 0.7978846, %v1816_v43  ;;  %v1817_v62 = vadd.f32 %v1811_v41, %v1773_v11  ;;  %v1778_v56 = vadd.f32 %v3778_v38, %v1777_v6  ;;  %v3989_v9 = vpop.f32.mrb[77].mxu0 }
 0xb11   :  { %v1780_v19 = vpop.f32.mrb[78].mxu0 }
 0xb12   :  { %4478 = vtanh.f32 %v1822_v12  ;;  %v1823_v0 = vmul.f32 0.7978846, %v1817_v62  ;;  %v1800_v35 = vmul.f32 0.044715, %v1778_v56  ;;  %v1781_v25 = vadd.f32 %v3778_v38, %v1780_v19  ;;  %v3990_v16 = vpop.f32.mrb[79].mxu0 }
 0xb13   :  { %v1794_v50 = vmul.f32 0.5, %v1778_v56 }
 0xb14   :  { %4480 = vtanh.f32 %v1823_v0  ;;  %v1806_v59 = vmul.f32 %v1800_v35, %v1778_v56  ;;  %v1801_v29 = vmul.f32 0.044715, %v1781_v25  ;;  %v1795_v11 = vmul.f32 0.5, %v1781_v25 }
 0xb16   :  { %v1812_v40 = vmul.f32 %v1806_v59, %v1778_v56  ;;  %v1807_v23 = vmul.f32 %v1801_v29, %v1781_v25 }
 0xb17   :  { %v1785_v10 = vpop.f32.mrb[80].mxu0 }
 0xb18   :  { %v1818_v13 = vadd.f32 %v1812_v40, %v1778_v56  ;;  %v1813_v55 = vmul.f32 %v1807_v23, %v1781_v25  ;;  %v1786_v8 = vadd.f32 %v3778_v38, %v1785_v10  ;;  %v3993_v24 = vpop.f32.mrb[81].mxu0  ;;  %v3784_v56 = vld [vmem:[%s7014_s15] ss:$0 sm:$0xff] }
 0xb19   :  { %v1788_v52 = vpop.f32.mrb[82].mxu0 }
 0xb1a   :  { %v1824_v22 = vmul.f32 0.7978846, %v1818_v13  ;;  %v1819_v31 = vadd.f32 %v1813_v55, %v1781_v25  ;;  %v1802_v27 = vmul.f32 0.044715, %v1786_v8  ;;  %v1789_v1 = vadd.f32 %v3778_v38, %v1788_v52  ;;  %v3994_v49 = vpop.f32.mrb[83].mxu0 }
 0xb1b   :  { %v1796_v6 = vmul.f32 0.5, %v1786_v8 }
 0xb1c   :  { %v4479_v26 = vpop.eup %4478  ;;  %4482 = vtanh.f32 %v1824_v22  ;;  %v1825_v54 = vmul.f32 0.7978846, %v1819_v31  ;;  %v1808_v51 = vmul.f32 %v1802_v27, %v1786_v8  ;;  %v1803_v37 = vmul.f32 0.044715, %v1789_v1 }
 0xb1d   :  { %v1834_v21 = vadd.f32 1.0, %v4479_v26  ;;  %v1797_v12 = vmul.f32 0.5, %v1789_v1 }
 0xb1e   :  { %v4481_v53 = vpop.eup %4480  ;;  %4484 = vtanh.f32 %v1825_v54  ;;  %v1814_v17 = vmul.f32 %v1808_v51, %v1786_v8  ;;  %v1809_v47 = vmul.f32 %v1803_v37, %v1789_v1 }
 0xb1f   :  { %v1835_v32 = vadd.f32 1.0, %v4481_v53  ;;  %v1840_v34 = vmul.f32 %v1834_v21, %v1792_v60 }
 0xb20   :  { %v1820_v57 = vadd.f32 %v1814_v17, %v1786_v8  ;;  %v1815_v33 = vmul.f32 %v1809_v47, %v1789_v1 }
 0xb21   :  { %v1841_v63 = vmul.f32 %v1835_v32, %v1793_v48 }
 0xb22   :  { %v1826_v18 = vmul.f32 0.7978846, %v1820_v57  ;;  %v1821_v28 = vadd.f32 %v1815_v33, %v1789_v1 }
 0xb23   :  { %v1846_v38 = vpack.c.bf16 %v1841_v63, %v1840_v34 }
 0xb24   :  { %4486 = vtanh.f32 %v1826_v18  ;;  %v1827_v20 = vmul.f32 0.7978846, %v1821_v28 }
 0xb25   :  { %4004 = vmatmul.mubr.msk.bf16.vlgmr.msra.gmra.mrb[60].mxu1 %vm120_vm1, %v1846_v38 }
 0xb26   :  { %v4483_v3 = vpop.eup %4482  ;;  %4488 = vtanh.f32 %v1827_v20  ;;  %4007 = vmatprep.mubr.msk.bf16.mxu1 %vm4745_vm0, %v7063_v7 }
 0xb27   :  { %v1836_v15 = vadd.f32 1.0, %v4483_v3 }
 0xb28   :  { %v4485_v5 = vpop.eup %4484 }
 0xb29   :  { %v1837_v44 = vadd.f32 1.0, %v4485_v5  ;;  %v1842_v58 = vmul.f32 %v1836_v15, %v1794_v50 }
 0xb2b   :  { %v1843_v39 = vmul.f32 %v1837_v44, %v1795_v11 }
 0xb2d   :  { %v1847_v42 = vpack.c.bf16 %v1843_v39, %v1842_v58 }
 0xb2e   :  { %v4487_v30 = vpop.eup %4486 }
 0xb2f   :  { %4008 = vmatmul.mubr.msk.bf16.gmra.mrb[64].mxu1 %vm120_vm1, %v1847_v42  ;;  %v1838_v43 = vadd.f32 1.0, %v4487_v30 }
 0xb30   :  { %v4489_v41 = vpop.eup %4488  ;;  %4011 = vmatprep.mubr.msk.bf16.mxu1 %vm4745_vm0, %v7063_v7 }
 0xb31   :  { %v1839_v62 = vadd.f32 1.0, %v4489_v41  ;;  %v1844_v9 = vmul.f32 %v1838_v43, %v1796_v6 }
 0xb33   :  { %v1845_v19 = vmul.f32 %v1839_v62, %v1797_v12 }
 0xb35   :  { %v1848_v0 = vpack.c.bf16 %v1845_v19, %v1844_v9 }
 0xb37   :  { %4012 = vmatmul.mubr.msk.bf16.gmra.mrb[68].mxu1 %vm120_vm1, %v1848_v0  ;;  %v4300_v0 = vld [vmem:[%s7005_s6 + $0x10] sm:$0xff]  }
 0xb38   :  { %2372 = vmatprep.mubr.bf16.mxu1 %v7062_v14  ;;  %4016 = vmatpush3.bf16.msra.mxu0 %v4300_v0 }
 0xb39   :  { %4017 = vmatprep.subr.bf16.mxu0 %v7063_v7 }
 0xbf8   :  { %v1931_v35 = vpop.f32.mrb[60].mxu1 }
 0xbf9   :  { %v1932_v25 = vadd.f32 %v3784_v56, %v1931_v35  ;;  %v4005_v16 = vpop.f32.mrb[61].mxu1 }
 0xbfa   :  { %v1934_v59 = vpop.f32.mrb[62].mxu1 }
 0xbfb   :  { %v5933_v29 = vadd.f32 %v1932_v25, %v5808_v61  ;;  %v1935_v40 = vadd.f32 %v3784_v56, %v1934_v59  ;;  %v4006_v23 = vpop.f32.mrb[63].mxu1 }
 0xbfd   :  { %7073 = vst [vmem:[#allocation11_spill] sm:$0xff] %v5933_v29  ;;  %v5936_v10 = vadd.f32 %v1935_v40, %v5811_v46  ;;  %v1964_v13 = vsel %vm243_vm2, %v5933_v29, 0.0 }
 0xbfe   :  { %1965 = vadd.xlane.f32.xlu1 %v1964_v13 }
 0xbff   :  { %7074 = vst [vmem:[#allocation13_spill] sm:$0xff] %v5936_v10  ;;  %v1967_v55 = vsel %vm243_vm2, %v5936_v10, 0.0 }
 0xc00   :  { %1968 = vadd.xlane.f32.xlu0 %v1967_v55 }
 0xc02   :  { %v1939_v8 = vpop.f32.mrb[64].mxu1 }
 0xc03   :  { %v1940_v24 = vadd.f32 %v3784_v56, %v1939_v8  ;;  %v4009_v52 = vpop.f32.mrb[65].mxu1 }
 0xc04   :  { %v1942_v22 = vpop.f32.mrb[66].mxu1 }
 0xc05   :  { %v5943_v61 = vadd.f32 %v1940_v24, %v5818_v2  ;;  %v1943_v31 = vadd.f32 %v3784_v56, %v1942_v22  ;;  %v4010_v27 = vpop.f32.mrb[67].mxu1 }
 0xc07   :  { %7075 = vst [vmem:[#allocation12_spill] sm:$0xff] %v5943_v61  ;;  %v5946_v46 = vadd.f32 %v1943_v31, %v5821_v45  ;;  %v1970_v1 = vsel %vm243_vm2, %v5943_v61, 0.0  ;;  %v3794_v31 = vld [vmem:[%s7003_s4 + $0x1] ss:$0 sm:$0xff] }
 0xc08   :  { %1971 = vadd.xlane.f32.xlu1 %v1970_v1 }
 0xc09   :  { %7076 = vst [vmem:[#allocation5_spill] sm:$0xff] %v5946_v46  ;;  %v1973_v49 = vsel %vm243_vm2, %v5946_v46, 0.0 }
 0xc0a   :  { %1974 = vadd.xlane.f32.xlu0 %v1973_v49  ;;  %v1947_v26 = vpop.f32.mrb[68].mxu1 }
 0xc0b   :  { %v1948_v54 = vadd.f32 %v3784_v56, %v1947_v26  ;;  %v4013_v51 = vpop.f32.mrb[69].mxu1 }
 0xc0c   :  { %v1950_v37 = vpop.f32.mrb[70].mxu1 }
 0xc0d   :  { %v5953_v2 = vadd.f32 %v1948_v54, %v5828_v36  ;;  %v1951_v21 = vadd.f32 %v3784_v56, %v1950_v37  ;;  %v4014_v53 = vpop.f32.mrb[71].mxu1  ;;  %v4301_v56 = vld [vmem:[%s7005_s6 + $0x18] sm:$0xff]   ;;  %v3795_v37 = vld [vmem:[%s7004_s5 + $0x1] ss:$0 sm:$0xff] }
 0xc0e   :  { %4018 = vmatpush3.bf16.msra.mxu0 %v4301_v56 }
 0xc0f   :  { %7077 = vst [vmem:[#allocation6_spill] sm:$0xff] %v5953_v2  ;;  %v5956_v45 = vadd.f32 %v1951_v21, %v5831_v4  ;;  %v1976_v17 = vsel %vm243_vm2, %v5953_v2, 0.0  ;;  %2997 = vmatprep.subr.bf16.mxu0 %v7062_v14 }
 0xc10   :  { %1977 = vadd.xlane.f32.xlu1 %v1976_v17 }
 0xc11   :  { %7078 = vst [vmem:[#allocation7_spill] sm:$0xff] %v5956_v45  ;;  %v1979_v47 = vsel %vm243_vm2, %v5956_v45, 0.0 }
 0xc12   :  { %1980 = vadd.xlane.f32.xlu0 %v1979_v47 }
 0xc8b   :  { %v1966_v60 = vpop.xlane.xlu1 %1965 }
 0xc8c   :  { %v1982_v48 = vmul.f32 0.03125, %v1966_v60 }
 0xc8d   :  { %v1969_v32 = vpop.xlane.xlu0 %1968 }
 0xc8e   :  { %v1988_v57 = vsub.f32 %v5933_v29, %v1982_v48  ;;  %v1983_v36 = vmul.f32 0.03125, %v1969_v32 }
 0xc90   :  { %v1989_v33 = vsub.f32 %v5936_v10, %v1983_v36  ;;  %v1994_v34 = vmul.f32 %v1988_v57, %v1988_v57 }
 0xc92   :  { %v2000_v4 = vsel %vm243_vm2, %v1994_v34, 0.0  ;;  %v1995_v63 = vmul.f32 %v1989_v33, %v1989_v33 }
 0xc93   :  { %2001 = vadd.xlane.f32.xlu1 %v2000_v4 }
 0xc94   :  { %v2003_v18 = vsel %vm243_vm2, %v1995_v63, 0.0 }
 0xc95   :  { %v1972_v28 = vpop.xlane.xlu1 %1971  ;;  %2004 = vadd.xlane.f32.xlu0 %v2003_v18 }
 0xc96   :  { %v1984_v38 = vmul.f32 0.03125, %v1972_v28 }
 0xc97   :  { %v1975_v20 = vpop.xlane.xlu0 %1974 }
 0xc98   :  { %v5967_v3 = vsub.f32 %v5943_v61, %v1984_v38  ;;  %v1985_v15 = vmul.f32 0.03125, %v1975_v20 }
 0xc9a   :  { %v5970_v5 = vsub.f32 %v5946_v46, %v1985_v15  ;;  %v1996_v50 = vmul.f32 %v5967_v3, %v5967_v3  ;;  %v4711_v46 = vld [vmem:[%s7002_s3 + $0x160] sm:$0xff] }
 0xc9c   :  { %v2006_v11 = vsel %vm243_vm2, %v1996_v50, 0.0  ;;  %v1997_v44 = vmul.f32 %v5970_v5, %v5970_v5 }
 0xc9d   :  { %2007 = vadd.xlane.f32.xlu1 %v2006_v11  ;;  %v1978_v58 = vpop.xlane.xlu1 %1977 }
 0xc9e   :  { %v1986_v39 = vmul.f32 0.03125, %v1978_v58  ;;  %v2009_v42 = vsel %vm243_vm2, %v1997_v44, 0.0 }
 0xc9f   :  { %2010 = vadd.xlane.f32.xlu0 %v2009_v42  ;;  %v1981_v30 = vpop.xlane.xlu0 %1980 }
 0xca0   :  { %v1992_v43 = vsub.f32 %v5953_v2, %v1986_v39  ;;  %v1987_v41 = vmul.f32 0.03125, %v1981_v30 }
 0xca2   :  { %v1993_v6 = vsub.f32 %v5956_v45, %v1987_v41  ;;  %v1998_v12 = vmul.f32 %v1992_v43, %v1992_v43 }
 0xca4   :  { %v2012_v62 = vsel %vm243_vm2, %v1998_v12, 0.0  ;;  %v1999_v9 = vmul.f32 %v1993_v6, %v1993_v6 }
 0xca5   :  { %2013 = vadd.xlane.f32.xlu1 %v2012_v62 }
 0xca6   :  { %v2015_v19 = vsel %vm243_vm2, %v1999_v9, 0.0 }
 0xca7   :  { %2016 = vadd.xlane.f32.xlu0 %v2015_v19 }
 0xd20   :  { %v2002_v35 = vpop.xlane.xlu1 %2001 }
 0xd21   :  { %v2018_v25 = vmul.f32 0.03125, %v2002_v35 }
 0xd22   :  { %v2005_v16 = vpop.xlane.xlu0 %2004 }
 0xd23   :  { %v2024_v59 = vadd.f32 1e-06, %v2018_v25  ;;  %v2019_v40 = vmul.f32 0.03125, %v2005_v16 }
 0xd25   :  { %4490 = vrsqrt.f32 %v2024_v59  ;;  %v2025_v23 = vadd.f32 1e-06, %v2019_v40 }
 0xd27   :  { %4492 = vrsqrt.f32 %v2025_v23 }
 0xd2a   :  { %v2008_v13 = vpop.xlane.xlu1 %2007 }
 0xd2b   :  { %v2020_v55 = vmul.f32 0.03125, %v2008_v13 }
 0xd2c   :  { %v2011_v8 = vpop.xlane.xlu0 %2010 }
 0xd2d   :  { %v2026_v24 = vadd.f32 1e-06, %v2020_v55  ;;  %v2021_v52 = vmul.f32 0.03125, %v2011_v8 }
 0xd2f   :  { %v4491_v22 = vpop.eup %4490  ;;  %4494 = vrsqrt.f32 %v2026_v24  ;;  %v2027_v27 = vadd.f32 1e-06, %v2021_v52 }
 0xd30   :  { %v2036_v1 = vmul.f32 %v4491_v22, %v1988_v57 }
 0xd31   :  { %v4493_v49 = vpop.eup %4492  ;;  %4496 = vrsqrt.f32 %v2027_v27 }
 0xd32   :  { %v2048_v26 = vmul.f32 %v3794_v31, %v2036_v1  ;;  %v2037_v54 = vmul.f32 %v4493_v49, %v1989_v33  ;;  %v2014_v51 = vpop.xlane.xlu1 %2013 }
 0xd33   :  { %v2022_v21 = vmul.f32 0.03125, %v2014_v51 }
 0xd34   :  { %v2049_v53 = vmul.f32 %v3794_v31, %v2037_v54  ;;  %v2017_v17 = vpop.xlane.xlu0 %2016  ;;  %v2060_v48 = vadd.f32 %v3795_v37, %v2048_v26 }
 0xd35   :  { %v2028_v47 = vadd.f32 1e-06, %v2022_v21  ;;  %v2023_v60 = vmul.f32 0.03125, %v2017_v17 }
 0xd36   :  { %v2061_v32 = vadd.f32 %v3795_v37, %v2049_v53 }
 0xd37   :  { %4498 = vrsqrt.f32 %v2028_v47  ;;  %v2029_v36 = vadd.f32 1e-06, %v2023_v60 }
 0xd38   :  { %v2066_v34 = vpack.c.bf16 %v2061_v32, %v2060_v48 }
 0xd39   :  { %v4495_v57 = vpop.eup %4494  ;;  %4500 = vrsqrt.f32 %v2029_v36 }
 0xd3a   :  { %4020 = vmatmul.mubr.msk.bf16.vlgmr.msra.gmra.mrb[84].mxu0 %vm243_vm2, %v2066_v34  ;;  %v2038_v33 = vmul.f32 %v4495_v57, %v5967_v3 }
 0xd3b   :  { %v4497_v4 = vpop.eup %4496  ;;  %4023 = vmatprep.mubr.msk.bf16.mxu0 %vm4745_vm0, %v7063_v7 }
 0xd3c   :  { %v2039_v63 = vmul.f32 %v4497_v4, %v5970_v5  ;;  %v2050_v18 = vmul.f32 %v3794_v31, %v2038_v33  ;;  %v3801_v5 = vld [vmem:[%s7006_s7 + $0x1] ss:$0 sm:$0xff] }
 0xd3e   :  { %v2051_v28 = vmul.f32 %v3794_v31, %v2039_v63  ;;  %v2062_v38 = vadd.f32 %v3795_v37, %v2050_v18 }
 0xd40   :  { %v2063_v20 = vadd.f32 %v3795_v37, %v2051_v28 }
 0xd41   :  { %v4499_v15 = vpop.eup %4498 }
 0xd42   :  { %v2067_v50 = vpack.c.bf16 %v2063_v20, %v2062_v38  ;;  %v2040_v11 = vmul.f32 %v4499_v15, %v1992_v43 }
 0xd43   :  { %v4501_v44 = vpop.eup %4500 }
 0xd44   :  { %v2041_v58 = vmul.f32 %v4501_v44, %v1993_v6  ;;  %4024 = vmatmul.mubr.msk.bf16.gmra.mrb[88].mxu0 %vm243_vm2, %v2067_v50  ;;  %v2052_v39 = vmul.f32 %v3794_v31, %v2040_v11 }
 0xd45   :  { %4027 = vmatprep.mubr.msk.bf16.mxu0 %vm4745_vm0, %v7063_v7 }
 0xd46   :  { %v2053_v3 = vmul.f32 %v3794_v31, %v2041_v58  ;;  %v2064_v42 = vadd.f32 %v3795_v37, %v2052_v39 }
 0xd48   :  { %v2065_v30 = vadd.f32 %v3795_v37, %v2053_v3 }
 0xd4a   :  { %v2068_v41 = vpack.c.bf16 %v2065_v30, %v2064_v42 }
 0xd4c   :  { %4028 = vmatmul.mubr.msk.bf16.gmra.mrb[92].mxu0 %vm243_vm2, %v2068_v41 }
 0xe0d   :  { %v2137_v12 = vpop.f32.mrb[84].mxu0 }
 0xe0e   :  { %v4021_v43 = vpop.f32.mrb[85].mxu0  ;;  %v2138_v6 = vadd.f32 %v3801_v5, %v2137_v12 }
 0xe0f   :  { %v2140_v62 = vpop.f32.mrb[86].mxu0 }
 0xe10   :  { %v2141_v9 = vadd.f32 %v3801_v5, %v2140_v62  ;;  %v4022_v19 = vpop.f32.mrb[87].mxu0 }
 0xe12   :  { %v4193_v0 = vpack.i.bf16 %v2141_v9, %v2138_v6  ;;  %v6008_v56 = vpack.c.bf16 %v2141_v9, %v2138_v6 }
 0xe14   :  { %4194 = vrot.lane.b32.xlu1 %v4193_v0, %s4746_s22 }
 0xe17   :  { %v2145_v35 = vpop.f32.mrb[88].mxu0 }
 0xe18   :  { %v4025_v25 = vpop.f32.mrb[89].mxu0  ;;  %v2146_v59 = vadd.f32 %v3801_v5, %v2145_v35 }
 0xe19   :  { %v2148_v16 = vpop.f32.mrb[90].mxu0 }
 0xe1a   :  { %v2149_v40 = vadd.f32 %v3801_v5, %v2148_v16  ;;  %v4026_v23 = vpop.f32.mrb[91].mxu0 }
 0xe1c   :  { %v4198_v13 = vpack.i.bf16 %v2149_v40, %v2146_v59  ;;  %v6011_v55 = vpack.c.bf16 %v2149_v40, %v2146_v59 }
 0xe1e   :  { %4199 = vrot.lane.b32.xlu0 %v4198_v13, %s4746_s22 }
 0xe1f   :  { %v2153_v8 = vpop.f32.mrb[92].mxu0 }
 0xe20   :  { %v4029_v24 = vpop.f32.mrb[93].mxu0  ;;  %v2154_v22 = vadd.f32 %v3801_v5, %v2153_v8 }
 0xe21   :  { %v2156_v52 = vpop.f32.mrb[94].mxu0 }
 0xe22   :  { %v2157_v31 = vadd.f32 %v3801_v5, %v2156_v52  ;;  %4214 = vrot.lane.b32.xlu0 %v4198_v13, %s4747_s2  ;;  %v4030_v27 = vpop.f32.mrb[95].mxu0 }
 0xe24   :  { %v4218_v1 = vpack.i.bf16 %v2157_v31, %v2154_v22  ;;  %v6015_v49 = vpack.c.bf16 %v2157_v31, %v2154_v22 }
 0xe26   :  { %4219 = vrot.lane.b32.xlu0 %v4218_v1, %s4747_s2  ;;  %4204 = vrot.lane.b32.xlu1 %v4218_v1, %s4746_s22  ;;  %s4755_s22 = smov [#allocation2]  }
 0xe2a   :  { %4224 = vrot.lane.b32.xlu0 %v4193_v0, %s4749_s23  ;;  %4209 = vrot.lane.b32.xlu1 %v4193_v0, %s4747_s2 }
 0xe2e   :  { %4229 = vrot.lane.b32.xlu0 %v4198_v13, %s4749_s23  ;;  %2244 = vrot.lane.b32.xlu1 %v6008_v56, %s4750_s24 }
 0xe32   :  { %4234 = vrot.lane.b32.xlu0 %v4218_v1, %s4749_s23  ;;  %2246 = vrot.lane.b32.xlu1 %v6011_v55, %s4750_s24 }
 0xe36   :  { %2248 = vrot.lane.b32.xlu1 %v6015_v49, %s4750_s24 }
 0xe86   :  { %v4195_v26 = vpop.permute.xlu1 %4194 }
 0xe87   :  { %v4197_v54 = vunpack.i.h.bf16 %v4195_v26  ;;  %v4196_v51 = vunpack.i.l.bf16 %v4195_v26 }
 0xe89   :  { %v6029_v37 = vpack.c.bf16 %v4197_v54, %v4196_v51 }
 0xe8b   :  { %2250 = vrot.lane.b32.xlu1 %v6029_v37, %s4750_s24 }
 0xe90   :  { %v4200_v21 = vpop.permute.xlu0 %4199 }
 0xe91   :  { %v4202_v53 = vunpack.i.h.bf16 %v4200_v21  ;;  %v4201_v17 = vunpack.i.l.bf16 %v4200_v21 }
 0xe93   :  { %v6033_v47 = vpack.c.bf16 %v4202_v53, %v4201_v17 }
 0xe94   :  { %v4215_v60 = vpop.permute.xlu0 %4214 }
 0xe95   :  { %2252 = vrot.lane.b32.xlu1 %v6033_v47, %s4750_s24  ;;  %v4217_v57 = vunpack.i.h.bf16 %v4215_v60  ;;  %v4216_v33 = vunpack.i.l.bf16 %v4215_v60 }
 0xe97   :  { %v6041_v20 = vpack.c.bf16 %v4217_v57, %v4216_v33 }
 0xe98   :  { %v4220_v48 = vpop.permute.xlu0 %4219  ;;  %v4205_v32 = vpop.permute.xlu1 %4204 }
 0xe99   :  { %v4207_v36 = vunpack.i.h.bf16 %v4205_v32  ;;  %v4206_v34 = vunpack.i.l.bf16 %v4205_v32  ;;  %v4222_v15 = vunpack.i.h.bf16 %v4220_v48  ;;  %v4221_v50 = vunpack.i.l.bf16 %v4220_v48 }
 0xe9b   :  { %v6037_v4 = vpack.c.bf16 %v4207_v36, %v4206_v34  ;;  %v6050_v30 = vpack.c.bf16 %v4222_v15, %v4221_v50  ;;  %v4674_v15 = vld [vmem:[%s7002_s3 + $0x18] sm:$0xff] }
 0xe9c   :  { %v4225_v63 = vpop.permute.xlu0 %4224  ;;  %v4210_v18 = vpop.permute.xlu1 %4209 }
 0xe9d   :  { %v4212_v28 = vunpack.i.h.bf16 %v4210_v18  ;;  %v4211_v38 = vunpack.i.l.bf16 %v4210_v18  ;;  %2254 = vrot.lane.b32.xlu0 %v6037_v4, %s4750_s24  ;;  %v4227_v11 = vunpack.i.h.bf16 %v4225_v63  ;;  %v4226_v44 = vunpack.i.l.bf16 %v4225_v63 }
 0xe9f   :  { %v6043_v58 = vpack.c.bf16 %v4212_v28, %v4211_v38  ;;  %v6052_v41 = vpack.c.bf16 %v4227_v11, %v4226_v44  ;;  %v4675_v44 = vld [vmem:[%s7002_s3 + $0x10] sm:$0xff] }
 0xea0   :  { %v4230_v39 = vpop.permute.xlu0 %4229  ;;  %v2245_v3 = vpop.permute.xlu1 %2244 }
 0xea1   :  { %v2305_v42 = vsel %vm547_vm3, %v2245_v3, 0  ;;  %2258 = vrot.lane.b32.xlu0 %v6041_v20, %s4750_s24  ;;  %2256 = vrot.lane.b32.xlu1 %v6043_v58, %s4750_s24  ;;  %v4232_v5 = vunpack.i.h.bf16 %v4230_v39  ;;  %v4231_v12 = vunpack.i.l.bf16 %v4230_v39 }
 0xea2   :  { %2341 = vmatpush1.bf16.xpose.msra.mxu1 %v2305_v42 }
 0xea3   :  { %2342 = vmatprep.subr.bf16.mxu1 %v7062_v14  ;;  %v6059_v19 = vpack.c.bf16 %v4232_v5, %v4231_v12  ;;  %v4676_v12 = vld [vmem:[%s7002_s3 + $0x28] sm:$0xff] }
 0xea4   :  { %v4235_v43 = vpop.permute.xlu0 %4234  ;;  %v2247_v9 = vpop.permute.xlu1 %2246 }
 0xea5   :  { %v4237_v62 = vunpack.i.h.bf16 %v4235_v43  ;;  %v4236_v6 = vunpack.i.l.bf16 %v4235_v43  ;;  %2262 = vrot.lane.b32.xlu0 %v6052_v41, %s4750_s24  ;;  %2260 = vrot.lane.b32.xlu1 %v6050_v30, %s4750_s24  ;;  %v2308_v35 = vsel %vm547_vm3, %v2247_v9, 0 }
 0xea7   :  { %v6061_v0 = vpack.c.bf16 %v4237_v62, %v4236_v6  ;;  %v4677_v6 = vld [vmem:[%s7002_s3 + $0x20] sm:$0xff] }
 0xea8   :  { %v2249_v25 = vpop.permute.xlu1 %2248 }
 0xea9   :  { %2266 = vrot.lane.b32.xlu0 %v6061_v0, %s4750_s24  ;;  %2264 = vrot.lane.b32.xlu1 %v6059_v19, %s4750_s24  ;;  %v2311_v16 = vsel %vm547_vm3, %v2249_v25, 0 }
 0xeaa   :  { %2343 = vmatpush1.bf16.xpose.msra.mxu1 %v2308_v35 }
 0xeab   :  { %2344 = vmatprep.subr.bf16.mxu1 %v7062_v14 }
 0xead   :  { %2925 = vrot.lane.b32.xlu0 %v6008_v56, %s4751_s25  ;;  %2927 = vrot.lane.b32.xlu1 %v6011_v55, %s4751_s25 }
 0xeb1   :  { %2929 = vrot.lane.b32.xlu0 %v6015_v49, %s4751_s25  ;;  %2931 = vrot.lane.b32.xlu1 %v6029_v37, %s4751_s25 }
 0xeb2   :  { %2345 = vmatpush1.bf16.xpose.msra.mxu1 %v2311_v16 }
 0xeb3   :  { %2346 = vmatprep.subr.bf16.mxu1 %v7062_v14 }
 0xeb5   :  { %2933 = vrot.lane.b32.xlu0 %v6033_v47, %s4751_s25  ;;  %2935 = vrot.lane.b32.xlu1 %v6037_v4, %s4751_s25 }
 0xeb9   :  { %2937 = vrot.lane.b32.xlu0 %v6043_v58, %s4751_s25 }
 0xebd   :  { %2939 = vrot.lane.b32.xlu0 %v6041_v20, %s4751_s25 }
 0xefd   :  { %v2251_v59 = vpop.permute.xlu1 %2250 }
 0xefe   :  { %v2314_v40 = vsel %vm547_vm3, %v2251_v59, 0 }
 0xeff   :  { %2347 = vmatpush1.bf16.xpose.msra.mxu1 %v2314_v40 }
 0xf00   :  { %2348 = vmatprep.subr.bf16.mxu1 %v7062_v14 }
 0xf07   :  { %v2253_v23 = vpop.permute.xlu1 %2252 }
 0xf08   :  { %v2317_v13 = vsel %vm547_vm3, %v2253_v23, 0  ;;  %v4678_v23 = vld [vmem:[%s7002_s3 + $0x48] sm:$0xff] }
 0xf09   :  { %2349 = vmatpush1.bf16.xpose.msra.mxu1 %v2317_v13 }
 0xf0a   :  { %2350 = vmatprep.subr.bf16.mxu1 %v7062_v14 }
 0xf0f   :  { %v2255_v8 = vpop.permute.xlu0 %2254 }
 0xf10   :  { %v2320_v24 = vsel %vm547_vm3, %v2255_v8, 0 }
 0xf11   :  { %2351 = vmatpush1.bf16.xpose.msra.mxu1 %v2320_v24  ;;  %v4679_v24 = vld [vmem:[%s7002_s3 + $0x40] sm:$0xff] }
 0xf12   :  { %2352 = vmatprep.subr.bf16.mxu1 %v7062_v14 }
 0xf13   :  { %v2259_v52 = vpop.permute.xlu0 %2258  ;;  %v2257_v22 = vpop.permute.xlu1 %2256 }
 0xf14   :  { %v2323_v1 = vsel %vm547_vm3, %v2257_v22, 0  ;;  %v2326_v21 = vsel %vm547_vm3, %v2259_v52, 0 }
 0xf17   :  { %v2263_v31 = vpop.permute.xlu0 %2262  ;;  %v2261_v27 = vpop.permute.xlu1 %2260 }
 0xf18   :  { %v2329_v60 = vsel %vm547_vm3, %v2261_v27, 0  ;;  %v2332_v36 = vsel %vm547_vm3, %v2263_v31, 0 }
 0xf19   :  { %2353 = vmatpush1.bf16.xpose.msra.mxu1 %v2323_v1 }
 0xf1a   :  { %2354 = vmatprep.subr.bf16.mxu1 %v7062_v14 }
 0xf1b   :  { %v2267_v26 = vpop.permute.xlu0 %2266  ;;  %v2265_v54 = vpop.permute.xlu1 %2264 }
 0xf1c   :  { %v2335_v33 = vsel %vm547_vm3, %v2265_v54, 0  ;;  %v2338_v18 = vsel %vm547_vm3, %v2267_v26, 0  ;;  %v4680_v54 = vld [vmem:[%s7002_s3 + $0x68] sm:$0xff] }
 0xf1f   :  { %v2926_v51 = vpop.permute.xlu0 %2925  ;;  %v2928_v53 = vpop.permute.xlu1 %2927 }
 0xf20   :  { %2998 = vmatpush1.bf16.msra.mxu0 %v2926_v51 }
 0xf21   :  { %2355 = vmatpush1.bf16.xpose.msra.mxu1 %v2326_v21  ;;  %2999 = vmatprep.subr.bf16.mxu0 %v7062_v14 }
 0xf22   :  { %2356 = vmatprep.subr.bf16.mxu1 %v7062_v14 }
 0xf23   :  { %v2930_v17 = vpop.permute.xlu0 %2929  ;;  %v2932_v48 = vpop.permute.xlu1 %2931 }
 0xf24   :  { %3000 = vmatpush1.bf16.msra.mxu0 %v2928_v53  ;;  %v4681_v53 = vld [vmem:[%s7002_s3 + $0x60] sm:$0xff] }
 0xf25   :  { %3001 = vmatprep.subr.bf16.mxu0 %v7062_v14 }
 0xf27   :  { %v2934_v32 = vpop.permute.xlu0 %2933  ;;  %v2936_v34 = vpop.permute.xlu1 %2935 }
 0xf28   :  { %3002 = vmatpush1.bf16.msra.mxu0 %v2930_v17 }
 0xf29   :  { %2357 = vmatpush1.bf16.xpose.msra.mxu1 %v2329_v60  ;;  %3003 = vmatprep.subr.bf16.mxu0 %v7062_v14 }
 0xf2a   :  { %2358 = vmatprep.subr.bf16.mxu1 %v7062_v14 }
 0xf2b   :  { %v2938_v57 = vpop.permute.xlu0 %2937 }
 0xf2c   :  { %3004 = vmatpush1.bf16.msra.mxu0 %v2932_v48 }
 0xf2d   :  { %3005 = vmatprep.subr.bf16.mxu0 %v7062_v14 }
 0xf2f   :  { %v2940_v63 = vpop.permute.xlu0 %2939 }
 0xf30   :  { %3006 = vmatpush1.bf16.msra.mxu0 %v2934_v32 }
 0xf31   :  { %2359 = vmatpush1.bf16.xpose.msra.mxu1 %v2332_v36  ;;  %3007 = vmatprep.subr.bf16.mxu0 %v7062_v14 }
 0xf32   :  { %2360 = vmatprep.subr.bf16.mxu1 %v7062_v14 }
 0xf34   :  { %3008 = vmatpush1.bf16.msra.mxu0 %v2936_v34  ;;  %v4682_v34 = vld [vmem:[%s7002_s3 + $0x88] sm:$0xff] }
 0xf35   :  { %3009 = vmatprep.subr.bf16.mxu0 %v7062_v14 }
 0xf38   :  { %3010 = vmatpush1.bf16.msra.mxu0 %v2938_v57 }
 0xf39   :  { %2361 = vmatpush1.bf16.xpose.msra.mxu1 %v2335_v33  ;;  %3011 = vmatprep.subr.bf16.mxu0 %v7062_v14 }
 0xf3a   :  { %2362 = vmatprep.subr.bf16.mxu1 %v7062_v14 }
 0xf3c   :  { %3012 = vmatpush1.bf16.msra.mxu0 %v2940_v63  ;;  %v4683_v63 = vld [vmem:[%s7002_s3 + $0x80] sm:$0xff] }
 0xf3d   :  { %3013 = vmatprep.subr.bf16.mxu0 %v7062_v14 }
 0xf41   :  { %2363 = vmatpush1.bf16.xpose.msra.mxu1 %v2338_v18 }
 0xf42   :  { %4083 = vmatprep.subr.bf16.mxu1 %v7063_v7 }
 0xf48   :  { %3807 = vmatmul.mubr.msk.bf16.vlgmr.msra.gmra.mrb[72].mxu1 %vm547_vm3, %v6008_v56 }
 0xf49   :  { %2382 = vmatprep.mubr.bf16.mxu1 %v7062_v14 }
 0xf50   :  { %3808 = vmatmul.mubr.msk.bf16.gmra.mrb[76].mxu1 %vm547_vm3, %v6011_v55 }
 0xf51   :  { %2392 = vmatprep.mubr.bf16.mxu1 %v7062_v14 }
 0xf58   :  { %3809 = vmatmul.mubr.msk.bf16.gmra.mrb[80].mxu1 %vm547_vm3, %v6015_v49  ;;  %v4672_v49 = vld [vmem:[%s7002_s3 + $0x8] sm:$0xff] }
 0xf59   :  { %2402 = vmatprep.mubr.bf16.mxu1 %v7062_v14 }
 0xf60   :  { %3810 = vmatmul.mubr.msk.bf16.gmra.mrb[84].mxu1 %vm547_vm3, %v6029_v37 }
 0xf61   :  { %2412 = vmatprep.mubr.bf16.mxu1 %v7062_v14 }
 0xf68   :  { %3811 = vmatmul.mubr.msk.bf16.gmra.mrb[88].mxu1 %vm547_vm3, %v6033_v47 }
 0xf69   :  { %2422 = vmatprep.mubr.bf16.mxu1 %v7062_v14 }
 0xf70   :  { %3812 = vmatmul.mubr.msk.bf16.gmra.mrb[92].mxu1 %vm547_vm3, %v6037_v4  ;;  %v4673_v4 = vld [vmem:[%s7002_s3] sm:$0xff] }
 0xf71   :  { %2432 = vmatprep.mubr.bf16.mxu1 %v7062_v14 }
 0xf78   :  { %3813 = vmatmul.mubr.msk.bf16.gmra.mrb[96].mxu1 %vm547_vm3, %v6043_v58 }
 0xf79   :  { %2442 = vmatprep.mubr.bf16.mxu1 %v7062_v14 }
 0xf80   :  { %3814 = vmatmul.mubr.msk.bf16.gmra.mrb[100].mxu1 %vm547_vm3, %v6041_v20 }
 0xf81   :  { %2452 = vmatprep.mubr.bf16.mxu1 %v7062_v14 }
 0xf88   :  { %3815 = vmatmul.mubr.msk.bf16.gmra.mrb[104].mxu1 %vm547_vm3, %v6050_v30 }
 0xf89   :  { %2462 = vmatprep.mubr.bf16.mxu1 %v7062_v14 }
 0xf90   :  { %3816 = vmatmul.mubr.msk.bf16.gmra.mrb[108].mxu1 %vm547_vm3, %v6052_v41 }
 0xf91   :  { %2472 = vmatprep.mubr.bf16.mxu1 %v7062_v14 }
 0xf98   :  { %3817 = vmatmul.mubr.msk.bf16.gmra.mrb[112].mxu1 %vm547_vm3, %v6059_v19 }
 0xf99   :  { %2482 = vmatprep.mubr.bf16.mxu1 %v7062_v14 }
 0xfa0   :  { %3818 = vmatmul.mubr.msk.bf16.gmra.mrb[116].mxu1 %vm547_vm3, %v6061_v0 }
 0xfa1   :  { %4075 = vmatprep.mubr.msk.bf16.mxu1 %vm4745_vm0, %v7063_v7 }
0x101b   :  { %v2374_v56 = vpop.f32.mrb[72].mxu1 }
0x101c   :  { %v2376_v55 = vpop.f32.mrb[73].mxu1  ;;  %v6158_v28 = vadd.f32 %v4673_v4, %v2374_v56 }
0x101d   :  { %v6153_v37 = vadd.f32 %v4672_v49, %v2376_v55  ;;  %v2378_v47 = vpop.f32.mrb[74].mxu1 }
0x101e   :  { %v2380_v38 = vpop.f32.mrb[75].mxu1  ;;  %v6171_v58 = vadd.f32 %v4675_v44, %v2378_v47 }
0x101f   :  { %v2493_v20 = vsel %vm120_vm1, %v6153_v37, -inf  ;;  %v6165_v50 = vadd.f32 %v4674_v15, %v2380_v38  ;;  %v4684_v38 = vld [vmem:[%s7002_s3 + $0xa8] sm:$0xff] }
0x1020   :  { %v2494_v11 = vmax.f32 %v6158_v28, %v2493_v20 }
0x1021   :  { %v2497_v39 = vsel %vm120_vm1, %v6165_v50, -inf }
0x1022   :  { %v2498_v3 = vmax.f32 %v6171_v58, %v2497_v39  ;;  %2495 = vmax.xlane.f32.xlu1 %v2494_v11  ;;  %v4685_v11 = vld [vmem:[%s7002_s3 + $0xa0] sm:$0xff] }
0x1023   :  { %v2384_v42 = vpop.f32.mrb[76].mxu1 }
0x1024   :  { %v2386_v5 = vpop.f32.mrb[77].mxu1  ;;  %2499 = vmax.xlane.f32.xlu0 %v2498_v3  ;;  %v6186_v9 = vadd.f32 %v4677_v6, %v2384_v42  ;;  %v4686_v6 = vld [vmem:[%s7002_s3 + $0xc8] sm:$0xff] }
0x1025   :  { %v6179_v43 = vadd.f32 %v4676_v12, %v2386_v5  ;;  %v6181_v62 = vpop.f32.mrb[78].mxu1 }
0x1026   :  { %v2390_v35 = vpop.f32.mrb[79].mxu1 }
0x1027   :  { %v2501_v25 = vsel %vm120_vm1, %v6179_v43, -inf }
0x1028   :  { %v2502_v16 = vmax.f32 %v6186_v9, %v2501_v25 }
0x102a   :  { %2503 = vmax.xlane.f32.xlu0 %v2502_v16 }
0x102b   :  { %v2394_v59 = vpop.f32.mrb[80].mxu1 }
0x102c   :  { %v2396_v40 = vpop.f32.mrb[81].mxu1  ;;  %v6201_v52 = vadd.f32 %v4679_v24, %v2394_v59  ;;  %v4687_v59 = vld [vmem:[%s7002_s3 + $0x38] sm:$0xff] }
0x102d   :  { %v6194_v13 = vadd.f32 %v4678_v23, %v2396_v40  ;;  %v6196_v8 = vpop.f32.mrb[82].mxu1  ;;  %v6263_v40 = vadd.f32 %v4687_v59, %v2390_v35  ;;  %v4688_v23 = vld [vmem:[%s7002_s3 + $0xc0] sm:$0xff]  ;;  %v4689_v35 = vld [vmem:[%s7002_s3 + $0x58] sm:$0xff] }
0x102e   :  { %v2400_v22 = vpop.f32.mrb[83].mxu1 }
0x102f   :  { %v2509_v31 = vsel %vm120_vm1, %v6194_v13, -inf }
0x1030   :  { %v2510_v27 = vmax.f32 %v6201_v52, %v2509_v31 }
0x1032   :  { %2511 = vmax.xlane.f32.xlu0 %v2510_v27 }
0x1033   :  { %v2404_v1 = vpop.f32.mrb[84].mxu1  ;;  %2941 = vrot.lane.b32.xlu1 %v6050_v30, %s4751_s25 }
0x1034   :  { %v2406_v26 = vpop.f32.mrb[85].mxu1  ;;  %v6218_v17 = vadd.f32 %v4681_v53, %v2404_v1  ;;  %v4690_v53 = vld [vmem:[%s7002_s3 + $0x30] sm:$0xff] }
0x1035   :  { %v6211_v51 = vadd.f32 %v4680_v54, %v2406_v26  ;;  %v6213_v21 = vpop.f32.mrb[86].mxu1  ;;  %v2505_v26 = vsel %vm120_vm1, %v6263_v40, -inf  ;;  %v6278_v54 = vadd.f32 %v4689_v35, %v2400_v22 }
0x1036   :  { %v2410_v60 = vpop.f32.mrb[87].mxu1 }
0x1037   :  { %v2517_v48 = vsel %vm120_vm1, %v6211_v51, -inf }
0x1038   :  { %v2518_v30 = vmax.f32 %v6218_v17, %v2517_v48  ;;  %v6284_v48 = vadd.f32 %v4690_v53, %v6181_v62  ;;  %v4697_v53 = vld [vmem:[%s7002_s3 + $0xb8] sm:$0xff] }
0x103a   :  { %2519 = vmax.xlane.f32.xlu0 %v2518_v30 }
0x103b   :  { %v2414_v32 = vpop.f32.mrb[88].mxu1 }
0x103c   :  { %v2416_v36 = vpop.f32.mrb[89].mxu1  ;;  %v6233_v18 = vadd.f32 %v4683_v63, %v2414_v32 }
0x103d   :  { %v6226_v57 = vadd.f32 %v4682_v34, %v2416_v36  ;;  %v6228_v33 = vpop.f32.mrb[90].mxu1  ;;  %v2506_v36 = vmax.f32 %v6284_v48, %v2505_v26  ;;  %v4691_v34 = vld [vmem:[%s7002_s3 + $0xe8] sm:$0xff] }
0x103e   :  { %v2420_v56 = vpop.f32.mrb[91].mxu1 }
0x103f   :  { %v2525_v55 = vsel %vm120_vm1, %v6226_v57, -inf }
0x1040   :  { %v2526_v49 = vmax.f32 %v6233_v18, %v2525_v55  ;;  %v2513_v55 = vsel %vm120_vm1, %v6278_v54, -inf }
0x1042   :  { %2527 = vmax.xlane.f32.xlu0 %v2526_v49  ;;  %v4692_v49 = vld [vmem:[%s7002_s3 + $0x78] sm:$0xff] }
0x1043   :  { %v2424_v47 = vpop.f32.mrb[92].mxu1  ;;  %v6297_v62 = vadd.f32 %v4692_v49, %v2410_v60  ;;  %v4699_v49 = vld [vmem:[%s7002_s3 + $0xd8] sm:$0xff] }
0x1044   :  { %v2426_v4 = vpop.f32.mrb[93].mxu1  ;;  %v6248_v44 = vadd.f32 %v4685_v11, %v2424_v47  ;;  %v4693_v47 = vld [vmem:[%s7002_s3 + $0xe0] sm:$0xff]  ;;  %v4694_v11 = vld [vmem:[%s7002_s3 + $0x50] sm:$0xff] }
0x1045   :  { %v6241_v20 = vadd.f32 %v4684_v38, %v2426_v4  ;;  %v6243_v15 = vpop.f32.mrb[94].mxu1 }
0x1046   :  { %v2430_v39 = vpop.f32.mrb[95].mxu1 }
0x1047   :  { %v2533_v3 = vsel %vm120_vm1, %v6241_v20, -inf }
0x1048   :  { %v2534_v42 = vmax.f32 %v6248_v44, %v2533_v3  ;;  %v6308_v3 = vadd.f32 %v4694_v11, %v6196_v8  ;;  %v4696_v8 = vld [vmem:[%s7002_s3 + $0x70] sm:$0xff] }
0x104a   :  { %2535 = vmax.xlane.f32.xlu0 %v2534_v42 }
0x104b   :  { %v2434_v5 = vpop.f32.mrb[96].mxu1 }
0x104c   :  { %v2436_v12 = vpop.f32.mrb[97].mxu1  ;;  %v6268_v24 = vadd.f32 %v4688_v23, %v2434_v5  ;;  %v2514_v5 = vmax.f32 %v6308_v3, %v2513_v55  ;;  %v6325_v23 = vadd.f32 %v4696_v8, %v6213_v21  ;;  %v4698_v21 = vld [vmem:[%s7002_s3 + $0x90] sm:$0xff] }
0x104d   :  { %v6256_v25 = vadd.f32 %v4686_v6, %v2436_v12  ;;  %v6258_v16 = vpop.f32.mrb[98].mxu1  ;;  %v2521_v12 = vsel %vm120_vm1, %v6297_v62, -inf  ;;  %v4695_v6 = vld [vmem:[%s7002_s3 + $0x98] sm:$0xff] }
0x104e   :  { %v2440_v31 = vpop.f32.mrb[99].mxu1  ;;  %v6319_v59 = vadd.f32 %v4695_v6, %v2420_v56  ;;  %v2522_v26 = vmax.f32 %v6325_v23, %v2521_v12 }
0x104f   :  { %v2541_v27 = vsel %vm120_vm1, %v6256_v25, -inf }
0x1050   :  { %v2542_v1 = vmax.f32 %v6268_v24, %v2541_v27  ;;  %v2529_v56 = vsel %vm120_vm1, %v6319_v59, -inf }
0x1052   :  { %2543 = vmax.xlane.f32.xlu0 %v2542_v1 }
0x1053   :  { %v2444_v30 = vpop.f32.mrb[100].mxu1 }
0x1054   :  { %v2446_v32 = vpop.f32.mrb[101].mxu1  ;;  %v6302_v4 = vadd.f32 %v4693_v47, %v2444_v30  ;;  %v6337_v30 = vadd.f32 %v4697_v53, %v2430_v39  ;;  %v6351_v39 = vadd.f32 %v4699_v49, %v2440_v31  ;;  %v4700_v47 = vld [vmem:[%s7002_s3 + $0xb0] sm:$0xff]  ;;  %v4701_v31 = vld [vmem:[%s7002_s3 + $0xf8] sm:$0xff] }
0x1055   :  { %v6290_v63 = vadd.f32 %v4691_v34, %v2446_v32  ;;  %v2448_v22 = vpop.f32.mrb[102].mxu1  ;;  %v6357_v11 = vadd.f32 %v4700_v47, %v6243_v15  ;;  %v4702_v15 = vld [vmem:[%s7002_s3 + $0xd0] sm:$0xff] }
0x1056   :  { %v2450_v38 = vpop.f32.mrb[103].mxu1  ;;  %v2537_v55 = vsel %vm120_vm1, %v6337_v30, -inf  ;;  %v2545_v12 = vsel %vm120_vm1, %v6351_v39, -inf }
0x1057   :  { %v2549_v42 = vsel %vm120_vm1, %v6290_v63, -inf  ;;  %2507 = vmax.xlane.f32.xlu1 %v2506_v36  ;;  %v6343_v36 = vadd.f32 %v4698_v21, %v6228_v33  ;;  %v6367_v6 = vadd.f32 %v4701_v31, %v2450_v38  ;;  %v4703_v21 = vld [vmem:[%s7002_s3 + $0x118] sm:$0xff] }
0x1058   :  { %v2550_v60 = vmax.f32 %v6302_v4, %v2549_v42 }
0x1059   :  { %v2530_v34 = vmax.f32 %v6343_v36, %v2529_v56  ;;  %v2553_v53 = vsel %vm120_vm1, %v6367_v6, -inf }
0x105a   :  { %2551 = vmax.xlane.f32.xlu0 %v2550_v60  ;;  %v2538_v60 = vmax.f32 %v6357_v11, %v2537_v55 }
0x105b   :  { %v6327_v27 = vpop.f32.mrb[104].mxu1  ;;  %2515 = vmax.xlane.f32.xlu1 %v2514_v5 }
0x105c   :  { %v6329_v1 = vpop.f32.mrb[105].mxu1 }
0x105d   :  { %v2458_v35 = vpop.f32.mrb[106].mxu1 }
0x105e   :  { %v2460_v32 = vpop.f32.mrb[107].mxu1 }
0x105f   :  { %2523 = vmax.xlane.f32.xlu1 %v2522_v26  ;;  %v6373_v26 = vadd.f32 %v4702_v15, %v6258_v16  ;;  %v6381_v38 = vadd.f32 %v4703_v21, %v2460_v32  ;;  %v4705_v32 = vld [vmem:[%s7002_s3 + $0x138] sm:$0xff] }
0x1061   :  { %v2546_v56 = vmax.f32 %v6373_v26, %v2545_v12  ;;  %v2561_v12 = vsel %vm120_vm1, %v6381_v38, -inf }
0x1063   :  { %v6359_v33 = vpop.f32.mrb[108].mxu1  ;;  %2531 = vmax.xlane.f32.xlu1 %v2530_v34  ;;  %v4704_v34 = vld [vmem:[%s7002_s3 + $0xf0] sm:$0xff] }
0x1064   :  { %v2466_v42 = vpop.f32.mrb[109].mxu1  ;;  %v6386_v55 = vadd.f32 %v4704_v34, %v2448_v22  ;;  %v4706_v22 = vld [vmem:[%s7002_s3 + $0x110] sm:$0xff] }
0x1065   :  { %v2468_v5 = vpop.f32.mrb[110].mxu1  ;;  %v6399_v21 = vadd.f32 %v4706_v22, %v2458_v35  ;;  %v4708_v35 = vld [vmem:[%s7002_s3 + $0x130] sm:$0xff] }
0x1066   :  { %v2470_v8 = vpop.f32.mrb[111].mxu1  ;;  %v2554_v47 = vmax.f32 %v6386_v55, %v2553_v53 }
0x1067   :  { %2539 = vmax.xlane.f32.xlu1 %v2538_v60  ;;  %v6394_v31 = vadd.f32 %v4705_v32, %v2470_v8  ;;  %v4707_v8 = vld [vmem:[%s7002_s3 + $0x148] sm:$0xff]  ;;  %v6414_v32 = vadd.f32 %v4708_v35, %v2468_v5  ;;  %v4710_v5 = vld [vmem:[%s7002_s3 + $0x140] sm:$0xff] }
0x1069   :  { %v2569_v53 = vsel %vm120_vm1, %v6394_v31, -inf }
0x106b   :  { %v2474_v16 = vpop.f32.mrb[112].mxu1  ;;  %2547 = vmax.xlane.f32.xlu1 %v2546_v56  ;;  %v2562_v56 = vmax.f32 %v6399_v21, %v2561_v12  ;;  %v2570_v12 = vmax.f32 %v6414_v32, %v2569_v53 }
0x106c   :  { %v2476_v49 = vpop.f32.mrb[113].mxu1  ;;  %v6427_v35 = vadd.f32 %v4710_v5, %v2474_v16  ;;  %v4712_v16 = vld [vmem:[%s7002_s3 + $0x108] sm:$0xff] }
0x106d   :  { %v2478_v60 = vpop.f32.mrb[114].mxu1  ;;  %v6409_v34 = vadd.f32 %v4707_v8, %v2476_v49  ;;  %v4709_v49 = vld [vmem:[%s7002_s3 + $0x168] sm:$0xff] }
0x106e   :  { %v2480_v15 = vpop.f32.mrb[115].mxu1 }
0x106f   :  { %2555 = vmax.xlane.f32.xlu1 %v2554_v47  ;;  %v2573_v45 = vsel %vm120_vm1, %v6409_v34, -inf }
0x1070   :  { %2943 = vrot.lane.b32.xlu0 %v6052_v41, %s4751_s25 }
0x1073   :  { %v2484_v47 = vpop.f32.mrb[116].mxu1  ;;  %2563 = vmax.xlane.f32.xlu1 %v2562_v56  ;;  %v2574_v56 = vmax.f32 %v6427_v35, %v2573_v45 }
0x1074   :  { %v2486_v41 = vpop.f32.mrb[117].mxu1  ;;  %v6435_v61 = vadd.f32 %v4711_v46, %v2484_v47  ;;  %v4714_v47 = vld [vmem:[%s7002_s3 + $0x100] sm:$0xff] }
0x1075   :  { %v2488_v22 = vpop.f32.mrb[118].mxu1  ;;  %v6422_v8 = vadd.f32 %v4709_v49, %v2486_v41  ;;  %v4713_v49 = vld [vmem:[%s7002_s3 + $0x128] sm:$0xff]  ;;  %v6455_v5 = vadd.f32 %v4714_v47, %v6327_v27 }
0x1076   :  { %v2490_v2 = vpop.f32.mrb[119].mxu1  ;;  %7079 = vst [vmem:[#allocation8_spill] sm:$0xff] %v6435_v61  ;;  %v6449_v46 = vadd.f32 %v4713_v49, %v2466_v42  ;;  %v4716_v42 = vld [vmem:[%s7002_s3 + $0x120] sm:$0xff]  ;;  %v4717_v49 = vld [vmem:[%s7002_s3 + $0x178] sm:$0xff] }
0x1077   :  { %2571 = vmax.xlane.f32.xlu1 %v2570_v12  ;;  %v2581_v53 = vsel %vm120_vm1, %v6422_v8, -inf  ;;  %v6442_v12 = vadd.f32 %v4712_v16, %v6329_v1  ;;  %v6469_v16 = vadd.f32 %v4716_v42, %v6359_v33  ;;  %v6477_v47 = vadd.f32 %v4717_v49, %v2490_v2 }
0x1078   :  { %v2582_v41 = vmax.f32 %v6435_v61, %v2581_v53  ;;  %v2565_v1 = vsel %vm120_vm1, %v6449_v46, -inf  ;;  %v4715_v53 = vld [vmem:[%s7002_s3 + $0x158] sm:$0xff] }
0x1079   :  { %v2557_v45 = vsel %vm120_vm1, %v6442_v12, -inf  ;;  %v2566_v27 = vmax.f32 %v6469_v16, %v2565_v1  ;;  %v4719_v1 = vld [vmem:[%s7002_s3 + $0x170] sm:$0xff] }
0x107a   :  { %v6490_v42 = vadd.f32 %v4719_v1, %v2488_v22 }
0x107b   :  { %2575 = vmax.xlane.f32.xlu1 %v2574_v56  ;;  %v2558_v56 = vmax.f32 %v6455_v5, %v2557_v45 }
0x107f   :  { %2583 = vmax.xlane.f32.xlu1 %v2582_v41  ;;  %v6463_v41 = vadd.f32 %v4715_v53, %v2480_v15  ;;  %v4718_v15 = vld [vmem:[%s7002_s3 + $0x150] sm:$0xff] }
0x1080   :  { %v6482_v53 = vadd.f32 %v4718_v15, %v2478_v60 }
0x1081   :  { %v2577_v45 = vsel %vm120_vm1, %v6463_v41, -inf }
0x1082   :  { %v2578_v33 = vmax.f32 %v6482_v53, %v2577_v45 }
0x108f   :  { %2559 = vmax.xlane.f32.xlu0 %v2558_v56  ;;  %v2585_v56 = vsel %vm120_vm1, %v6477_v47, -inf }
0x1090   :  { %v2586_v2 = vmax.f32 %v6490_v42, %v2585_v56 }
0x1093   :  { %2567 = vmax.xlane.f32.xlu0 %v2566_v27 }
0x1097   :  { %2579 = vmax.xlane.f32.xlu0 %v2578_v33 }
0x109b   :  { %2587 = vmax.xlane.f32.xlu0 %v2586_v2 }
0x10af   :  { %v2496_v49 = vpop.xlane.xlu1 %2495 }
0x10b0   :  { %v2589_v60 = vsub.f32 %v6158_v28, %v2496_v49  ;;  %v2590_v27 = vsub.f32 %v6153_v37, %v2496_v49 }
0x10b1   :  { %v2500_v15 = vpop.xlane.xlu0 %2499 }
0x10b2   :  { %v2637_v45 = vmul.f32 1.442695, %v2589_v60  ;;  %v2639_v10 = vmul.f32 1.442695, %v2590_v27  ;;  %v2591_v29 = vsub.f32 %v6171_v58, %v2500_v15  ;;  %v2592_v7 = vsub.f32 %v6165_v50, %v2500_v15 }
0x10b3   :  { %v2942_v61 = vpop.permute.xlu1 %2941 }
0x10b4   :  { %4502 = vpow2.f32 %v2637_v45  ;;  %v2641_v22 = vmul.f32 1.442695, %v2591_v29  ;;  %v2643_v1 = vmul.f32 1.442695, %v2592_v7  ;;  %3014 = vmatpush1.bf16.msra.mxu0 %v2942_v61 }
0x10b5   :  { %4504 = vpow2.f32 %v2639_v10  ;;  %3015 = vmatprep.subr.bf16.mxu0 %v7062_v14 }
0x10b6   :  { %4506 = vpow2.f32 %v2643_v1 }
0x10b7   :  { %v2504_v33 = vpop.xlane.xlu0 %2503  ;;  %4508 = vpow2.f32 %v2641_v22 }
0x10b8   :  { %v2593_v37 = vsub.f32 %v6186_v9, %v2504_v33  ;;  %v2594_v28 = vsub.f32 %v6179_v43, %v2504_v33 }
0x10ba   :  { %v2645_v56 = vmul.f32 1.442695, %v2593_v37  ;;  %v2647_v2 = vmul.f32 1.442695, %v2594_v28 }
0x10bc   :  { %4510 = vpow2.f32 %v2645_v56 }
0x10bd   :  { %4512 = vpow2.f32 %v2647_v2 }
0x10be   :  { %v6500_v50 = vpop.eup %4502 }
0x10bf   :  { %v6502_v58 = vpop.eup %4504  ;;  %v2512_v7 = vpop.xlane.xlu0 %2511 }
0x10c0   :  { %v2597_v29 = vsub.f32 %v6201_v52, %v2512_v7  ;;  %v2598_v10 = vsub.f32 %v6194_v13, %v2512_v7  ;;  %v2733_v61 = vsel %vm120_vm1, %v6502_v58, 0.0  ;;  %v6508_v49 = vpop.eup %4506 }
0x10c1   :  { %v2734_v43 = vadd.f32 %v6500_v50, %v2733_v61  ;;  %v6511_v9 = vpop.eup %4508  ;;  %v2737_v15 = vsel %vm120_vm1, %v6508_v49, 0.0 }
0x10c2   :  { %v2653_v60 = vmul.f32 1.442695, %v2597_v29  ;;  %v2655_v27 = vmul.f32 1.442695, %v2598_v10  ;;  %v2738_v52 = vadd.f32 %v6511_v9, %v2737_v15 }
0x10c3   :  { %2735 = vadd.xlane.f32.xlu1 %v2734_v43 }
0x10c4   :  { %4514 = vpow2.f32 %v2653_v60 }
0x10c5   :  { %4516 = vpow2.f32 %v2655_v27 }
0x10c6   :  { %v6516_v13 = vpop.eup %4510 }
0x10c7   :  { %v6518_v45 = vpop.eup %4512  ;;  %2739 = vadd.xlane.f32.xlu1 %v2738_v52  ;;  %v2520_v22 = vpop.xlane.xlu0 %2519 }
0x10c8   :  { %v2601_v1 = vsub.f32 %v6218_v17, %v2520_v22  ;;  %v2602_v33 = vsub.f32 %v6211_v51, %v2520_v22  ;;  %v2741_v37 = vsel %vm120_vm1, %v6518_v45, 0.0 }
0x10c9   :  { %v2742_v28 = vadd.f32 %v6516_v13, %v2741_v37 }
0x10ca   :  { %v2661_v56 = vmul.f32 1.442695, %v2601_v1  ;;  %v2663_v2 = vmul.f32 1.442695, %v2602_v33 }
0x10cb   :  { %2743 = vadd.xlane.f32.xlu0 %v2742_v28 }
0x10cc   :  { %4518 = vpow2.f32 %v2661_v56 }
0x10cd   :  { %4520 = vpow2.f32 %v2663_v2 }
0x10ce   :  { %v6525_v7 = vpop.eup %4514 }
0x10cf   :  { %v6527_v29 = vpop.eup %4516  ;;  %v2528_v27 = vpop.xlane.xlu0 %2527 }
0x10d0   :  { %v2749_v10 = vsel %vm120_vm1, %v6527_v29, 0.0 }
0x10d1   :  { %v2750_v17 = vadd.f32 %v6525_v7, %v2749_v10 }
0x10d3   :  { %2751 = vadd.xlane.f32.xlu0 %v2750_v17 }
0x10d6   :  { %v6532_v51 = vpop.eup %4518 }
0x10d7   :  { %7080 = vst [vmem:[#allocation9_spill] sm:$0xff] %v6532_v51  ;;  %v6534_v61 = vpop.eup %4520  ;;  %v6539_v15 = vpop.xlane.xlu0 %2535 }
0x10d8   :  { %7081 = vst [vmem:[#allocation10_spill] sm:$0xff] %v6534_v61  ;;  %v2757_v43 = vsel %vm120_vm1, %v6534_v61, 0.0 }
0x10d9   :  { %v2758_v60 = vadd.f32 %v6532_v51, %v2757_v43 }
0x10db   :  { %2759 = vadd.xlane.f32.xlu0 %v2758_v60 }
0x10df   :  { %v6541_v52 = vpop.xlane.xlu0 %2543 }
0x10e4   :  { %v2508_v22 = vpop.xlane.xlu1 %2507 }
0x10e5   :  { %v2595_v1 = vsub.f32 %v6284_v48, %v2508_v22  ;;  %v2596_v33 = vsub.f32 %v6263_v40, %v2508_v22 }
0x10e7   :  { %v2649_v37 = vmul.f32 1.442695, %v2595_v1  ;;  %v2651_v28 = vmul.f32 1.442695, %v2596_v33  ;;  %v6545_v56 = vpop.xlane.xlu0 %2551 }
0x10e8   :  { %v2516_v2 = vpop.xlane.xlu1 %2515 }
0x10e9   :  { %4522 = vpow2.f32 %v2649_v37  ;;  %v2599_v10 = vsub.f32 %v6308_v3, %v2516_v2  ;;  %v2600_v17 = vsub.f32 %v6278_v54, %v2516_v2 }
0x10ea   :  { %4524 = vpow2.f32 %v2651_v28 }
0x10eb   :  { %v2657_v43 = vmul.f32 1.442695, %v2599_v10  ;;  %v2659_v60 = vmul.f32 1.442695, %v2600_v17  ;;  %v2944_v51 = vpop.permute.xlu0 %2943 }
0x10ec   :  { %3016 = vmatpush1.bf16.msra.mxu0 %v2944_v51  ;;  %v2524_v61 = vpop.xlane.xlu1 %2523 }
0x10ed   :  { %3017 = vmatprep.subr.bf16.mxu0 %v7062_v14  ;;  %4526 = vpow2.f32 %v2657_v43 }
0x10ee   :  { %4528 = vpow2.f32 %v2659_v60 }
0x10f0   :  { %v2532_v40 = vpop.xlane.xlu1 %2531 }
0x10f1   :  { %2947 = vrot.lane.b32.xlu0 %v6061_v0, %s4751_s25 }
0x10f3   :  { %v6552_v48 = vpop.eup %4522 }
0x10f4   :  { %v6554_v22 = vpop.eup %4524  ;;  %v6556_v3 = vpop.xlane.xlu1 %2539 }
0x10f5   :  { %v2745_v54 = vsel %vm120_vm1, %v6554_v22, 0.0 }
0x10f6   :  { %v2746_v51 = vadd.f32 %v6552_v48, %v2745_v54 }
0x10f7   :  { %v6561_v1 = vpop.eup %4526 }
0x10f8   :  { %2747 = vadd.xlane.f32.xlu1 %v2746_v51  ;;  %v2548_v33 = vpop.xlane.xlu1 %2547  ;;  %v6563_v37 = vpop.eup %4528 }
0x10f9   :  { %v2615_v28 = vsub.f32 %v6373_v26, %v2548_v33  ;;  %v2616_v0 = vsub.f32 %v6351_v39, %v2548_v33  ;;  %v2753_v2 = vsel %vm120_vm1, %v6563_v37, 0.0  ;;  %v2604_v26 = vsub.f32 %v6297_v62, %v2524_v61 }
0x10fa   :  { %v2754_v17 = vadd.f32 %v6561_v1, %v2753_v2  ;;  %v2603_v33 = vsub.f32 %v6325_v23, %v2524_v61  ;;  %v2607_v62 = vsub.f32 %v6343_v36, %v2532_v40  ;;  %v2612_v36 = vsub.f32 %v6337_v30, %v6556_v3 }
0x10fb   :  { %v2691_v10 = vmul.f32 1.442695, %v2616_v0  ;;  %v2689_v43 = vmul.f32 1.442695, %v2615_v28  ;;  %v2606_v28 = vsub.f32 %v6226_v57, %v2528_v27  ;;  %v2667_v0 = vmul.f32 1.442695, %v2604_v26 }
0x10fc   :  { %2755 = vadd.xlane.f32.xlu1 %v2754_v17  ;;  %v2665_v17 = vmul.f32 1.442695, %v2603_v33  ;;  %v2610_v57 = vsub.f32 %v6241_v20, %v6539_v15  ;;  %v2614_v30 = vsub.f32 %v6256_v25, %v6541_v52 }
0x10fd   :  { %4530 = vpow2.f32 %v2691_v10  ;;  %v2605_v10 = vsub.f32 %v6233_v18, %v2528_v27  ;;  %v2609_v27 = vsub.f32 %v6248_v44, %v6539_v15  ;;  %v2611_v44 = vsub.f32 %v6357_v11, %v6556_v3 }
0x10fe   :  { %4532 = vpow2.f32 %v2689_v43  ;;  %v2671_v43 = vmul.f32 1.442695, %v2606_v28  ;;  %v2679_v28 = vmul.f32 1.442695, %v2610_v57  ;;  %v2613_v11 = vsub.f32 %v6268_v24, %v6541_v52  ;;  %v2556_v57 = vpop.xlane.xlu1 %2555 }
0x10ff   :  { %4534 = vpow2.f32 %v2667_v0  ;;  %v2681_v3 = vmul.f32 1.442695, %v2611_v44  ;;  %v2617_v52 = vsub.f32 %v6302_v4, %v6545_v56 }
0x1100   :  { %4536 = vpow2.f32 %v2665_v17  ;;  %v2685_v24 = vmul.f32 1.442695, %v2613_v11 }
0x1101   :  { %4538 = vpow2.f32 %v2671_v43  ;;  %v2687_v43 = vmul.f32 1.442695, %v2614_v30 }
0x1107   :  { %v6570_v60 = vpop.eup %4530 }
0x1108   :  { %7082 = vst [vmem:[#allocation14_spill] sm:$0xff] %v6570_v60  ;;  %v6572_v54 = vpop.eup %4532  ;;  %v2785_v51 = vsel %vm120_vm1, %v6570_v60, 0.0  ;;  %v2608_v60 = vsub.f32 %v6319_v59, %v2532_v40  ;;  %v2673_v59 = vmul.f32 1.442695, %v2607_v62 }
0x1109   :  { %v2786_v39 = vadd.f32 %v6572_v54, %v2785_v51  ;;  %v2669_v51 = vmul.f32 1.442695, %v2605_v10  ;;  %v2683_v10 = vmul.f32 1.442695, %v2612_v36 }
0x110a   :  { %v2675_v23 = vmul.f32 1.442695, %v2608_v60  ;;  %v6599_v60 = vpop.eup %4534 }
0x110b   :  { %4540 = vpow2.f32 %v2669_v51  ;;  %v6605_v17 = vpop.eup %4536  ;;  %v2618_v51 = vsub.f32 %v6290_v63, %v6545_v56 }
0x110c   :  { %4542 = vpow2.f32 %v2675_v23 }
0x110d   :  { %2945 = vrot.lane.b32.xlu1 %v6059_v19, %s4751_s25 }
0x1110   :  { %2787 = vadd.xlane.f32.xlu0 %v2786_v39 }
0x111c   :  { %v6582_v2 = vpop.xlane.xlu0 %2559 }
0x111d   :  { %v2622_v44 = vsub.f32 %v6442_v12, %v6582_v2  ;;  %v2621_v12 = vsub.f32 %v6455_v5, %v6582_v2 }
0x111f   :  { %v2701_v5 = vmul.f32 1.442695, %v2621_v12 }
0x1120   :  { %v6586_v19 = vpop.xlane.xlu0 %2567 }
0x1124   :  { %v2580_v61 = vpop.xlane.xlu0 %2579 }
0x1125   :  { %v2631_v39 = vsub.f32 %v6482_v53, %v2580_v61  ;;  %v2632_v18 = vsub.f32 %v6463_v41, %v2580_v61  ;;  %v2677_v41 = vmul.f32 1.442695, %v2609_v27  ;;  %v2620_v27 = vsub.f32 %v6367_v6, %v2556_v57 }
0x1126   :  { %v2619_v6 = vsub.f32 %v6386_v55, %v2556_v57 }
0x1127   :  { %v2721_v26 = vmul.f32 1.442695, %v2631_v39  ;;  %v2723_v33 = vmul.f32 1.442695, %v2632_v18  ;;  %v2695_v18 = vmul.f32 1.442695, %v2618_v51 }
0x1128   :  { %v2588_v40 = vpop.xlane.xlu0 %2587  ;;  %v2697_v11 = vmul.f32 1.442695, %v2619_v6 }
0x1129   :  { %4544 = vpow2.f32 %v2721_v26  ;;  %v2635_v20 = vsub.f32 %v6490_v42, %v2588_v40  ;;  %v2636_v53 = vsub.f32 %v6477_v47, %v2588_v40  ;;  %v2761_v47 = vsel %vm120_vm1, %v6599_v60, 0.0  ;;  %v6609_v42 = vpop.eup %4538 }
0x112a   :  { %4546 = vpow2.f32 %v2723_v33  ;;  %v2762_v25 = vadd.f32 %v6605_v17, %v2761_v47  ;;  %v6616_v62 = vpop.eup %4540  ;;  %v2765_v23 = vsel %vm120_vm1, %v6609_v42, 0.0  ;;  %v2693_v40 = vmul.f32 1.442695, %v2617_v52 }
0x112b   :  { %4548 = vpow2.f32 %v2673_v59  ;;  %v2729_v15 = vmul.f32 1.442695, %v2635_v20  ;;  %v2731_v0 = vmul.f32 1.442695, %v2636_v53  ;;  %v6620_v61 = vpop.eup %4542  ;;  %v2766_v59 = vadd.f32 %v6616_v62, %v2765_v23  ;;  %v2564_v20 = vpop.xlane.xlu1 %2563 }
0x112c   :  { %4550 = vpow2.f32 %v2679_v28  ;;  %v2769_v28 = vsel %vm120_vm1, %v6620_v61, 0.0  ;;  %v2623_v52 = vsub.f32 %v6399_v21, %v2564_v20  ;;  %v2625_v21 = vsub.f32 %v6469_v16, %v6586_v19 }
0x112d   :  { %4552 = vpow2.f32 %v2729_v15 }
0x112e   :  { %4554 = vpow2.f32 %v2731_v0 }
0x112f   :  { %4556 = vpow2.f32 %v2677_v41  ;;  %v2699_v41 = vmul.f32 1.442695, %v2620_v27  ;;  %v2572_v57 = vpop.xlane.xlu1 %2571 }
0x1130   :  { %4558 = vpow2.f32 %v2683_v10 }
0x1131   :  { %2763 = vadd.xlane.f32.xlu1 %v2762_v25  ;;  %4560 = vpow2.f32 %v2681_v3  ;;  %v2624_v3 = vsub.f32 %v6381_v38, %v2564_v20  ;;  %v2626_v38 = vsub.f32 %v6449_v46, %v6586_v19 }
0x1132   :  { %4562 = vpow2.f32 %v2687_v43  ;;  %v2703_v43 = vmul.f32 1.442695, %v2622_v44 }
0x1133   :  { %v6622_v39 = vpop.eup %4544  ;;  %4564 = vpow2.f32 %v2685_v24  ;;  %v2707_v2 = vmul.f32 1.442695, %v2624_v3  ;;  %v2711_v46 = vmul.f32 1.442695, %v2626_v38 }
0x1134   :  { %v6626_v63 = vpop.eup %4546  ;;  %4566 = vpow2.f32 %v2695_v18 }
0x1135   :  { %v6630_v26 = vpop.eup %4548  ;;  %v2817_v33 = vsel %vm120_vm1, %v6626_v63, 0.0  ;;  %2767 = vadd.xlane.f32.xlu1 %v2766_v59  ;;  %4568 = vpow2.f32 %v2693_v40  ;;  %v2628_v40 = vsub.f32 %v6394_v31, %v2572_v57 }
0x1136   :  { %v6636_v36 = vpop.eup %4550  ;;  %v2818_v4 = vadd.f32 %v6622_v39, %v2817_v33  ;;  %v2770_v15 = vadd.f32 %v6630_v26, %v2769_v28  ;;  %4570 = vpow2.f32 %v2699_v41  ;;  %v2705_v28 = vmul.f32 1.442695, %v2623_v52 }
0x1137   :  { %v6639_v56 = vpop.eup %4552  ;;  %v2773_v10 = vsel %vm120_vm1, %v6636_v36, 0.0  ;;  %4572 = vpow2.f32 %v2697_v11 }
0x1138   :  { %v6642_v53 = vpop.eup %4554  ;;  %2819 = vadd.xlane.f32.xlu0 %v2818_v4  ;;  %4574 = vpow2.f32 %v2703_v43  ;;  %v2576_v4 = vpop.xlane.xlu1 %2575 }
0x1139   :  { %v6647_v0 = vpop.eup %4556  ;;  %v2825_v30 = vsel %vm120_vm1, %v6642_v53, 0.0  ;;  %2771 = vadd.xlane.f32.xlu1 %v2770_v15  ;;  %4576 = vpow2.f32 %v2701_v5  ;;  %v2627_v15 = vsub.f32 %v6414_v32, %v2572_v57  ;;  %v2630_v16 = vsub.f32 %v6409_v34, %v2576_v4 }
0x113a   :  { %v6653_v55 = vpop.eup %4558  ;;  %v2826_v47 = vadd.f32 %v6639_v56, %v2825_v30  ;;  %v2774_v51 = vadd.f32 %v6647_v0, %v2773_v10  ;;  %4578 = vpow2.f32 %v2707_v2  ;;  %v2709_v30 = vmul.f32 1.442695, %v2625_v21 }
0x113b   :  { %v6660_v25 = vpop.eup %4560  ;;  %v2777_v23 = vsel %vm120_vm1, %v6653_v55, 0.0  ;;  %4580 = vpow2.f32 %v2705_v28  ;;  %v2715_v10 = vmul.f32 1.442695, %v2628_v40  ;;  %v2629_v3 = vsub.f32 %v6427_v35, %v2576_v4  ;;  %v7083_v35 = vld [vmem:[#allocation8_spill] sm:$0xff] }
0x113c   :  { %2827 = vadd.xlane.f32.xlu0 %v2826_v47  ;;  %v6664_v24 = vpop.eup %4562  ;;  %v2778_v18 = vadd.f32 %v6660_v25, %v2777_v23  ;;  %4582 = vpow2.f32 %v2711_v46  ;;  %v2584_v47 = vpop.xlane.xlu1 %2583  ;;  %v2713_v43 = vmul.f32 1.442695, %v2627_v15  ;;  %v2719_v32 = vmul.f32 1.442695, %v2630_v16 }
0x113d   :  { %2775 = vadd.xlane.f32.xlu1 %v2774_v51  ;;  %v6670_v27 = vpop.eup %4564  ;;  %v2781_v59 = vsel %vm120_vm1, %v6664_v24, 0.0  ;;  %4584 = vpow2.f32 %v2709_v30  ;;  %v2634_v34 = vsub.f32 %v6422_v8, %v2584_v47  ;;  %v2717_v5 = vmul.f32 1.442695, %v2629_v3 }
0x113e   :  { %v6674_v33 = vpop.eup %4566  ;;  %v2782_v6 = vadd.f32 %v6670_v27, %v2781_v59  ;;  %4586 = vpow2.f32 %v2715_v10  ;;  %v2633_v2 = vsub.f32 %v7083_v35, %v2584_v47 }
0x113f   :  { %v6680_v20 = vpop.eup %4568  ;;  %v2789_v41 = vsel %vm120_vm1, %v6674_v33, 0.0  ;;  %4588 = vpow2.f32 %v2713_v43  ;;  %v2727_v38 = vmul.f32 1.442695, %v2634_v34 }
0x1140   :  { %v6684_v44 = vpop.eup %4570  ;;  %v2790_v31 = vadd.f32 %v6680_v20, %v2789_v41  ;;  %4590 = vpow2.f32 %v2719_v32  ;;  %v2725_v21 = vmul.f32 1.442695, %v2633_v2 }
0x1141   :  { %2779 = vadd.xlane.f32.xlu1 %v2778_v18  ;;  %v6689_v19 = vpop.eup %4572  ;;  %v2793_v11 = vsel %vm120_vm1, %v6684_v44, 0.0  ;;  %4592 = vpow2.f32 %v2717_v5 }
0x1142   :  { %v6693_v12 = vpop.eup %4574  ;;  %v2794_v51 = vadd.f32 %v6689_v19, %v2793_v11 }
0x1143   :  { %v6698_v57 = vpop.eup %4576  ;;  %v2797_v23 = vsel %vm120_vm1, %v6693_v12, 0.0 }
0x1144   :  { %v6702_v52 = vpop.eup %4578  ;;  %v2798_v59 = vadd.f32 %v6698_v57, %v2797_v23 }
0x1145   :  { %2783 = vadd.xlane.f32.xlu1 %v2782_v6  ;;  %v6706_v8 = vpop.eup %4580  ;;  %v2801_v28 = vsel %vm120_vm1, %v6702_v52, 0.0 }
0x1146   :  { %v6710_v4 = vpop.eup %4582  ;;  %v2802_v46 = vadd.f32 %v6706_v8, %v2801_v28 }
0x1147   :  { %v6713_v6 = vpop.eup %4584  ;;  %v2805_v41 = vsel %vm120_vm1, %v6710_v4, 0.0 }
0x1148   :  { %v6717_v15 = vpop.eup %4586  ;;  %v2806_v30 = vadd.f32 %v6713_v6, %v2805_v41 }
0x1149   :  { %2791 = vadd.xlane.f32.xlu1 %v2790_v31  ;;  %v6720_v10 = vpop.eup %4588  ;;  %v2809_v16 = vsel %vm120_vm1, %v6717_v15, 0.0 }
0x114a   :  { %v6724_v31 = vpop.eup %4590  ;;  %v2810_v11 = vadd.f32 %v6720_v10, %v2809_v16 }
0x114b   :  { %v6726_v47 = vpop.eup %4592  ;;  %v2813_v43 = vsel %vm120_vm1, %v6724_v31, 0.0 }
0x114d   :  { %2795 = vadd.xlane.f32.xlu1 %v2794_v51  ;;  %v2814_v51 = vadd.f32 %v6726_v47, %v2813_v43 }
0x1150   :  { %v2736_v18 = vpop.xlane.xlu1 %2735 }
0x1151   :  { %2799 = vadd.xlane.f32.xlu1 %v2798_v59  ;;  %4594 = vrcp.f32 %v2736_v18 }
0x1152   :  { %4596 = vpow2.f32 %v2727_v38 }
0x1154   :  { %v2740_v40 = vpop.xlane.xlu1 %2739 }
0x1155   :  { %4598 = vrcp.f32 %v2740_v40  ;;  %2803 = vadd.xlane.f32.xlu1 %v2802_v46 }
0x1156   :  { %4600 = vpow2.f32 %v2725_v21 }
0x1158   :  { %v2744_v59 = vpop.xlane.xlu0 %2743 }
0x1159   :  { %2807 = vadd.xlane.f32.xlu1 %v2806_v30  ;;  %4602 = vrcp.f32 %v2744_v59 }
0x115b   :  { %v4595_v3 = vpop.eup %4594 }
0x115c   :  { %v6731_v32 = vpop.eup %4596  ;;  %v2854_v23 = vmul.f32 %v4595_v3, %v6502_v58  ;;  %v2853_v43 = vmul.f32 %v4595_v3, %v6500_v50 }
0x115d   :  { %2811 = vadd.xlane.f32.xlu1 %v2810_v11  ;;  %v2821_v2 = vsel %vm120_vm1, %v6731_v32, 0.0 }
0x115f   :  { %v4599_v34 = vpop.eup %4598 }
0x1160   :  { %v2856_v5 = vmul.f32 %v4599_v34, %v6508_v49  ;;  %v6736_v35 = vpop.eup %4600  ;;  %v2752_v21 = vpop.xlane.xlu0 %2751  ;;  %v2855_v30 = vmul.f32 %v4599_v34, %v6511_v9 }
0x1161   :  { %2815 = vadd.xlane.f32.xlu1 %v2814_v51  ;;  %v2822_v18 = vadd.f32 %v6736_v35, %v2821_v2  ;;  %v7084_v2 = vmov 0.0  }
0x1162   :  { %v2902_v38 = vpack.c.bf16 %v2856_v5, %v2854_v23  ;;  %v2901_v5 = vpack.c.bf16 %v2855_v30, %v2853_v43  ;;  %v7086_v30 = vld [vmem:[#allocation9_spill] sm:$0xff] }
0x1163   :  { %v4603_v49 = vpop.eup %4602 }
0x1164   :  { %3819 = vmatprep.mubr.msk.bf16.mxu0 %vm120_vm1, %v2902_v38  ;;  %v2858_v16 = vmul.f32 %v4603_v49, %v6518_v45  ;;  %v2857_v45 = vmul.f32 %v4603_v49, %v6516_v13  ;;  %v7085_v49 = vld [vmem:[#allocation10_spill] sm:$0xff] }
0x1165   :  { %2823 = vadd.xlane.f32.xlu1 %v2822_v18 }
0x1168   :  { %v2760_v40 = vpop.xlane.xlu0 %2759 }
0x116c   :  { %v2948_v51 = vpop.permute.xlu0 %2947 }
0x1185   :  { %v2748_v28 = vpop.xlane.xlu1 %2747 }
0x1186   :  { %4604 = vrcp.f32 %v2748_v28 }
0x1189   :  { %v2756_v58 = vpop.xlane.xlu1 %2755 }
0x118a   :  { %4606 = vrcp.f32 %v2756_v58 }
0x118b   :  { %4608 = vrcp.f32 %v2752_v21 }
0x118c   :  { %4610 = vrcp.f32 %v2760_v40 }
0x118d   :  { %v2946_v46 = vpop.permute.xlu1 %2945 }
0x118e   :  { %3018 = vmatpush1.bf16.msra.mxu0 %v2946_v46 }
0x118f   :  { %3019 = vmatprep.subr.bf16.mxu0 %v7062_v14 }
0x1190   :  { %v4605_v41 = vpop.eup %4604 }
0x1191   :  { %v2860_v11 = vmul.f32 %v4605_v41, %v6554_v22  ;;  %v2859_v9 = vmul.f32 %v4605_v41, %v6552_v48 }
0x1192   :  { %3020 = vmatpush1.bf16.msra.mxu0 %v2948_v51 }
0x1193   :  { %v2904_v23 = vpack.c.bf16 %v2860_v11, %v2858_v16  ;;  %4031 = vmatprep.subr.bf16.mxu0 %v7084_v2  ;;  %v2903_v50 = vpack.c.bf16 %v2859_v9, %v2857_v45 }
0x1194   :  { %v4607_v38 = vpop.eup %4606 }
0x1195   :  { %3030 = vmatmul.mubr.bf16.vlgmr.msra.gmra.mrb[96].mxu0 %v2901_v5  ;;  %v4609_v18 = vpop.eup %4608  ;;  %v2864_v14 = vmul.f32 %v4607_v38, %v6563_v37  ;;  %v2863_v34 = vmul.f32 %v4607_v38, %v6561_v1 }
0x1196   :  { %3820 = vmatprep.mubr.msk.bf16.mxu0 %vm120_vm1, %v2904_v23  ;;  %v2862_v22 = vmul.f32 %v4609_v18, %v6527_v29  ;;  %v2861_v59 = vmul.f32 %v4609_v18, %v6525_v7  ;;  %v4611_v13 = vpop.eup %4610 }
0x1197   :  { %v2866_v46 = vmul.f32 %v4611_v13, %v7085_v49  ;;  %v2865_v1 = vmul.f32 %v4611_v13, %v7086_v30  ;;  %v7087_v13 = vld [vmem:[#allocation14_spill] sm:$0xff] }
0x1198   :  { %v2906_v3 = vpack.c.bf16 %v2864_v14, %v2862_v22  ;;  %v2905_v28 = vpack.c.bf16 %v2863_v34, %v2861_v59 }
0x119d   :  { %3038 = vmatmul.mubr.bf16.gmra.mrb[100].mxu0 %v2903_v50  ;;  %v2788_v40 = vpop.xlane.xlu0 %2787 }
0x119e   :  { %3821 = vmatprep.mubr.msk.bf16.mxu0 %vm120_vm1, %v2906_v3 }
0x11a5   :  { %3046 = vmatmul.mubr.bf16.gmra.mrb[104].mxu0 %v2905_v28 }
0x11be   :  { %v2764_v21 = vpop.xlane.xlu1 %2763 }
0x11bf   :  { %4612 = vrcp.f32 %v2764_v21 }
0x11c2   :  { %v2768_v48 = vpop.xlane.xlu1 %2767 }
0x11c3   :  { %4614 = vrcp.f32 %v2768_v48 }
0x11c6   :  { %v2772_v37 = vpop.xlane.xlu1 %2771 }
0x11c7   :  { %4616 = vrcp.f32 %v2772_v37 }
0x11c9   :  { %v4613_v29 = vpop.eup %4612 }
0x11ca   :  { %v2776_v58 = vpop.xlane.xlu1 %2775  ;;  %v2868_v41 = vmul.f32 %v4613_v29, %v6599_v60  ;;  %v2867_v7 = vmul.f32 %v4613_v29, %v6605_v17 }
0x11cb   :  { %4618 = vrcp.f32 %v2776_v58 }
0x11cc   :  { %v2908_v16 = vpack.c.bf16 %v2868_v41, %v2866_v46  ;;  %v2907_v11 = vpack.c.bf16 %v2867_v7, %v2865_v1 }
0x11cd   :  { %v4615_v51 = vpop.eup %4614 }
0x11ce   :  { %3822 = vmatprep.mubr.msk.bf16.mxu0 %vm120_vm1, %v2908_v16  ;;  %v2780_v43 = vpop.xlane.xlu1 %2779  ;;  %v2870_v38 = vmul.f32 %v4615_v51, %v6609_v42  ;;  %v2869_v18 = vmul.f32 %v4615_v51, %v6616_v62 }
0x11cf   :  { %4620 = vrcp.f32 %v2780_v43  ;;  %3054 = vmatmul.mubr.bf16.gmra.mrb[108].mxu0 %v2907_v11  ;;  %v2820_v11 = vpop.xlane.xlu0 %2819 }
0x11d0   :  { %4622 = vrcp.f32 %v2788_v40 }
0x11d1   :  { %v4617_v23 = vpop.eup %4616 }
0x11d2   :  { %v2784_v5 = vpop.xlane.xlu1 %2783  ;;  %v2872_v60 = vmul.f32 %v4617_v23, %v6620_v61  ;;  %v2871_v17 = vmul.f32 %v4617_v23, %v6630_v26 }
0x11d3   :  { %4624 = vrcp.f32 %v2784_v5 }
0x11d4   :  { %v2910_v9 = vpack.c.bf16 %v2872_v60, %v2870_v38  ;;  %v2909_v14 = vpack.c.bf16 %v2871_v17, %v2869_v18 }
0x11d5   :  { %v4619_v22 = vpop.eup %4618 }
0x11d6   :  { %3823 = vmatprep.mubr.msk.bf16.mxu0 %vm120_vm1, %v2910_v9  ;;  %v2792_v45 = vpop.xlane.xlu1 %2791  ;;  %v2874_v34 = vmul.f32 %v4619_v22, %v6636_v36  ;;  %v2873_v61 = vmul.f32 %v4619_v22, %v6647_v0 }
0x11d7   :  { %3062 = vmatmul.mubr.bf16.gmra.mrb[112].mxu0 %v2909_v14  ;;  %4626 = vrcp.f32 %v2792_v45 }
0x11d9   :  { %v4621_v50 = vpop.eup %4620 }
0x11da   :  { %v2796_v3 = vpop.xlane.xlu1 %2795  ;;  %v2876_v42 = vmul.f32 %v4621_v50, %v6653_v55  ;;  %v2875_v62 = vmul.f32 %v4621_v50, %v6660_v25  ;;  %v4623_v26 = vpop.eup %4622 }
0x11db   :  { %4628 = vrcp.f32 %v2796_v3  ;;  %v2880_v29 = vmul.f32 %v4623_v26, %v7087_v13  ;;  %v2879_v58 = vmul.f32 %v4623_v26, %v6572_v54 }
0x11dc   :  { %v2912_v59 = vpack.c.bf16 %v2876_v42, %v2874_v34  ;;  %v2911_v28 = vpack.c.bf16 %v2875_v62, %v2873_v61 }
0x11dd   :  { %v4625_v21 = vpop.eup %4624 }
0x11de   :  { %3824 = vmatprep.mubr.msk.bf16.mxu0 %vm120_vm1, %v2912_v59  ;;  %v2800_v48 = vpop.xlane.xlu1 %2799  ;;  %v2878_v37 = vmul.f32 %v4625_v21, %v6664_v24  ;;  %v2877_v55 = vmul.f32 %v4625_v21, %v6670_v27 }
0x11df   :  { %3070 = vmatmul.mubr.bf16.gmra.mrb[116].mxu0 %v2911_v28  ;;  %4630 = vrcp.f32 %v2800_v48 }
0x11e0   :  { %v2914_v36 = vpack.c.bf16 %v2880_v29, %v2878_v37  ;;  %v2913_v46 = vpack.c.bf16 %v2879_v58, %v2877_v55  ;;  %v4303_v55 = vld [vmem:[%s7007_s8 + $0x18] sm:$0xff]  }
0x11e1   :  { %v4627_v25 = vpop.eup %4626 }
0x11e2   :  { %3825 = vmatprep.mubr.msk.bf16.mxu0 %vm120_vm1, %v2914_v36  ;;  %v2804_v0 = vpop.xlane.xlu1 %2803  ;;  %v2882_v30 = vmul.f32 %v4627_v25, %v6674_v33  ;;  %v2881_v54 = vmul.f32 %v4627_v25, %v6680_v20  ;;  %v2828_v20 = vpop.xlane.xlu0 %2827 }
0x11e3   :  { %4632 = vrcp.f32 %v2804_v0 }
0x11e5   :  { %v4629_v49 = vpop.eup %4628 }
0x11e6   :  { %v2808_v41 = vpop.xlane.xlu1 %2807  ;;  %v2884_v24 = vmul.f32 %v4629_v49, %v6684_v44  ;;  %v2883_v7 = vmul.f32 %v4629_v49, %v6689_v19 }
0x11e7   :  { %3078 = vmatmul.mubr.bf16.gmra.mrb[120].mxu0 %v2913_v46  ;;  %4634 = vrcp.f32 %v2808_v41 }
0x11e8   :  { %v2916_v1 = vpack.c.bf16 %v2884_v24, %v2882_v30  ;;  %v2915_v43 = vpack.c.bf16 %v2883_v7, %v2881_v54 }
0x11e9   :  { %v4631_v16 = vpop.eup %4630 }
0x11ea   :  { %3826 = vmatprep.mubr.msk.bf16.mxu0 %vm120_vm1, %v2916_v1  ;;  %v2812_v27 = vpop.xlane.xlu1 %2811  ;;  %v2886_v33 = vmul.f32 %v4631_v16, %v6693_v12  ;;  %v2885_v60 = vmul.f32 %v4631_v16, %v6698_v57 }
0x11eb   :  { %4636 = vrcp.f32 %v2812_v27 }
0x11ec   :  { %4638 = vrcp.f32 %v2820_v11 }
0x11ed   :  { %v4633_v40 = vpop.eup %4632 }
0x11ee   :  { %v2816_v51 = vpop.xlane.xlu1 %2815  ;;  %v2888_v44 = vmul.f32 %v4633_v40, %v6702_v52  ;;  %v2887_v19 = vmul.f32 %v4633_v40, %v6706_v8 }
0x11ef   :  { %4640 = vrcp.f32 %v2816_v51  ;;  %3086 = vmatmul.mubr.bf16.gmra.mrb[124].mxu0 %v2915_v43 }
0x11f0   :  { %v2918_v23 = vpack.c.bf16 %v2888_v44, %v2886_v33  ;;  %v2917_v17 = vpack.c.bf16 %v2887_v19, %v2885_v60 }
0x11f1   :  { %v4635_v38 = vpop.eup %4634 }
0x11f2   :  { %3827 = vmatprep.mubr.msk.bf16.mxu0 %vm120_vm1, %v2918_v23  ;;  %v2824_v5 = vpop.xlane.xlu1 %2823  ;;  %v2890_v9 = vmul.f32 %v4635_v38, %v6710_v4  ;;  %v2889_v57 = vmul.f32 %v4635_v38, %v6713_v6 }
0x11f3   :  { %4642 = vrcp.f32 %v2824_v5 }
0x11f4   :  { %4644 = vrcp.f32 %v2828_v20 }
0x11f5   :  { %v4637_v18 = vpop.eup %4636 }
0x11f6   :  { %v2892_v12 = vmul.f32 %v4637_v18, %v6717_v15  ;;  %v4639_v52 = vpop.eup %4638  ;;  %v2891_v8 = vmul.f32 %v4637_v18, %v6720_v10 }
0x11f7   :  { %3094 = vmatmul.mubr.bf16.gmra.mrb[128].mxu0 %v2917_v17  ;;  %v2896_v50 = vmul.f32 %v4639_v52, %v6626_v63  ;;  %v2895_v10 = vmul.f32 %v4639_v52, %v6622_v39  ;;  %v4302_v39 = vld [vmem:[%s7007_s8 + $0x10] sm:$0xff]   ;;  %s7088_s8 = smov 24  }
0x11f8   :  { %v2920_v14 = vpack.c.bf16 %v2892_v12, %v2890_v9  ;;  %v2919_v3 = vpack.c.bf16 %v2891_v8, %v2889_v57  ;;  %4032 = vmatpush3.bf16.msra.mxu0 %v4302_v39 }
0x11f9   :  { %v4641_v45 = vpop.eup %4640  ;;  %4033 = vmatprep.subr.bf16.mxu0 %v7084_v2 }
0x11fa   :  { %3828 = vmatprep.mubr.msk.bf16.mxu0 %vm120_vm1, %v2920_v14  ;;  %v2894_v22 = vmul.f32 %v4641_v45, %v6724_v31  ;;  %v2893_v42 = vmul.f32 %v4641_v45, %v6726_v47 }
0x11fc   :  { %v2922_v34 = vpack.c.bf16 %v2896_v50, %v2894_v22  ;;  %v2921_v31 = vpack.c.bf16 %v2895_v10, %v2893_v42  ;;  %4034 = vmatpush3.bf16.msra.mxu0 %v4303_v55 }
0x11fd   :  { %v4643_v4 = vpop.eup %4642  ;;  %4047 = vmatprep.subr.bf16.mxu0 %v7084_v2 }
0x11fe   :  { %v4645_v15 = vpop.eup %4644  ;;  %v2898_v61 = vmul.f32 %v4643_v4, %v6731_v32  ;;  %v2897_v63 = vmul.f32 %v4643_v4, %v6736_v35 }
0x11ff   :  { %3102 = vmatmul.mubr.bf16.gmra.mrb[132].mxu0 %v2919_v3  ;;  %v2900_v62 = vmul.f32 %v4645_v15, %v6642_v53  ;;  %v2899_v6 = vmul.f32 %v4645_v15, %v6639_v56 }
0x1200   :  { %3829 = vmatprep.mubr.msk.bf16.mxu0 %vm120_vm1, %v2922_v34 }
0x1201   :  { %v2924_v26 = vpack.c.bf16 %v2900_v62, %v2898_v61  ;;  %v2923_v59 = vpack.c.bf16 %v2899_v6, %v2897_v63 }
0x1207   :  { %3110 = vmatmul.mubr.bf16.gmra.mrb[136].mxu0 %v2921_v31 }
0x1208   :  { %3830 = vmatprep.mubr.msk.bf16.mxu0 %vm120_vm1, %v2924_v26 }
0x120f   :  { %3118 = vmatmul.mubr.bf16.gmra.mrb[140].mxu0 %v2923_v59 }
0x1210   :  { %4035 = vmatprep.mubr.msk.bf16.mxu0 %vm4745_vm0, %v7084_v2 }
0x1268   :  { %v6806_v47 = vpop.f32.mrb[96].mxu0 }
0x1269   :  { %v3033_v53 = vpop.f32.mrb[97].mxu0 }
0x126a   :  { %v6808_v32 = vpop.f32.mrb[98].mxu0 }
0x126b   :  { %v3036_v35 = vpop.f32.mrb[99].mxu0 }
0x1270   :  { %v6811_v28 = vpop.f32.mrb[100].mxu0 }
0x1271   :  { %v3041_v56 = vpop.f32.mrb[101].mxu0 }
0x1272   :  { %v6813_v21 = vpop.f32.mrb[102].mxu0 }
0x1273   :  { %v3044_v48 = vpop.f32.mrb[103].mxu0 }
0x1278   :  { %v6815_v37 = vpop.f32.mrb[104].mxu0 }
0x1279   :  { %v3049_v13 = vpop.f32.mrb[105].mxu0 }
0x127a   :  { %v6817_v29 = vpop.f32.mrb[106].mxu0 }
0x127b   :  { %v3052_v36 = vpop.f32.mrb[107].mxu0 }
0x12a2   :  { %v3055_v0 = vpop.f32.mrb[108].mxu0 }
0x12a3   :  { %v3057_v25 = vpop.f32.mrb[109].mxu0 }
0x12a4   :  { %v3058_v58 = vpop.f32.mrb[110].mxu0 }
0x12a5   :  { %v4238_v49 = vpack.i.bf16 %v3058_v58, %v3055_v0  ;;  %v3060_v46 = vpop.f32.mrb[111].mxu0 }
0x12a7   :  { %4239 = vrot.lane.b32.xlu1 %v4238_v49, %s4752_s26 }
0x12aa   :  { %v3063_v41 = vpop.f32.mrb[112].mxu0 }
0x12ab   :  { %v3065_v30 = vpop.f32.mrb[113].mxu0 }
0x12ac   :  { %v3066_v24 = vpop.f32.mrb[114].mxu0 }
0x12ad   :  { %v4253_v1 = vpack.i.bf16 %v3066_v24, %v3063_v41  ;;  %v3068_v7 = vpop.f32.mrb[115].mxu0 }
0x12b2   :  { %v3071_v27 = vpop.f32.mrb[116].mxu0 }
0x12b3   :  { %v3073_v16 = vpop.f32.mrb[117].mxu0 }
0x12b4   :  { %v3074_v11 = vpop.f32.mrb[118].mxu0 }
0x12b5   :  { %v4268_v54 = vpack.i.bf16 %v3074_v11, %v3071_v27  ;;  %v3076_v40 = vpop.f32.mrb[119].mxu0 }
0x12ba   :  { %v3079_v43 = vpop.f32.mrb[120].mxu0 }
0x12bb   :  { %v3081_v51 = vpop.f32.mrb[121].mxu0 }
0x12bc   :  { %v3082_v33 = vpop.f32.mrb[122].mxu0 }
0x12bd   :  { %v4243_v44 = vpack.i.bf16 %v3082_v33, %v3079_v43  ;;  %v3084_v23 = vpop.f32.mrb[123].mxu0 }
0x12bf   :  { %4244 = vrot.lane.b32.xlu0 %v4243_v44, %s4753_s27 }
0x12c2   :  { %v3087_v19 = vpop.f32.mrb[124].mxu0 }
0x12c3   :  { %v3089_v5 = vpop.f32.mrb[125].mxu0 }
0x12c4   :  { %v3090_v38 = vpop.f32.mrb[126].mxu0 }
0x12c5   :  { %v4258_v60 = vpack.i.bf16 %v3090_v38, %v3087_v19  ;;  %v3092_v20 = vpop.f32.mrb[127].mxu0 }
0x12ca   :  { %v3095_v18 = vpop.f32.mrb[128].mxu0 }
0x12cb   :  { %v3097_v17 = vpop.f32.mrb[129].mxu0 }
0x12cc   :  { %v3098_v9 = vpop.f32.mrb[130].mxu0 }
0x12cd   :  { %v4273_v12 = vpack.i.bf16 %v3098_v9, %v3095_v18  ;;  %v3100_v52 = vpop.f32.mrb[131].mxu0 }
0x12d2   :  { %v3103_v14 = vpop.f32.mrb[132].mxu0 }
0x12d3   :  { %v3105_v45 = vpop.f32.mrb[133].mxu0 }
0x12d4   :  { %v3106_v8 = vpop.f32.mrb[134].mxu0 }
0x12d5   :  { %v4248_v22 = vpack.i.bf16 %v3106_v8, %v3103_v14  ;;  %v3108_v57 = vpop.f32.mrb[135].mxu0 }
0x12d7   :  { %4249 = vrot.lane.b32.xlu1 %v4248_v22, %s7088_s8 }
0x12da   :  { %v3111_v50 = vpop.f32.mrb[136].mxu0 }
0x12db   :  { %4254 = vrot.lane.b32.xlu1 %v4253_v1, %s4752_s26  ;;  %v3113_v3 = vpop.f32.mrb[137].mxu0 }
0x12dc   :  { %v3114_v34 = vpop.f32.mrb[138].mxu0 }
0x12dd   :  { %v4263_v4 = vpack.i.bf16 %v3114_v34, %v3111_v50  ;;  %v3116_v15 = vpop.f32.mrb[139].mxu0  ;;  %v7089_v50 = vld [vmem:[#allocation11_spill] sm:$0xff] }
0x12de   :  { %v7090_v15 = vld [vmem:[#allocation13_spill] sm:$0xff] }
0x12df   :  { %4259 = vrot.lane.b32.xlu1 %v4258_v60, %s4753_s27  ;;  %4264 = vrot.lane.b32.xlu0 %v4263_v4, %s7088_s8 }
0x12e2   :  { %v3119_v42 = vpop.f32.mrb[140].mxu0 }
0x12e3   :  { %4269 = vrot.lane.b32.xlu1 %v4268_v54, %s4752_s26  ;;  %4274 = vrot.lane.b32.xlu0 %v4273_v12, %s4753_s27  ;;  %v3121_v61 = vpop.f32.mrb[141].mxu0 }
0x12e4   :  { %v3122_v10 = vpop.f32.mrb[142].mxu0 }
0x12e5   :  { %v4278_v62 = vpack.i.bf16 %v3122_v10, %v3119_v42  ;;  %v3124_v31 = vpop.f32.mrb[143].mxu0 }
0x12e7   :  { %4279 = vrot.lane.b32.xlu1 %v4278_v62, %s7088_s8  ;;  %s3720_s8 = sshll.u32 %s4755_s22, 4  ;;  %s3721_s8 = int_to_ptr.vmem [resolvable:$true] %s3720_s8 }
0x12e8   :  { %s4720_s26 = scalar_lea.vmem %s3721_s8, 32  ;;  %p4725_p1 = scmp.lt.s32.totalorder %s3721_s8, %s3721_s8 }
0x12e9   :  { %p4721_p0 = scmp.ne.s32.totalorder %s3721_s8, %s4720_s26  ;;  %p4726_p2 = scmp.lt.s32.totalorder %s4720_s26, %s4720_s26 }
0x12eb   :  { %p4727_p3 = por %p4726_p2, %p4725_p1 }
0x12ed   :  { %p4728_p4 = pnand %p4727_p3, %p4721_p0 }
0x1319   :  { %v4240_v26 = vpop.permute.xlu1 %4239 }
0x131a   :  { %v4242_v6 = vunpack.i.h.bf16 %v4240_v26  ;;  %v4241_v59 = vunpack.i.l.bf16 %v4240_v26 }
0x131c   :  { %v3199_v56 = vsel %vm547_vm3, %v6808_v32, %v4242_v6  ;;  %v3198_v48 = vsel %vm547_vm3, %v6806_v47, %v4241_v59  ;;  %v7091_v6 = vld [vmem:[#allocation12_spill] sm:$0xff] }
0x1331   :  { %v4245_v63 = vpop.permute.xlu0 %4244 }
0x1332   :  { %v4247_v39 = vunpack.i.h.bf16 %v4245_v63  ;;  %v4246_v53 = vunpack.i.l.bf16 %v4245_v63 }
0x1334   :  { %v3205_v55 = vsel %vm1484_vm4, %v3199_v56, %v4247_v39  ;;  %v3204_v0 = vsel %vm1484_vm4, %v3198_v48, %v4246_v53 }
0x1349   :  { %v4250_v35 = vpop.permute.xlu1 %4249 }
0x134a   :  { %v4252_v13 = vunpack.i.h.bf16 %v4250_v35  ;;  %v4251_v36 = vunpack.i.l.bf16 %v4250_v35  ;;  %v7092_v35 = vld [vmem:[#allocation5_spill] sm:$0xff] }
0x134c   :  { %v3211_v25 = vsel %vm1491_vm5, %v3205_v55, %v4252_v13  ;;  %v3210_v58 = vsel %vm1491_vm5, %v3204_v0, %v4251_v36 }
0x134d   :  { %v3216_v49 = vpack.c.bf16 %v3211_v25, %v3210_v58  ;;  %v4255_v46 = vpop.permute.xlu1 %4254  ;;  %v7093_v58 = vld [vmem:[#allocation6_spill] sm:$0xff] }
0x134e   :  { %v4257_v41 = vunpack.i.h.bf16 %v4255_v46  ;;  %v4256_v30 = vunpack.i.l.bf16 %v4255_v46 }
0x134f   :  { %4036 = vmatmul.mubr.msk.bf16.vlgmr.msra.gmra.mrb[144].mxu0 %vm243_vm2, %v3216_v49 }
0x1350   :  { %4039 = vmatprep.mubr.msk.bf16.mxu0 %vm4745_vm0, %v7084_v2  ;;  %v3201_v16 = vsel %vm547_vm3, %v6813_v21, %v4257_v41  ;;  %v3200_v11 = vsel %vm547_vm3, %v6811_v28, %v4256_v30  ;;  %v7094_v30 = vld [vmem:[#allocation7_spill] sm:$0xff] }
0x1351   :  { %v4260_v47 = vpop.permute.xlu1 %4259  ;;  %v4265_v32 = vpop.permute.xlu0 %4264 }
0x1352   :  { %v4262_v24 = vunpack.i.h.bf16 %v4260_v47  ;;  %v4261_v1 = vunpack.i.l.bf16 %v4260_v47  ;;  %v4267_v7 = vunpack.i.h.bf16 %v4265_v32  ;;  %v4266_v27 = vunpack.i.l.bf16 %v4265_v32 }
0x1354   :  { %v3206_v54 = vsel %vm1484_vm4, %v3200_v11, %v4261_v1  ;;  %v3207_v40 = vsel %vm1484_vm4, %v3201_v16, %v4262_v24 }
0x1355   :  { %v3213_v43 = vsel %vm1491_vm5, %v3207_v40, %v4267_v7  ;;  %v3212_v51 = vsel %vm1491_vm5, %v3206_v54, %v4266_v27  ;;  %v4270_v33 = vpop.permute.xlu1 %4269  ;;  %v4275_v44 = vpop.permute.xlu0 %4274 }
0x1356   :  { %v3217_v23 = vpack.c.bf16 %v3213_v43, %v3212_v51  ;;  %v4272_v19 = vunpack.i.h.bf16 %v4270_v33  ;;  %v4271_v5 = vunpack.i.l.bf16 %v4270_v33  ;;  %v4277_v38 = vunpack.i.h.bf16 %v4275_v44 }
0x1357   :  { %v4276_v60 = vunpack.i.l.bf16 %v4275_v44 }
0x1358   :  { %v3203_v21 = vsel %vm547_vm3, %v6817_v29, %v4272_v19  ;;  %v3202_v28 = vsel %vm547_vm3, %v6815_v37, %v4271_v5  ;;  %4040 = vmatmul.mubr.msk.bf16.gmra.mrb[148].mxu0 %vm243_vm2, %v3217_v23  ;;  %v3836_v37 = vld [vmem:[%s7008_s9 + $0x1] ss:$0 sm:$0xff] }
0x1359   :  { %v4280_v20 = vpop.permute.xlu1 %4279  ;;  %4043 = vmatprep.mubr.msk.bf16.mxu0 %vm4745_vm0, %v7084_v2  ;;  %v3209_v9 = vsel %vm1484_vm4, %v3203_v21, %v4277_v38  ;;  %v3208_v12 = vsel %vm1484_vm4, %v3202_v28, %v4276_v60 }
0x135a   :  { %v4282_v18 = vunpack.i.h.bf16 %v4280_v20  ;;  %v4281_v17 = vunpack.i.l.bf16 %v4280_v20 }
0x135c   :  { %v3215_v52 = vsel %vm1491_vm5, %v3209_v9, %v4282_v18  ;;  %v3214_v14 = vsel %vm1491_vm5, %v3208_v12, %v4281_v17 }
0x135d   :  { %v3218_v29 = vpack.c.bf16 %v3215_v52, %v3214_v14 }
0x1360   :  { %4044 = vmatmul.mubr.msk.bf16.gmra.mrb[152].mxu0 %vm243_vm2, %v3218_v29 }
0x1361   :  { %4051 = vmatprep.mubr.msk.bf16.mxu0 %vm4745_vm0, %v7084_v2 }
0x1422   :  { %v3287_v45 = vpop.f32.mrb[144].mxu0 }
0x1423   :  { %v3288_v8 = vadd.f32 %v3836_v37, %v3287_v45  ;;  %v4037_v22 = vpop.f32.mrb[145].mxu0 }
0x1424   :  { %v3290_v57 = vpop.f32.mrb[146].mxu0 }
0x1425   :  { %v3310_v3 = vadd.f32 %v3288_v8, %v7089_v50  ;;  %v3291_v34 = vadd.f32 %v3836_v37, %v3290_v57  ;;  %v4038_v4 = vpop.f32.mrb[147].mxu0  ;;  %v4304_v57 = vld [vmem:[%s7011_s12 + $0x10] sm:$0xff]   ;;  %v4305_v50 = vld [vmem:[%s7011_s12 + $0x18] sm:$0xff]  }
0x1426   :  { %4048 = vmatpush3.bf16.msra.mxu0 %v4304_v57  ;;  %v4308_v4 = vld [vmem:[%s7013_s14 + $0x30] sm:$0xff]  }
0x1427   :  { %v3311_v42 = vadd.f32 %v3291_v34, %v7090_v15  ;;  %v3320_v61 = vsel %vm243_vm2, %v3310_v3, 0.0  ;;  %4049 = vmatprep.subr.bf16.mxu0 %v7084_v2  ;;  %v4307_v34 = vld [vmem:[%s7013_s14 + $0x28] sm:$0xff]  }
0x1428   :  { %3321 = vadd.xlane.f32.xlu0 %v3320_v61 }
0x1429   :  { %v3323_v10 = vsel %vm243_vm2, %v3311_v42, 0.0 }
0x142a   :  { %3324 = vadd.xlane.f32.xlu1 %v3323_v10  ;;  %4050 = vmatpush3.bf16.msra.mxu0 %v4305_v50 }
0x142b   :  { %v3295_v62 = vpop.f32.mrb[148].mxu0  ;;  %4063 = vmatprep.subr.bf16.mxu0 %v7084_v2 }
0x142c   :  { %v3296_v31 = vadd.f32 %v3836_v37, %v3295_v62  ;;  %v4041_v26 = vpop.f32.mrb[149].mxu0 }
0x142d   :  { %v3298_v63 = vpop.f32.mrb[150].mxu0 }
0x142e   :  { %v6873_v59 = vadd.f32 %v3296_v31, %v7091_v6  ;;  %v3299_v39 = vadd.f32 %v3836_v37, %v3298_v63  ;;  %v4042_v53 = vpop.f32.mrb[151].mxu0 }
0x1430   :  { %v3313_v56 = vadd.f32 %v3299_v39, %v7092_v35  ;;  %v3326_v48 = vsel %vm243_vm2, %v6873_v59, 0.0 }
0x1431   :  { %3327 = vadd.xlane.f32.xlu0 %v3326_v48 }
0x1432   :  { %v3329_v0 = vsel %vm243_vm2, %v3313_v56, 0.0 }
0x1433   :  { %v3303_v13 = vpop.f32.mrb[152].mxu0 }
0x1434   :  { %v3304_v36 = vadd.f32 %v3836_v37, %v3303_v13  ;;  %v4045_v55 = vpop.f32.mrb[153].mxu0 }
0x1435   :  { %3330 = vadd.xlane.f32.xlu0 %v3329_v0  ;;  %v3306_v25 = vpop.f32.mrb[154].mxu0 }
0x1436   :  { %v3314_v49 = vadd.f32 %v3304_v36, %v7093_v58  ;;  %v3307_v46 = vadd.f32 %v3836_v37, %v3306_v25  ;;  %v4046_v41 = vpop.f32.mrb[155].mxu0 }
0x1438   :  { %v6881_v47 = vadd.f32 %v3307_v46, %v7094_v30  ;;  %v3332_v32 = vsel %vm243_vm2, %v3314_v49, 0.0 }
0x1439   :  { %3333 = vadd.xlane.f32.xlu0 %v3332_v32 }
0x143a   :  { %v3335_v24 = vsel %vm243_vm2, %v6881_v47, 0.0 }
0x143b   :  { %3336 = vadd.xlane.f32.xlu1 %v3335_v24 }
0x14b5   :  { %v3322_v1 = vpop.xlane.xlu0 %3321 }
0x14b6   :  { %v3338_v7 = vmul.f32 0.03125, %v3322_v1 }
0x14b7   :  { %v3325_v27 = vpop.xlane.xlu1 %3324 }
0x14b8   :  { %v6886_v16 = vsub.f32 %v3310_v3, %v3338_v7  ;;  %v3339_v11 = vmul.f32 0.03125, %v3325_v27  ;;  %v4306_v3 = vld [vmem:[%s7013_s14 + $0x20] sm:$0xff]  }
0x14b9   :  { %4087 = vmatpush3.bf16.msra.mxu1 %v4306_v3 }
0x14ba   :  { %v6888_v54 = vsub.f32 %v3311_v42, %v3339_v11  ;;  %v3350_v40 = vmul.f32 %v6886_v16, %v6886_v16  ;;  %4084 = vmatprep.subr.bf16.mxu1 %v7084_v2 }
0x14bc   :  { %v3356_v43 = vsel %vm243_vm2, %v3350_v40, 0.0  ;;  %v3351_v51 = vmul.f32 %v6888_v54, %v6888_v54 }
0x14bd   :  { %3357 = vadd.xlane.f32.xlu0 %v3356_v43  ;;  %4088 = vmatpush3.bf16.msra.mxu1 %v4307_v34 }
0x14be   :  { %v3328_v33 = vpop.xlane.xlu0 %3327  ;;  %v3359_v44 = vsel %vm243_vm2, %v3351_v51, 0.0  ;;  %4085 = vmatprep.subr.bf16.mxu1 %v7084_v2 }
0x14bf   :  { %v3340_v23 = vmul.f32 0.03125, %v3328_v33  ;;  %3360 = vadd.xlane.f32.xlu1 %v3359_v44 }
0x14c1   :  { %v6897_v19 = vsub.f32 %v6873_v59, %v3340_v23  ;;  %4089 = vmatpush3.bf16.msra.mxu1 %v4308_v4 }
0x14c2   :  { %v3331_v5 = vpop.xlane.xlu0 %3330  ;;  %4086 = vmatprep.subr.bf16.mxu1 %v7084_v2 }
0x14c3   :  { %v3341_v38 = vmul.f32 0.03125, %v3331_v5  ;;  %v3352_v60 = vmul.f32 %v6897_v19, %v6897_v19 }
0x14c5   :  { %v6901_v21 = vsub.f32 %v3313_v56, %v3341_v38  ;;  %v3362_v28 = vsel %vm243_vm2, %v3352_v60, 0.0  ;;  %v3844_v56 = vld [vmem:[%s7009_s10 + $0x1] ss:$0 sm:$0xff] }
0x14c6   :  { %3363 = vadd.xlane.f32.xlu0 %v3362_v28  ;;  %v3334_v20 = vpop.xlane.xlu0 %3333 }
0x14c7   :  { %v3342_v18 = vmul.f32 0.03125, %v3334_v20  ;;  %v3353_v17 = vmul.f32 %v6901_v21, %v6901_v21 }
0x14c8   :  { %v3337_v9 = vpop.xlane.xlu1 %3336 }
0x14c9   :  { %v6906_v12 = vsub.f32 %v3314_v49, %v3342_v18  ;;  %v3343_v52 = vmul.f32 0.03125, %v3337_v9  ;;  %v3365_v14 = vsel %vm243_vm2, %v3353_v17, 0.0  ;;  %v3845_v49 = vld [vmem:[%s7010_s11 + $0x1] ss:$0 sm:$0xff]  ;;  %v4309_v9 = vld [vmem:[%s7013_s14 + $0x38] sm:$0xff]  }
0x14ca   :  { %3366 = vadd.xlane.f32.xlu1 %v3365_v14  ;;  %4090 = vmatpush3.bf16.msra.mxu1 %v4309_v9 }
0x14cb   :  { %v6910_v29 = vsub.f32 %v6881_v47, %v3343_v52  ;;  %v3354_v37 = vmul.f32 %v6906_v12, %v6906_v12 }
0x14cd   :  { %v3368_v45 = vsel %vm243_vm2, %v3354_v37, 0.0  ;;  %v3355_v8 = vmul.f32 %v6910_v29, %v6910_v29 }
0x14ce   :  { %3369 = vadd.xlane.f32.xlu0 %v3368_v45 }
0x14cf   :  { %v3371_v22 = vsel %vm243_vm2, %v3355_v8, 0.0 }
0x14d0   :  { %3372 = vadd.xlane.f32.xlu1 %v3371_v22 }
0x154a   :  { %v3358_v15 = vpop.xlane.xlu0 %3357 }
0x154b   :  { %v3374_v42 = vmul.f32 0.03125, %v3358_v15 }
0x154c   :  { %v3361_v61 = vpop.xlane.xlu1 %3360 }
0x154d   :  { %v3380_v10 = vadd.f32 1e-06, %v3374_v42  ;;  %v3375_v62 = vmul.f32 0.03125, %v3361_v61 }
0x154f   :  { %4646 = vrsqrt.f32 %v3380_v10  ;;  %v3381_v31 = vadd.f32 1e-06, %v3375_v62 }
0x1551   :  { %4648 = vrsqrt.f32 %v3381_v31 }
0x1553   :  { %v3364_v26 = vpop.xlane.xlu0 %3363 }
0x1554   :  { %v3376_v63 = vmul.f32 0.03125, %v3364_v26 }
0x1556   :  { %v3382_v6 = vadd.f32 1e-06, %v3376_v63 }
0x1557   :  { %v3367_v39 = vpop.xlane.xlu1 %3366 }
0x1558   :  { %4650 = vrsqrt.f32 %v3382_v6  ;;  %v3377_v53 = vmul.f32 0.03125, %v3367_v39 }
0x1559   :  { %v4647_v35 = vpop.eup %4646 }
0x155a   :  { %v3392_v48 = vmul.f32 %v4647_v35, %v6886_v16  ;;  %v3383_v13 = vadd.f32 1e-06, %v3377_v53 }
0x155b   :  { %v4649_v36 = vpop.eup %4648  ;;  %v3370_v55 = vpop.xlane.xlu0 %3369 }
0x155c   :  { %v3404_v0 = vmul.f32 %v3844_v56, %v3392_v48  ;;  %v3393_v25 = vmul.f32 %v4649_v36, %v6888_v54  ;;  %4652 = vrsqrt.f32 %v3383_v13  ;;  %v3378_v58 = vmul.f32 0.03125, %v3370_v55 }
0x155d   :  { %v3373_v46 = vpop.xlane.xlu1 %3372 }
0x155e   :  { %v3405_v41 = vmul.f32 %v3844_v56, %v3393_v25  ;;  %v3384_v30 = vadd.f32 1e-06, %v3378_v58  ;;  %v3379_v32 = vmul.f32 0.03125, %v3373_v46  ;;  %v3416_v24 = vadd.f32 %v3845_v49, %v3404_v0 }
0x1560   :  { %v3417_v1 = vadd.f32 %v3845_v49, %v3405_v41  ;;  %4654 = vrsqrt.f32 %v3384_v30  ;;  %v3385_v7 = vadd.f32 1e-06, %v3379_v32 }
0x1562   :  { %v4651_v27 = vpop.eup %4650  ;;  %4656 = vrsqrt.f32 %v3385_v7  ;;  %v3422_v16 = vpack.c.bf16 %v3417_v1, %v3416_v24 }
0x1563   :  { %v3394_v11 = vmul.f32 %v4651_v27, %v6897_v19 }
0x1564   :  { %4052 = vmatmul.mubr.msk.bf16.vlgmr.msra.gmra.mrb[156].mxu0 %vm243_vm2, %v3422_v16 }
0x1565   :  { %4055 = vmatprep.mubr.msk.bf16.mxu0 %vm4745_vm0, %v7084_v2  ;;  %4064 = vmatpush3.bf16.msra.mxu0 %v4306_v3  ;;  %v3406_v43 = vmul.f32 %v3844_v56, %v3394_v11 }
0x1566   :  { %v4653_v54 = vpop.eup %4652  ;;  %4065 = vmatprep.subr.bf16.mxu0 %v7084_v2 }
0x1567   :  { %v3395_v40 = vmul.f32 %v4653_v54, %v6901_v21  ;;  %v3418_v23 = vadd.f32 %v3845_v49, %v3406_v43 }
0x1569   :  { %v3407_v51 = vmul.f32 %v3844_v56, %v3395_v40  ;;  %4066 = vmatpush3.bf16.msra.mxu0 %v4307_v34 }
0x156a   :  { %v4655_v33 = vpop.eup %4654  ;;  %4067 = vmatprep.subr.bf16.mxu0 %v7084_v2 }
0x156b   :  { %v3396_v44 = vmul.f32 %v4655_v33, %v6906_v12  ;;  %v3419_v19 = vadd.f32 %v3845_v49, %v3407_v51  ;;  %v3851_v12 = vld [vmem:[%s7012_s13 + $0x1] ss:$0 sm:$0xff] }
0x156c   :  { %v4657_v5 = vpop.eup %4656 }
0x156d   :  { %v3397_v38 = vmul.f32 %v4657_v5, %v6910_v29  ;;  %v3423_v60 = vpack.c.bf16 %v3419_v19, %v3418_v23  ;;  %4068 = vmatpush3.bf16.msra.mxu0 %v4308_v4  ;;  %v3408_v21 = vmul.f32 %v3844_v56, %v3396_v44 }
0x156e   :  { %4069 = vmatprep.subr.bf16.mxu0 %v7084_v2 }
0x156f   :  { %4056 = vmatmul.mubr.msk.bf16.gmra.mrb[160].mxu0 %vm243_vm2, %v3423_v60  ;;  %v3409_v28 = vmul.f32 %v3844_v56, %v3397_v38  ;;  %v3420_v18 = vadd.f32 %v3845_v49, %v3408_v21 }
0x1570   :  { %4059 = vmatprep.mubr.msk.bf16.mxu0 %vm4745_vm0, %v7084_v2 }
0x1571   :  { %v3421_v20 = vadd.f32 %v3845_v49, %v3409_v28  ;;  %4070 = vmatpush3.bf16.msra.mxu0 %v4309_v9 }
0x1573   :  { %v3424_v17 = vpack.c.bf16 %v3421_v20, %v3420_v18 }
0x1577   :  { %4060 = vmatmul.mubr.msk.bf16.gmra.mrb[164].mxu0 %vm243_vm2, %v3424_v17 }
0x1578   :  { %4071 = vmatprep.mubr.msk.bf16.mxu0 %vm4745_vm0, %v7084_v2 }
0x1637   :  { %v3493_v52 = vpop.f32.mrb[156].mxu0 }
0x1638   :  { %v3494_v14 = vadd.f32 %v3851_v12, %v3493_v52  ;;  %v4053_v29 = vpop.f32.mrb[157].mxu0 }
0x1639   :  { %v3496_v37 = vpop.f32.mrb[158].mxu0 }
0x163a   :  { %v3522_v45 = vmul.f32 0.044715, %v3494_v14  ;;  %v3497_v8 = vadd.f32 %v3851_v12, %v3496_v37  ;;  %v4054_v22 = vpop.f32.mrb[159].mxu0  ;;  %v3516_v54 = vmul.f32 0.5, %v3494_v14 }
0x163c   :  { %v3528_v57 = vmul.f32 %v3522_v45, %v3494_v14  ;;  %v3523_v50 = vmul.f32 0.044715, %v3497_v8  ;;  %v3517_v43 = vmul.f32 0.5, %v3497_v8 }
0x163e   :  { %v3534_v3 = vmul.f32 %v3528_v57, %v3494_v14  ;;  %v3529_v34 = vmul.f32 %v3523_v50, %v3497_v8 }
0x1640   :  { %v3540_v4 = vadd.f32 %v3534_v3, %v3494_v14  ;;  %v3535_v15 = vmul.f32 %v3529_v34, %v3497_v8 }
0x1642   :  { %v3546_v42 = vmul.f32 0.7978846, %v3540_v4  ;;  %v3541_v61 = vadd.f32 %v3535_v15, %v3497_v8  ;;  %v3501_v10 = vpop.f32.mrb[160].mxu0 }
0x1643   :  { %v3502_v62 = vadd.f32 %v3851_v12, %v3501_v10  ;;  %v4057_v31 = vpop.f32.mrb[161].mxu0 }
0x1644   :  { %4658 = vtanh.f32 %v3546_v42  ;;  %v3547_v26 = vmul.f32 0.7978846, %v3541_v61  ;;  %v3504_v63 = vpop.f32.mrb[162].mxu0 }
0x1645   :  { %v3524_v6 = vmul.f32 0.044715, %v3502_v62  ;;  %v3505_v39 = vadd.f32 %v3851_v12, %v3504_v63  ;;  %v4058_v53 = vpop.f32.mrb[163].mxu0 }
0x1646   :  { %4660 = vtanh.f32 %v3547_v26 }
0x1647   :  { %v3530_v35 = vmul.f32 %v3524_v6, %v3502_v62  ;;  %v3525_v56 = vmul.f32 0.044715, %v3505_v39  ;;  %v3519_v52 = vmul.f32 0.5, %v3505_v39 }
0x1649   :  { %v3536_v48 = vmul.f32 %v3530_v35, %v3502_v62  ;;  %v3531_v13 = vmul.f32 %v3525_v56, %v3505_v39 }
0x164a   :  { %v3509_v36 = vpop.f32.mrb[164].mxu0 }
0x164b   :  { %v3542_v55 = vadd.f32 %v3536_v48, %v3502_v62  ;;  %v3537_v0 = vmul.f32 %v3531_v13, %v3505_v39  ;;  %v3510_v25 = vadd.f32 %v3851_v12, %v3509_v36  ;;  %v4061_v58 = vpop.f32.mrb[165].mxu0 }
0x164c   :  { %v3512_v49 = vpop.f32.mrb[166].mxu0 }
0x164d   :  { %v3548_v46 = vmul.f32 0.7978846, %v3542_v55  ;;  %v3543_v41 = vadd.f32 %v3537_v0, %v3505_v39  ;;  %v3526_v30 = vmul.f32 0.044715, %v3510_v25  ;;  %v3513_v32 = vadd.f32 %v3851_v12, %v3512_v49  ;;  %v4062_v24 = vpop.f32.mrb[167].mxu0 }
0x164e   :  { %v4659_v1 = vpop.eup %4658  ;;  %v3518_v12 = vmul.f32 0.5, %v3502_v62  ;;  %v3520_v50 = vmul.f32 0.5, %v3510_v25 }
0x164f   :  { %v3558_v7 = vadd.f32 1.0, %v4659_v1  ;;  %4662 = vtanh.f32 %v3548_v46  ;;  %v3549_v27 = vmul.f32 0.7978846, %v3543_v41  ;;  %v3532_v16 = vmul.f32 %v3526_v30, %v3510_v25 }
0x1650   :  { %v4661_v11 = vpop.eup %4660  ;;  %v3527_v40 = vmul.f32 0.044715, %v3513_v32  ;;  %v3521_v3 = vmul.f32 0.5, %v3513_v32 }
0x1651   :  { %v3559_v51 = vadd.f32 1.0, %v4661_v11  ;;  %4664 = vtanh.f32 %v3549_v27  ;;  %v3538_v33 = vmul.f32 %v3532_v16, %v3510_v25  ;;  %v3564_v23 = vmul.f32 %v3558_v7, %v3516_v54  ;;  %v3875_v11 = vld [vmem:[%s7016_s17] ss:$0 sm:$0xff] }
0x1652   :  { %v3533_v44 = vmul.f32 %v3527_v40, %v3513_v32 }
0x1653   :  { %v3565_v19 = vmul.f32 %v3559_v51, %v3517_v43  ;;  %v3544_v5 = vadd.f32 %v3538_v33, %v3510_v25 }
0x1654   :  { %v3539_v38 = vmul.f32 %v3533_v44, %v3513_v32 }
0x1655   :  { %v3570_v60 = vpack.c.bf16 %v3565_v19, %v3564_v23  ;;  %v3550_v21 = vmul.f32 0.7978846, %v3544_v5 }
0x1656   :  { %v3545_v28 = vadd.f32 %v3539_v38, %v3513_v32 }
0x1657   :  { %4666 = vtanh.f32 %v3550_v21  ;;  %4072 = vmatmul.mubr.msk.bf16.vlgmr.msra.gmra.mrb[168].mxu0 %vm120_vm1, %v3570_v60 }
0x1658   :  { %v3551_v20 = vmul.f32 0.7978846, %v3545_v28 }
0x1659   :  { %v4663_v18 = vpop.eup %4662 }
0x165a   :  { %v3560_v17 = vadd.f32 1.0, %v4663_v18  ;;  %4668 = vtanh.f32 %v3551_v20 }
0x165b   :  { %v4665_v9 = vpop.eup %4664 }
0x165c   :  { %v3561_v14 = vadd.f32 1.0, %v4665_v9  ;;  %v3566_v29 = vmul.f32 %v3560_v17, %v3518_v12 }
0x165e   :  { %v3567_v37 = vmul.f32 %v3561_v14, %v3519_v52 }
0x1660   :  { %v3571_v45 = vpack.c.bf16 %v3567_v37, %v3566_v29 }
0x1661   :  { %v4667_v8 = vpop.eup %4666 }
0x1662   :  { %4076 = vmatmul.mubr.msk.bf16.vlgmr.msra.gmra.mrb[120].mxu1 %vm120_vm1, %v3571_v45  ;;  %v3562_v22 = vadd.f32 1.0, %v4667_v8 }
0x1663   :  { %4079 = vmatprep.mubr.msk.bf16.mxu1 %vm4745_vm0, %v7084_v2  ;;  %v3866_v2 = vld [vmem:[%s7014_s15 + $0x1] ss:$0 sm:$0xff] }
0x1664   :  { %v4669_v57 = vpop.eup %4668  ;;  %v3568_v4 = vmul.f32 %v3562_v22, %v3520_v50 }
0x1665   :  { %v3563_v34 = vadd.f32 1.0, %v4669_v57 }
0x1667   :  { %v3569_v15 = vmul.f32 %v3563_v34, %v3521_v3 }
0x1669   :  { %v3572_v42 = vpack.c.bf16 %v3569_v15, %v3568_v4 }
0x166b   :  { %4080 = vmatmul.mubr.msk.bf16.gmra.mrb[124].mxu1 %vm120_vm1, %v3572_v42 }
0x172a   :  { %v3657_v61 = vpop.f32.mrb[168].mxu0 }
0x172b   :  { %v4073_v10 = vpop.f32.mrb[169].mxu0 }
0x172c   :  { %v3659_v62 = vpop.f32.mrb[170].mxu0 }
0x172d   :  { %v4074_v31 = vpop.f32.mrb[171].mxu0 }
0x1735   :  { %v3663_v26 = vpop.f32.mrb[120].mxu1 }
0x1736   :  { %v4077_v63 = vpop.f32.mrb[121].mxu1  ;;  %v3664_v48 = vadd.f32 %v3866_v2, %v3663_v26 }
0x1737   :  { %v3666_v6 = vpop.f32.mrb[122].mxu1 }
0x1738   :  { %v4078_v39 = vpop.f32.mrb[123].mxu1  ;;  %v3676_v0 = vadd.f32 %v3664_v48, %v6873_v59  ;;  %v3874_v59 = vld [vmem:[%s7015_s16] ss:$0 sm:$0xff] }
0x173e   :  { %v3670_v53 = vpop.f32.mrb[124].mxu1 }
0x173f   :  { %v4081_v35 = vpop.f32.mrb[125].mxu1 }
0x1740   :  { %v3672_v56 = vpop.f32.mrb[126].mxu1 }
0x1741   :  { %v3673_v13 = vadd.f32 %v3866_v2, %v3672_v56  ;;  %v4082_v36 = vpop.f32.mrb[127].mxu1 }
0x1743   :  { %v3677_v55 = vadd.f32 %v3673_v13, %v6881_v47 }
0x1745   :  { %v3679_v25 = vrot.slane %v3677_v55, 7 }
0x1747   :  { %v3682_v58 = vsel %vm3681_vm6, %v3676_v0, %v3679_v25 }
0x1748   :  { %v3686_v49 = vsel %vm3685_vm7, %v3682_v58, 0.0 }
0x1749   :  { %3687 = vadd.xlane.f32.xlu0 %v3686_v49 }
0x17d6   :  { %v3688_v46 = vpop.xlane.xlu0 %3687 }
0x17d7   :  { %v3689_v41 = vmul.f32 0.03125, %v3688_v46 }
0x17d9   :  { %v3690_v30 = vsub.f32 %v3682_v58, %v3689_v41 }
0x17db   :  { %v3691_v32 = vmul.f32 %v3690_v30, %v3690_v30 }
0x17dd   :  { %v3692_v24 = vsel %vm3685_vm7, %v3691_v32, 0.0 }
0x17de   :  { %3693 = vadd.xlane.f32.xlu1 %v3692_v24 }
0x186b   :  { %v3694_v1 = vpop.xlane.xlu1 %3693 }
0x186c   :  { %v3695_v7 = vmul.f32 0.03125, %v3694_v1 }
0x186e   :  { %v3696_v27 = vadd.f32 1e-06, %v3695_v7 }
0x1870   :  { %4670 = vrsqrt.f32 %v3696_v27 }
0x187a   :  { %v4671_v47 = vpop.eup %4670 }
0x187b   :  { %v3698_v16 = vmul.f32 %v4671_v47, %v3690_v30 }
0x187d   :  { %v3705_v54 = vmul.f32 %v3874_v59, %v3698_v16 }
0x187f   :  { %v3712_v40 = vadd.f32 %v3875_v11, %v3705_v54 }
0x1881   :  { %3713 = vst.msk [vmem:[#allocation2] sm:$0x3] %vm3685_vm7, %v3712_v40 }
0x1882   :  { %4731 = shalt.err (!%p4728_p4)
}
0x1883   :  { %s4732_s9 = scalar_lea.hbm %s7017_s18, 32 }
0x1884   :  { %p4733_p5 = scmp.ne.s32.totalorder %s7017_s18, %s4732_s9  ;;  %p4736_p6 = scmp.lt.u32.totalorder %s4732_s9, %s7017_s18 }
0x1886   :  { %p4738_p7 = pnand %p4736_p6, %p4733_p5 }
0x1888   :  { %4741 = shalt.err (!%p4738_p7)
}
0x1889   :  { %3723 = dma.vmem_to_hbm [thread:$0]  %s3721_s8, 32, %s7017_s18, [#allocation3]  }
0x188a   :  { %4742 = dma.done.wait [#allocation3], 32  }
0x188b   :  { %4743 = vsyncadd [#allocation3], 4294967264 }
0x188c   :  { %3727 = vsyncpa [#allocation3], 1 }

</bundles_post_ra>
